<compile_context>
chip_gen: v5e
topology: v5e:2x2
jax: 0.10.0
libtpu: 0.0.40
codegen_flags: <defaults>
</compile_context>

<pallas_src>
import functools

import jax
import jax.numpy as jnp
from jax.experimental import pallas as pl
from jax.experimental.pallas import tpu as pltpu

BIG = 1e9
# Sentinel key: larger than any finite non-negative f32 bit pattern.
_KEY_SENTINEL = 0x7F800000


def _vmem_limit_bytes():
    # Raise the scoped limit on 128-MiB parts (v5e/v6e), stay conservative on v7x.
    try:
        cap = pltpu.get_tpu_info().vmem_capacity_bytes
    except Exception:
        cap = 128 * 1024 * 1024
    return max(32 * 1024 * 1024, min(96 * 1024 * 1024, cap // 2))


VMEM_LIMIT_BYTES = _vmem_limit_bytes()


def _choose_tiles(n):
    """(edge-conv node tile, kNN node tile, padded node count)."""
    if n >= 256:
        n_pad = -(-n // 256) * 256
        conv_tile = 512 if (n_pad % 512 == 0 and n_pad >= 2048) else 256
    else:
        n_pad = -(-n // 8) * 8
        conv_tile = n_pad
    # kNN working set has ~6 f32 [tile, N] temporaries; keep them <= ~16 MiB so the
    # kernel fits v7x's smaller VMEM even for large point clouds.
    knn_tile = conv_tile
    while knn_tile > 8 and 6 * knn_tile * n_pad * 4 > 16 * 1024 * 1024:
        knn_tile //= 2
    return conv_tile, knn_tile, n_pad


# ----------------------------------------------------------------------------
# Kernel 1: fused pairwise-distance + batch/self mask + iterative top-k (kNN)
# ----------------------------------------------------------------------------
def _knn_kernel(pos_ref, posT_ref, bcol_ref, brow_ref, idx_ref, valid_ref,
                *, tn, k, n_total, dim, col_bits):
    i0 = pl.program_id(0) * tn
    col = jax.lax.broadcasted_iota(jnp.int32, (tn, n_total), 1)
    row = i0 + jax.lax.broadcasted_iota(jnp.int32, (tn, n_total), 0)

    if dim <= 8:
        # Tiny feature width: a K<=8 MXU contraction wastes the systolic array;
        # compute the exact squared distance on the VPU.
        dist = jnp.zeros((tn, n_total), jnp.float32)
        for di in range(dim):
            diff = (pos_ref[:, di:di + 1].astype(jnp.float32)
                    - posT_ref[di:di + 1, :].astype(jnp.float32))
            dist = dist + diff * diff
    else:
        # bf16 gram (native MXU dtype on all generations), f32 norms/accumulation.
        p16 = pos_ref[...].astype(jnp.bfloat16)
        pt16 = posT_ref[...].astype(jnp.bfloat16)
        gram = jnp.dot(p16, pt16, preferred_element_type=jnp.float32)    # [tn, N]
        p32 = pos_ref[...].astype(jnp.float32)
        pt32 = posT_ref[...].astype(jnp.float32)
        sq_col = jnp.sum(p32 * p32, axis=1, keepdims=True)               # [tn, 1]
        sq_row = jnp.sum(pt32 * pt32, axis=0, keepdims=True)             # [1, N]
        # Clamp: cancellation can give slightly negative values; keep the f32 bit
        # pattern monotone for the packed-key trick below.
        dist = jnp.maximum(sq_col + sq_row - 2.0 * gram, 0.0)

    # Same-graph / no-self-loop mask generated in-kernel (no [N,N] mask DMA).
    same = bcol_ref[...] == brow_ref[...]                                # [tn, N]
    invalid = jnp.logical_or(jnp.logical_not(same), col == row)

    # Pack (distance, column) into one sortable int32 key: non-negative f32 bit
    # patterns are monotone, low col_bits bits carry the column index (ties break
    # to the smallest column).  One cross-lane min per top-k iteration.
    col_mask = jnp.int32((1 << col_bits) - 1)
    keep_mask = jnp.int32(~((1 << col_bits) - 1))
    key = jnp.bitwise_or(
        jnp.bitwise_and(pltpu.bitcast(dist, jnp.int32), keep_mask), col)
    sent = jnp.int32(_KEY_SENTINEL)
    key = jnp.where(invalid, sent, key)

    idx_cols, valid_cols = [], []
    for _ in range(k):
        kmin = jnp.min(key, axis=1, keepdims=True)                       # [tn, 1]
        idx_cols.append(jnp.bitwise_and(kmin, col_mask))
        valid_cols.append((kmin < sent).astype(jnp.float32))
        # Keys are unique per row (column embedded), so exactly one entry matches.
        key = jnp.where(key == kmin, sent, key)

    idx_ref[...] = jnp.concatenate(idx_cols, axis=1)
    valid_ref[...] = jnp.concatenate(valid_cols, axis=1)


def knn_graph(pos, batch, k, tile_n):
    n, d = pos.shape
    pos_t = jnp.transpose(pos)                                           # [D, N]
    bcol = batch.reshape(n, 1).astype(jnp.int32)
    brow = batch.reshape(1, n).astype(jnp.int32)
    col_bits = max(1, (n - 1).bit_length())
    kernel = functools.partial(_knn_kernel, tn=tile_n, k=k, n_total=n,
                               dim=d, col_bits=col_bits)
    return pl.pallas_call(
        kernel,
        out_shape=(jax.ShapeDtypeStruct((n, k), jnp.int32),
                   jax.ShapeDtypeStruct((n, k), jnp.float32)),
        grid=(n // tile_n,),
        in_specs=[
            pl.BlockSpec((tile_n, d), lambda i: (i, 0)),
            pl.BlockSpec((d, n), lambda i: (0, 0)),
            pl.BlockSpec((tile_n, 1), lambda i: (i, 0)),
            pl.BlockSpec((1, n), lambda i: (0, 0)),
        ],
        out_specs=(pl.BlockSpec((tile_n, k), lambda i: (i, 0)),
                   pl.BlockSpec((tile_n, k), lambda i: (i, 0))),
        compiler_params=pltpu.CompilerParams(
            dimension_semantics=("parallel",),
            vmem_limit_bytes=VMEM_LIMIT_BYTES),
    )(pos, pos_t, bcol, brow)


# ----------------------------------------------------------------------------
# Kernel 2: DynamicEdgeConvPN body, all k neighbours handled in one grid step
#   edge_out[i] = max_{j in kNN(i)} edge_mlp([x_i, x_j - x_i])
#   out[i]      = edge_out[i] + node_mlp(x_i)
# ----------------------------------------------------------------------------
def _edge_conv_kernel(x_ref, xnbr_ref, valid_ref,
                      ew0a_ref, ew0b_ref, eb0_ref, ew1_ref, eb1_ref, ew2_ref, eb2_ref,
                      nw0_ref, nb0_ref, nw1_ref, nb1_ref, nw2_ref, nb2_ref,
                      out_ref, *, k):
    tn = x_ref.shape[0]
    xi = x_ref[...]                                                      # [tn, C] bf16

    def layer(h, w_ref, b_ref):                                          # Linear+BN+ReLU
        y = jnp.dot(h.astype(jnp.bfloat16), w_ref[...],
                    preferred_element_type=jnp.float32)
        return jnp.maximum(y + b_ref[...], 0.0)

    # Edge MLP layer 0 without the [x_i, x_j - x_i] concat:
    #   e @ W0 = x_i @ (W0_top - W0_bot) + x_j @ W0_bot
    a0 = jnp.dot(xi, ew0a_ref[...], preferred_element_type=jnp.float32)  # [tn, h0]
    # Flatten the k neighbour slabs (k-major, contiguous per j) into one M = k*tn
    # matmul per MLP layer.
    xj = jnp.concatenate([xnbr_ref[j] for j in range(k)], axis=0)        # [k*tn, C]
    h = jnp.dot(xj, ew0b_ref[...], preferred_element_type=jnp.float32)   # [k*tn, h0]
    h = jnp.maximum(h + jnp.concatenate([a0] * k, axis=0) + eb0_ref[...], 0.0)
    h = layer(h, ew1_ref, eb1_ref)
    h = layer(h, ew2_ref, eb2_ref)                                       # [k*tn, c_out]

    # Invalid edges (graph smaller than k+1 nodes) are excluded from the max.
    vflat = jnp.concatenate([valid_ref[j] for j in range(k)], axis=0)    # [k*tn, 1]
    h = jnp.where(vflat > 0.5, h, -BIG)

    agg = h[0:tn, :]
    for j in range(1, k):
        agg = jnp.maximum(agg, h[j * tn:(j + 1) * tn, :])
    # Nodes with zero valid neighbours: PyG scatter-max fill value is 0.
    agg = jnp.where(agg <= -0.5 * BIG, 0.0, agg)

    g = layer(xi, nw0_ref, nb0_ref)
    g = layer(g, nw1_ref, nb1_ref)
    g = layer(g, nw2_ref, nb2_ref)
    out_ref[...] = (agg + g).astype(out_ref.dtype)


def dynamic_edge_conv(x, pos, batch, edge_params, node_params, k, tile_n, knn_tile,
                      out_dtype=jnp.float32):
    n, c_in = x.shape
    idx, valid = knn_graph(pos, batch, k, knn_tile)

    x_bf = x.astype(jnp.bfloat16)
    # k-major neighbour gather: x_nbr[j, i] == x[idx[i, j]].  Written directly in
    # [k, N, C] layout (only the tiny [N, k] index array is transposed) so the
    # per-j slices inside the kernel are contiguous.
    # TODO(synk): move the gather in-kernel (scalar-prefetched idx + manual row DMAs
    #             from x in HBM) to avoid the [k,N,C] HBM round-trip entirely.
    x_nbr = jnp.take(x_bf, jnp.transpose(idx), axis=0)                   # [k, N, C] bf16
    valid_t = jnp.transpose(valid).reshape(k, n, 1)                      # [k, N, 1] f32

    (ew0, eb0), (ew1, eb1), (ew2, eb2) = edge_params
    (nw0, nb0), (nw1, nb1), (nw2, nb2) = node_params
    ew0a = (ew0[:c_in] - ew0[c_in:]).astype(jnp.bfloat16)                # W0_top - W0_bot
    ew0b = ew0[c_in:].astype(jnp.bfloat16)                               # W0_bot
    weights = [ew0a, ew0b, eb0,
               ew1.astype(jnp.bfloat16), eb1,
               ew2.astype(jnp.bfloat16), eb2,
               nw0.astype(jnp.bfloat16), nb0,
               nw1.astype(jnp.bfloat16), nb1,
               nw2.astype(jnp.bfloat16), nb2]
    c_out = nw2.shape[1]

    def const_spec(a):
        rank = a.ndim
        return pl.BlockSpec(a.shape, lambda i, r=rank: (0,) * r)

    in_specs = [
        pl.BlockSpec((tile_n, c_in), lambda i: (i, 0)),                  # x_i tile
        pl.BlockSpec((k, tile_n, c_in), lambda i: (0, i, 0)),            # all k neighbours
        pl.BlockSpec((k, tile_n, 1), lambda i: (0, i, 0)),               # edge validity
    ] + [const_spec(w) for w in weights]

    kernel = functools.partial(_edge_conv_kernel, k=k)
    return pl.pallas_call(
        kernel,
        out_shape=jax.ShapeDtypeStruct((n, c_out), out_dtype),
        grid=(n // tile_n,),
        in_specs=in_specs,
        out_specs=pl.BlockSpec((tile_n, c_out), lambda i: (i, 0)),
        compiler_params=pltpu.CompilerParams(
            dimension_semantics=("parallel",),
            vmem_limit_bytes=VMEM_LIMIT_BYTES),
    )(x_bf, x_nbr, valid_t, *weights)


# ----------------------------------------------------------------------------
# Kernel 3: global_mean_pool as an accumulated (normalized segment) @ x matmul
# ----------------------------------------------------------------------------
def _pool_kernel(seg_ref, x_ref, out_ref):
    @pl.when(pl.program_id(0) == 0)
    def _():
        out_ref[...] = jnp.zeros_like(out_ref)
    out_ref[...] += jnp.dot(seg_ref[...], x_ref[...],
                            preferred_element_type=jnp.float32)


def global_mean_pool(x, batch, num_graphs, tile_n):
    n, c = x.shape
    onehot = (batch[None, :] == jnp.arange(num_graphs, dtype=batch.dtype)[:, None])
    onehot = onehot.astype(jnp.float32)                                  # [G, N]
    counts = jnp.maximum(jnp.sum(onehot, axis=1, keepdims=True), 1.0)
    seg = onehot / counts
    return pl.pallas_call(
        _pool_kernel,
        out_shape=jax.ShapeDtypeStruct((num_graphs, c), jnp.float32),
        grid=(n // tile_n,),
        in_specs=[pl.BlockSpec((num_graphs, tile_n), lambda i: (0, i)),
                  pl.BlockSpec((tile_n, c), lambda i: (i, 0))],
        out_specs=pl.BlockSpec((num_graphs, c), lambda i: (0, 0)),
        compiler_params=pltpu.CompilerParams(
            dimension_semantics=("arbitrary",),
            vmem_limit_bytes=VMEM_LIMIT_BYTES),
    )(seg, x)


# ----------------------------------------------------------------------------
# Parameters: MLPStack([d0, d1, d2, d3], bn=True, act=True) with BN folded in.
# ----------------------------------------------------------------------------
def make_mlp_params(key, dims, eps=1e-5):
    params = []
    for i in range(len(dims) - 1):
        key, kw, kb, kg, kbe, km, kv = jax.random.split(key, 7)
        d_in, d_out = dims[i], dims[i + 1]
        w = jax.random.normal(kw, (d_in, d_out), jnp.float32) / jnp.sqrt(float(d_in))
        b = 0.1 * jax.random.normal(kb, (d_out,), jnp.float32)
        gamma = 1.0 + 0.1 * jax.random.normal(kg, (d_out,), jnp.float32)
        beta = 0.1 * jax.random.normal(kbe, (d_out,), jnp.float32)
        rmean = 0.1 * jax.random.normal(km, (d_out,), jnp.float32)
        rvar = 1.0 + 0.1 * jnp.abs(jax.random.normal(kv, (d_out,), jnp.float32))
        scale = gamma / jnp.sqrt(rvar + eps)
        w_eff = w * scale[None, :]
        b_eff = ((b - rmean) * scale + beta)[None, :]                    # (1, d_out)
        params.append((w_eff, b_eff))
    return params


# ----------------------------------------------------------------------------
# DGCNN forward
# ----------------------------------------------------------------------------
def dgcnn_forward(x, pos, batch, params, *, k, num_graphs):
    n = x.shape[0]
    conv_tile, knn_tile, n_pad = _choose_tiles(n)
    pad = n_pad - n
    if pad:
        # Padded nodes live in a dummy graph (id == num_graphs): never selected as
        # neighbours of real nodes and contribute zero weight to the pooling matrix.
        x = jnp.concatenate([x, jnp.zeros((pad, x.shape[1]), x.dtype)], axis=0)
        pos = jnp.concatenate([pos, jnp.full((pad, pos.shape[1]), 1e6, pos.dtype)], axis=0)
        batch = jnp.concatenate(
            [batch, jnp.full((pad,), num_graphs, batch.dtype)], axis=0)

    # conv1 output kept in bf16 so conv2's kNN gram and neighbour gather consume
    # bf16 directly; conv2 output stays f32 for the pool / final result.
    h = dynamic_edge_conv(x, pos, batch, params["edge1"], params["node1"],
                          k, conv_tile, knn_tile, out_dtype=jnp.bfloat16)
    h = dynamic_edge_conv(h, h, batch, params["edge2"], params["node2"],
                          k, conv_tile, knn_tile, out_dtype=jnp.float32)
    return global_mean_pool(h, batch, num_graphs, conv_tile)


if __name__ == "__main__":
    key = jax.random.PRNGKey(0)
    k = 7
    x_size, pos_size = 4, 3
    nodes_per_graph, num_graphs = 8, 2
    n = nodes_per_graph * num_graphs

    kx, kp, kparams = jax.random.split(key, 3)
    x = jax.random.normal(kx, (n, x_size), jnp.float32)       # data.x
    pos = jax.random.normal(kp, (n, pos_size), jnp.float32)   # data.pos
    batch = jnp.repeat(jnp.arange(num_graphs, dtype=jnp.int32),
                       nodes_per_graph)                        # data.batch

    ke1, kn1, ke2, kn2 = jax.random.split(kparams, 4)
    params = {
        "edge1": make_mlp_params(ke1, [2 * x_size, 32, 32, 32]),
        "node1": make_mlp_params(kn1, [x_size, 32, 32, 32]),
        "edge2": make_mlp_params(ke2, [64, 64, 64, 128]),
        "node2": make_mlp_params(kn2, [32, 64, 64, 128]),
    }

    fwd = jax.jit(functools.partial(dgcnn_forward, k=k, num_graphs=num_graphs))
    out = fwd(x, pos, batch, params)
    jax.block_until_ready(out)
    assert out.shape == (num_graphs, 128) and out.dtype == jnp.float32
    print("KERNEL_OK")
</pallas_src>

<mosaic_0001>
module attributes {stable_mosaic.version = 11 : i64} {
  func.func @_knn_kernel(%arg0: i32, %arg1: memref<16x3xf32, #tpu.memory_space<vmem>>, %arg2: memref<3x16xf32, #tpu.memory_space<vmem>>, %arg3: memref<16x1xi32, #tpu.memory_space<vmem>>, %arg4: memref<1x16xi32, #tpu.memory_space<vmem>>, %arg5: memref<16x7xi32, #tpu.memory_space<vmem>>, %arg6: memref<16x7xf32, #tpu.memory_space<vmem>>) attributes {dimension_semantics = [#tpu.dimension_semantics<parallel>], iteration_bounds = array<i64: 1>, scalar_prefetch = 0 : i64, scratch_operands = 0 : i64, tpu.core_type = #tpu.core_type<tc>, window_params = [{transform_indices = @transform_0, window_bounds = array<i64: 16, 3>}, {pipeline_mode = #tpu.pipeline_mode<synchronous>, transform_indices = @transform_1, window_bounds = array<i64: 3, 16>}, {transform_indices = @transform_2, window_bounds = array<i64: 16, 1>}, {pipeline_mode = #tpu.pipeline_mode<synchronous>, transform_indices = @transform_3, window_bounds = array<i64: 1, 16>}, {transform_indices = @transform_4, window_bounds = array<i64: 16, 7>}, {transform_indices = @transform_5, window_bounds = array<i64: 16, 7>}]} {
    %c16_i32 = arith.constant 16 : i32
    %0 = arith.muli %arg0, %c16_i32 : i32
    %1 = tpu.iota {dimensions = array<i32: 1>} : vector<16x16xi32>
    %2 = tpu.iota {dimensions = array<i32: 0>} : vector<16x16xi32>
    %3 = vector.broadcast %0 : i32 to vector<16x16xi32>
    %4 = arith.addi %3, %2 : vector<16x16xi32>
    %cst = arith.constant 0.000000e+00 : f32
    %5 = vector.broadcast %cst : f32 to vector<16x16xf32>
    %c0 = arith.constant 0 : index
    %c0_0 = arith.constant 0 : index
    %6 = vector.load %arg1[%c0, %c0_0] : memref<16x3xf32, #tpu.memory_space<vmem>>, vector<16x1xf32>
    %c0_1 = arith.constant 0 : index
    %c0_2 = arith.constant 0 : index
    %7 = vector.load %arg2[%c0_1, %c0_2] : memref<3x16xf32, #tpu.memory_space<vmem>>, vector<1x16xf32>
    %8 = vector.broadcast %6 : vector<16x1xf32> to vector<16x16xf32>
    %9 = vector.broadcast %7 : vector<1x16xf32> to vector<16x16xf32>
    %10 = arith.subf %8, %9 : vector<16x16xf32>
    %11 = arith.mulf %10, %10 : vector<16x16xf32>
    %12 = arith.addf %5, %11 : vector<16x16xf32>
    %c0_3 = arith.constant 0 : index
    %c1 = arith.constant 1 : index
    %13 = vector.load %arg1[%c0_3, %c1] : memref<16x3xf32, #tpu.memory_space<vmem>>, vector<16x1xf32>
    %c1_4 = arith.constant 1 : index
    %c0_5 = arith.constant 0 : index
    %14 = vector.load %arg2[%c1_4, %c0_5] : memref<3x16xf32, #tpu.memory_space<vmem>>, vector<1x16xf32>
    %15 = vector.broadcast %13 : vector<16x1xf32> to vector<16x16xf32>
    %16 = vector.broadcast %14 : vector<1x16xf32> to vector<16x16xf32>
    %17 = arith.subf %15, %16 : vector<16x16xf32>
    %18 = arith.mulf %17, %17 : vector<16x16xf32>
    %19 = arith.addf %12, %18 : vector<16x16xf32>
    %c0_6 = arith.constant 0 : index
    %c2 = arith.constant 2 : index
    %20 = vector.load %arg1[%c0_6, %c2] : memref<16x3xf32, #tpu.memory_space<vmem>>, vector<16x1xf32>
    %c2_7 = arith.constant 2 : index
    %c0_8 = arith.constant 0 : index
    %21 = vector.load %arg2[%c2_7, %c0_8] : memref<3x16xf32, #tpu.memory_space<vmem>>, vector<1x16xf32>
    %22 = vector.broadcast %20 : vector<16x1xf32> to vector<16x16xf32>
    %23 = vector.broadcast %21 : vector<1x16xf32> to vector<16x16xf32>
    %24 = arith.subf %22, %23 : vector<16x16xf32>
    %25 = arith.mulf %24, %24 : vector<16x16xf32>
    %26 = arith.addf %19, %25 : vector<16x16xf32>
    %c0_9 = arith.constant 0 : index
    %c0_10 = arith.constant 0 : index
    %27 = vector.load %arg3[%c0_9, %c0_10] : memref<16x1xi32, #tpu.memory_space<vmem>>, vector<16x1xi32>
    %c0_11 = arith.constant 0 : index
    %c0_12 = arith.constant 0 : index
    %28 = vector.load %arg4[%c0_11, %c0_12] : memref<1x16xi32, #tpu.memory_space<vmem>>, vector<1x16xi32>
    %29 = vector.broadcast %27 : vector<16x1xi32> to vector<16x16xi32>
    %30 = vector.broadcast %28 : vector<1x16xi32> to vector<16x16xi32>
    %31 = arith.cmpi eq, %29, %30 : vector<16x16xi32>
    %cst_13 = arith.constant dense<true> : vector<16x16xi1>
    %32 = arith.xori %31, %cst_13 : vector<16x16xi1>
    %33 = arith.cmpi eq, %1, %4 : vector<16x16xi32>
    %34 = arith.ori %32, %33 : vector<16x16xi1>
    %35 = tpu.bitcast %26 : vector<16x16xf32> -> vector<16x16xi32>
    %c-16_i32 = arith.constant -16 : i32
    %36 = vector.broadcast %c-16_i32 : i32 to vector<16x16xi32>
    %37 = arith.andi %35, %36 : vector<16x16xi32>
    %38 = arith.ori %37, %1 : vector<16x16xi32>
    %c2139095040_i32 = arith.constant 2139095040 : i32
    %39 = vector.broadcast %c2139095040_i32 : i32 to vector<16x16xi32>
    %40 = arith.select %34, %39, %38 : vector<16x16xi1>, vector<16x16xi32>
    %cst_14 = arith.constant dense<2147483647> : vector<16xi32>
    %41 = vector.multi_reduction <minsi>, %40, %cst_14 [1] : vector<16x16xi32> to vector<16xi32>
    %42 = vector.shape_cast %41 : vector<16xi32> to vector<16x1xi32>
    %c15_i32 = arith.constant 15 : i32
    %43 = vector.broadcast %c15_i32 : i32 to vector<16x1xi32>
    %44 = arith.andi %42, %43 : vector<16x1xi32>
    %c2139095040_i32_15 = arith.constant 2139095040 : i32
    %45 = vector.broadcast %c2139095040_i32_15 : i32 to vector<16x1xi32>
    %46 = arith.cmpi slt, %42, %45 : vector<16x1xi32>
    %47 = arith.extui %46 : vector<16x1xi1> to vector<16x1xi32>
    %48 = arith.sitofp %47 : vector<16x1xi32> to vector<16x1xf32>
    %49 = vector.broadcast %42 : vector<16x1xi32> to vector<16x16xi32>
    %50 = arith.cmpi eq, %40, %49 : vector<16x16xi32>
    %c2139095040_i32_16 = arith.constant 2139095040 : i32
    %51 = vector.broadcast %c2139095040_i32_16 : i32 to vector<16x16xi32>
    %52 = arith.select %50, %51, %40 : vector<16x16xi1>, vector<16x16xi32>
    %cst_17 = arith.constant dense<2147483647> : vector<16xi32>
    %53 = vector.multi_reduction <minsi>, %52, %cst_17 [1] : vector<16x16xi32> to vector<16xi32>
    %54 = vector.shape_cast %53 : vector<16xi32> to vector<16x1xi32>
    %c15_i32_18 = arith.constant 15 : i32
    %55 = vector.broadcast %c15_i32_18 : i32 to vector<16x1xi32>
    %56 = arith.andi %54, %55 : vector<16x1xi32>
    %c2139095040_i32_19 = arith.constant 2139095040 : i32
    %57 = vector.broadcast %c2139095040_i32_19 : i32 to vector<16x1xi32>
    %58 = arith.cmpi slt, %54, %57 : vector<16x1xi32>
    %59 = arith.extui %58 : vector<16x1xi1> to vector<16x1xi32>
    %60 = arith.sitofp %59 : vector<16x1xi32> to vector<16x1xf32>
    %61 = vector.broadcast %54 : vector<16x1xi32> to vector<16x16xi32>
    %62 = arith.cmpi eq, %52, %61 : vector<16x16xi32>
    %c2139095040_i32_20 = arith.constant 2139095040 : i32
    %63 = vector.broadcast %c2139095040_i32_20 : i32 to vector<16x16xi32>
    %64 = arith.select %62, %63, %52 : vector<16x16xi1>, vector<16x16xi32>
    %cst_21 = arith.constant dense<2147483647> : vector<16xi32>
    %65 = vector.multi_reduction <minsi>, %64, %cst_21 [1] : vector<16x16xi32> to vector<16xi32>
    %66 = vector.shape_cast %65 : vector<16xi32> to vector<16x1xi32>
    %c15_i32_22 = arith.constant 15 : i32
    %67 = vector.broadcast %c15_i32_22 : i32 to vector<16x1xi32>
    %68 = arith.andi %66, %67 : vector<16x1xi32>
    %c2139095040_i32_23 = arith.constant 2139095040 : i32
    %69 = vector.broadcast %c2139095040_i32_23 : i32 to vector<16x1xi32>
    %70 = arith.cmpi slt, %66, %69 : vector<16x1xi32>
    %71 = arith.extui %70 : vector<16x1xi1> to vector<16x1xi32>
    %72 = arith.sitofp %71 : vector<16x1xi32> to vector<16x1xf32>
    %73 = vector.broadcast %66 : vector<16x1xi32> to vector<16x16xi32>
    %74 = arith.cmpi eq, %64, %73 : vector<16x16xi32>
    %c2139095040_i32_24 = arith.constant 2139095040 : i32
    %75 = vector.broadcast %c2139095040_i32_24 : i32 to vector<16x16xi32>
    %76 = arith.select %74, %75, %64 : vector<16x16xi1>, vector<16x16xi32>
    %cst_25 = arith.constant dense<2147483647> : vector<16xi32>
    %77 = vector.multi_reduction <minsi>, %76, %cst_25 [1] : vector<16x16xi32> to vector<16xi32>
    %78 = vector.shape_cast %77 : vector<16xi32> to vector<16x1xi32>
    %c15_i32_26 = arith.constant 15 : i32
    %79 = vector.broadcast %c15_i32_26 : i32 to vector<16x1xi32>
    %80 = arith.andi %78, %79 : vector<16x1xi32>
    %c2139095040_i32_27 = arith.constant 2139095040 : i32
    %81 = vector.broadcast %c2139095040_i32_27 : i32 to vector<16x1xi32>
    %82 = arith.cmpi slt, %78, %81 : vector<16x1xi32>
    %83 = arith.extui %82 : vector<16x1xi1> to vector<16x1xi32>
    %84 = arith.sitofp %83 : vector<16x1xi32> to vector<16x1xf32>
    %85 = vector.broadcast %78 : vector<16x1xi32> to vector<16x16xi32>
    %86 = arith.cmpi eq, %76, %85 : vector<16x16xi32>
    %c2139095040_i32_28 = arith.constant 2139095040 : i32
    %87 = vector.broadcast %c2139095040_i32_28 : i32 to vector<16x16xi32>
    %88 = arith.select %86, %87, %76 : vector<16x16xi1>, vector<16x16xi32>
    %cst_29 = arith.constant dense<2147483647> : vector<16xi32>
    %89 = vector.multi_reduction <minsi>, %88, %cst_29 [1] : vector<16x16xi32> to vector<16xi32>
    %90 = vector.shape_cast %89 : vector<16xi32> to vector<16x1xi32>
    %c15_i32_30 = arith.constant 15 : i32
    %91 = vector.broadcast %c15_i32_30 : i32 to vector<16x1xi32>
    %92 = arith.andi %90, %91 : vector<16x1xi32>
    %c2139095040_i32_31 = arith.constant 2139095040 : i32
    %93 = vector.broadcast %c2139095040_i32_31 : i32 to vector<16x1xi32>
    %94 = arith.cmpi slt, %90, %93 : vector<16x1xi32>
    %95 = arith.extui %94 : vector<16x1xi1> to vector<16x1xi32>
    %96 = arith.sitofp %95 : vector<16x1xi32> to vector<16x1xf32>
    %97 = vector.broadcast %90 : vector<16x1xi32> to vector<16x16xi32>
    %98 = arith.cmpi eq, %88, %97 : vector<16x16xi32>
    %c2139095040_i32_32 = arith.constant 2139095040 : i32
    %99 = vector.broadcast %c2139095040_i32_32 : i32 to vector<16x16xi32>
    %100 = arith.select %98, %99, %88 : vector<16x16xi1>, vector<16x16xi32>
    %cst_33 = arith.constant dense<2147483647> : vector<16xi32>
    %101 = vector.multi_reduction <minsi>, %100, %cst_33 [1] : vector<16x16xi32> to vector<16xi32>
    %102 = vector.shape_cast %101 : vector<16xi32> to vector<16x1xi32>
    %c15_i32_34 = arith.constant 15 : i32
    %103 = vector.broadcast %c15_i32_34 : i32 to vector<16x1xi32>
    %104 = arith.andi %102, %103 : vector<16x1xi32>
    %c2139095040_i32_35 = arith.constant 2139095040 : i32
    %105 = vector.broadcast %c2139095040_i32_35 : i32 to vector<16x1xi32>
    %106 = arith.cmpi slt, %102, %105 : vector<16x1xi32>
    %107 = arith.extui %106 : vector<16x1xi1> to vector<16x1xi32>
    %108 = arith.sitofp %107 : vector<16x1xi32> to vector<16x1xf32>
    %109 = vector.broadcast %102 : vector<16x1xi32> to vector<16x16xi32>
    %110 = arith.cmpi eq, %100, %109 : vector<16x16xi32>
    %c2139095040_i32_36 = arith.constant 2139095040 : i32
    %111 = vector.broadcast %c2139095040_i32_36 : i32 to vector<16x16xi32>
    %112 = arith.select %110, %111, %100 : vector<16x16xi1>, vector<16x16xi32>
    %cst_37 = arith.constant dense<2147483647> : vector<16xi32>
    %113 = vector.multi_reduction <minsi>, %112, %cst_37 [1] : vector<16x16xi32> to vector<16xi32>
    %114 = vector.shape_cast %113 : vector<16xi32> to vector<16x1xi32>
    %c15_i32_38 = arith.constant 15 : i32
    %115 = vector.broadcast %c15_i32_38 : i32 to vector<16x1xi32>
    %116 = arith.andi %114, %115 : vector<16x1xi32>
    %c2139095040_i32_39 = arith.constant 2139095040 : i32
    %117 = vector.broadcast %c2139095040_i32_39 : i32 to vector<16x1xi32>
    %118 = arith.cmpi slt, %114, %117 : vector<16x1xi32>
    %119 = arith.extui %118 : vector<16x1xi1> to vector<16x1xi32>
    %120 = arith.sitofp %119 : vector<16x1xi32> to vector<16x1xf32>
    %121 = tpu.concatenate %44, %56, %68, %80, %92, %104, %116 in 1 : vector<16x1xi32>, vector<16x1xi32>, vector<16x1xi32>, vector<16x1xi32>, vector<16x1xi32>, vector<16x1xi32>, vector<16x1xi32> -> vector<16x7xi32>
    %c0_40 = arith.constant 0 : index
    %c0_41 = arith.constant 0 : index
    %122 = vector.load %arg5[%c0_40, %c0_41] : memref<16x7xi32, #tpu.memory_space<vmem>>, vector<16x7xi32>
    tpu.vector_store %arg5[%c0_40, %c0_41], %121 {strides = array<i32>} : memref<16x7xi32, #tpu.memory_space<vmem>>, vector<16x7xi32>,
    %123 = tpu.concatenate %48, %60, %72, %84, %96, %108, %120 in 1 : vector<16x1xf32>, vector<16x1xf32>, vector<16x1xf32>, vector<16x1xf32>, vector<16x1xf32>, vector<16x1xf32>, vector<16x1xf32> -> vector<16x7xf32>
    %c0_42 = arith.constant 0 : index
    %c0_43 = arith.constant 0 : index
    %124 = vector.load %arg6[%c0_42, %c0_43] : memref<16x7xf32, #tpu.memory_space<vmem>>, vector<16x7xf32>
    tpu.vector_store %arg6[%c0_42, %c0_43], %123 {strides = array<i32>} : memref<16x7xf32, #tpu.memory_space<vmem>>, vector<16x7xf32>,
    return
  }
  func.func @transform_0(%arg0: i32) -> (i32, i32) {
    %c0_i32 = arith.constant 0 : i32
    %c0_i32_0 = arith.constant 0 : i32
    return %arg0, %c0_i32 : i32, i32
  }
  func.func @transform_1(%arg0: i32) -> (i32, i32) {
    %c0_i32 = arith.constant 0 : i32
    %c0_i32_0 = arith.constant 0 : i32
    %c0_i32_1 = arith.constant 0 : i32
    return %c0_i32, %c0_i32_0 : i32, i32
  }
  func.func @transform_2(%arg0: i32) -> (i32, i32) {
    %c0_i32 = arith.constant 0 : i32
    %c0_i32_0 = arith.constant 0 : i32
    return %arg0, %c0_i32 : i32, i32
  }
  func.func @transform_3(%arg0: i32) -> (i32, i32) {
    %c0_i32 = arith.constant 0 : i32
    %c0_i32_0 = arith.constant 0 : i32
    %c0_i32_1 = arith.constant 0 : i32
    return %c0_i32, %c0_i32_0 : i32, i32
  }
  func.func @transform_4(%arg0: i32) -> (i32, i32) {
    %c0_i32 = arith.constant 0 : i32
    %c0_i32_0 = arith.constant 0 : i32
    return %arg0, %c0_i32 : i32, i32
  }
  func.func @transform_5(%arg0: i32) -> (i32, i32) {
    %c0_i32 = arith.constant 0 : i32
    %c0_i32_0 = arith.constant 0 : i32
    return %arg0, %c0_i32 : i32, i32
  }
}

module attributes {stable_mosaic.version = 11 : i64} {
  func.func @_knn_kernel(%arg0: i32, %arg1: memref<16x32xbf16, #tpu.memory_space<vmem>>, %arg2: memref<32x16xbf16, #tpu.memory_space<vmem>>, %arg3: memref<16x1xi32, #tpu.memory_space<vmem>>, %arg4: memref<1x16xi32, #tpu.memory_space<vmem>>, %arg5: memref<16x7xi32, #tpu.memory_space<vmem>>, %arg6: memref<16x7xf32, #tpu.memory_space<vmem>>) attributes {dimension_semantics = [#tpu.dimension_semantics<parallel>], iteration_bounds = array<i64: 1>, scalar_prefetch = 0 : i64, scratch_operands = 0 : i64, tpu.core_type = #tpu.core_type<tc>, window_params = [{transform_indices = @transform_0, window_bounds = array<i64: 16, 32>}, {pipeline_mode = #tpu.pipeline_mode<synchronous>, transform_indices = @transform_1, window_bounds = array<i64: 32, 16>}, {transform_indices = @transform_2, window_bounds = array<i64: 16, 1>}, {pipeline_mode = #tpu.pipeline_mode<synchronous>, transform_indices = @transform_3, window_bounds = array<i64: 1, 16>}, {transform_indices = @transform_4, window_bounds = array<i64: 16, 7>}, {transform_indices = @transform_5, window_bounds = array<i64: 16, 7>}]} {
    %c16_i32 = arith.constant 16 : i32
    %0 = arith.muli %arg0, %c16_i32 : i32
    %1 = tpu.iota {dimensions = array<i32: 1>} : vector<16x16xi32>
    %2 = tpu.iota {dimensions = array<i32: 0>} : vector<16x16xi32>
    %3 = vector.broadcast %0 : i32 to vector<16x16xi32>
    %4 = arith.addi %3, %2 : vector<16x16xi32>
    %c0 = arith.constant 0 : index
    %c0_0 = arith.constant 0 : index
    %5 = vector.load %arg1[%c0, %c0_0] : memref<16x32xbf16, #tpu.memory_space<vmem>>, vector<16x32xbf16>
    %c0_1 = arith.constant 0 : index
    %c0_2 = arith.constant 0 : index
    %6 = vector.load %arg2[%c0_1, %c0_2] : memref<32x16xbf16, #tpu.memory_space<vmem>>, vector<32x16xbf16>
    %cst = arith.constant dense<0.000000e+00> : vector<16x16xf32>
    %7 = tpu.matmul %5, %6, %cst {dimension_numbers = #tpu.dot_dimension_numbers<[1], [0], [0], [1], [0, 0, 1, 1], [], []>} : vector<16x32xbf16>, vector<32x16xbf16>, vector<16x16xf32> -> vector<16x16xf32>
    %c0_3 = arith.constant 0 : index
    %c0_4 = arith.constant 0 : index
    %8 = vector.load %arg1[%c0_3, %c0_4] : memref<16x32xbf16, #tpu.memory_space<vmem>>, vector<16x32xbf16>
    %9 = arith.extf %8 : vector<16x32xbf16> to vector<16x32xf32>
    %c0_5 = arith.constant 0 : index
    %c0_6 = arith.constant 0 : index
    %10 = vector.load %arg2[%c0_5, %c0_6] : memref<32x16xbf16, #tpu.memory_space<vmem>>, vector<32x16xbf16>
    %11 = arith.extf %10 : vector<32x16xbf16> to vector<32x16xf32>
    %12 = arith.mulf %9, %9 : vector<16x32xf32>
    %cst_7 = arith.constant dense<0.000000e+00> : vector<16xf32>
    %13 = vector.multi_reduction <add>, %12, %cst_7 [1] : vector<16x32xf32> to vector<16xf32>
    %14 = vector.shape_cast %13 : vector<16xf32> to vector<16x1xf32>
    %15 = arith.mulf %11, %11 : vector<32x16xf32>
    %cst_8 = arith.constant dense<0.000000e+00> : vector<16xf32>
    %16 = vector.multi_reduction <add>, %15, %cst_8 [0] : vector<32x16xf32> to vector<16xf32>
    %17 = vector.shape_cast %16 : vector<16xf32> to vector<1x16xf32>
    %18 = vector.broadcast %14 : vector<16x1xf32> to vector<16x16xf32>
    %19 = vector.broadcast %17 : vector<1x16xf32> to vector<16x16xf32>
    %20 = arith.addf %18, %19 : vector<16x16xf32>
    %cst_9 = arith.constant 2.000000e+00 : f32
    %21 = vector.broadcast %cst_9 : f32 to vector<16x16xf32>
    %22 = arith.mulf %21, %7 : vector<16x16xf32>
    %23 = arith.subf %20, %22 : vector<16x16xf32>
    %cst_10 = arith.constant 0.000000e+00 : f32
    %24 = vector.broadcast %cst_10 : f32 to vector<16x16xf32>
    %25 = arith.maximumf %23, %24 : vector<16x16xf32>
    %c0_11 = arith.constant 0 : index
    %c0_12 = arith.constant 0 : index
    %26 = vector.load %arg3[%c0_11, %c0_12] : memref<16x1xi32, #tpu.memory_space<vmem>>, vector<16x1xi32>
    %c0_13 = arith.constant 0 : index
    %c0_14 = arith.constant 0 : index
    %27 = vector.load %arg4[%c0_13, %c0_14] : memref<1x16xi32, #tpu.memory_space<vmem>>, vector<1x16xi32>
    %28 = vector.broadcast %26 : vector<16x1xi32> to vector<16x16xi32>
    %29 = vector.broadcast %27 : vector<1x16xi32> to vector<16x16xi32>
    %30 = arith.cmpi eq, %28, %29 : vector<16x16xi32>
    %cst_15 = arith.constant dense<true> : vector<16x16xi1>
    %31 = arith.xori %30, %cst_15 : vector<16x16xi1>
    %32 = arith.cmpi eq, %1, %4 : vector<16x16xi32>
    %33 = arith.ori %31, %32 : vector<16x16xi1>
    %34 = tpu.bitcast %25 : vector<16x16xf32> -> vector<16x16xi32>
    %c-16_i32 = arith.constant -16 : i32
    %35 = vector.broadcast %c-16_i32 : i32 to vector<16x16xi32>
    %36 = arith.andi %34, %35 : vector<16x16xi32>
    %37 = arith.ori %36, %1 : vector<16x16xi32>
    %c2139095040_i32 = arith.constant 2139095040 : i32
    %38 = vector.broadcast %c2139095040_i32 : i32 to vector<16x16xi32>
    %39 = arith.select %33, %38, %37 : vector<16x16xi1>, vector<16x16xi32>
    %cst_16 = arith.constant dense<2147483647> : vector<16xi32>
    %40 = vector.multi_reduction <minsi>, %39, %cst_16 [1] : vector<16x16xi32> to vector<16xi32>
    %41 = vector.shape_cast %40 : vector<16xi32> to vector<16x1xi32>
    %c15_i32 = arith.constant 15 : i32
    %42 = vector.broadcast %c15_i32 : i32 to vector<16x1xi32>
    %43 = arith.andi %41, %42 : vector<16x1xi32>
    %c2139095040_i32_17 = arith.constant 2139095040 : i32
    %44 = vector.broadcast %c2139095040_i32_17 : i32 to vector<16x1xi32>
    %45 = arith.cmpi slt, %41, %44 : vector<16x1xi32>
    %46 = arith.extui %45 : vector<16x1xi1> to vector<16x1xi32>
    %47 = arith.sitofp %46 : vector<16x1xi32> to vector<16x1xf32>
    %48 = vector.broadcast %41 : vector<16x1xi32> to vector<16x16xi32>
    %49 = arith.cmpi eq, %39, %48 : vector<16x16xi32>
    %c2139095040_i32_18 = arith.constant 2139095040 : i32
    %50 = vector.broadcast %c2139095040_i32_18 : i32 to vector<16x16xi32>
    %51 = arith.select %49, %50, %39 : vector<16x16xi1>, vector<16x16xi32>
    %cst_19 = arith.constant dense<2147483647> : vector<16xi32>
    %52 = vector.multi_reduction <minsi>, %51, %cst_19 [1] : vector<16x16xi32> to vector<16xi32>
    %53 = vector.shape_cast %52 : vector<16xi32> to vector<16x1xi32>
    %c15_i32_20 = arith.constant 15 : i32
    %54 = vector.broadcast %c15_i32_20 : i32 to vector<16x1xi32>
    %55 = arith.andi %53, %54 : vector<16x1xi32>
    %c2139095040_i32_21 = arith.constant 2139095040 : i32
    %56 = vector.broadcast %c2139095040_i32_21 : i32 to vector<16x1xi32>
    %57 = arith.cmpi slt, %53, %56 : vector<16x1xi32>
    %58 = arith.extui %57 : vector<16x1xi1> to vector<16x1xi32>
    %59 = arith.sitofp %58 : vector<16x1xi32> to vector<16x1xf32>
    %60 = vector.broadcast %53 : vector<16x1xi32> to vector<16x16xi32>
    %61 = arith.cmpi eq, %51, %60 : vector<16x16xi32>
    %c2139095040_i32_22 = arith.constant 2139095040 : i32
    %62 = vector.broadcast %c2139095040_i32_22 : i32 to vector<16x16xi32>
    %63 = arith.select %61, %62, %51 : vector<16x16xi1>, vector<16x16xi32>
    %cst_23 = arith.constant dense<2147483647> : vector<16xi32>
    %64 = vector.multi_reduction <minsi>, %63, %cst_23 [1] : vector<16x16xi32> to vector<16xi32>
    %65 = vector.shape_cast %64 : vector<16xi32> to vector<16x1xi32>
    %c15_i32_24 = arith.constant 15 : i32
    %66 = vector.broadcast %c15_i32_24 : i32 to vector<16x1xi32>
    %67 = arith.andi %65, %66 : vector<16x1xi32>
    %c2139095040_i32_25 = arith.constant 2139095040 : i32
    %68 = vector.broadcast %c2139095040_i32_25 : i32 to vector<16x1xi32>
    %69 = arith.cmpi slt, %65, %68 : vector<16x1xi32>
    %70 = arith.extui %69 : vector<16x1xi1> to vector<16x1xi32>
    %71 = arith.sitofp %70 : vector<16x1xi32> to vector<16x1xf32>
    %72 = vector.broadcast %65 : vector<16x1xi32> to vector<16x16xi32>
    %73 = arith.cmpi eq, %63, %72 : vector<16x16xi32>
    %c2139095040_i32_26 = arith.constant 2139095040 : i32
    %74 = vector.broadcast %c2139095040_i32_26 : i32 to vector<16x16xi32>
    %75 = arith.select %73, %74, %63 : vector<16x16xi1>, vector<16x16xi32>
    %cst_27 = arith.constant dense<2147483647> : vector<16xi32>
    %76 = vector.multi_reduction <minsi>, %75, %cst_27 [1] : vector<16x16xi32> to vector<16xi32>
    %77 = vector.shape_cast %76 : vector<16xi32> to vector<16x1xi32>
    %c15_i32_28 = arith.constant 15 : i32
    %78 = vector.broadcast %c15_i32_28 : i32 to vector<16x1xi32>
    %79 = arith.andi %77, %78 : vector<16x1xi32>
    %c2139095040_i32_29 = arith.constant 2139095040 : i32
    %80 = vector.broadcast %c2139095040_i32_29 : i32 to vector<16x1xi32>
    %81 = arith.cmpi slt, %77, %80 : vector<16x1xi32>
    %82 = arith.extui %81 : vector<16x1xi1> to vector<16x1xi32>
    %83 = arith.sitofp %82 : vector<16x1xi32> to vector<16x1xf32>
    %84 = vector.broadcast %77 : vector<16x1xi32> to vector<16x16xi32>
    %85 = arith.cmpi eq, %75, %84 : vector<16x16xi32>
    %c2139095040_i32_30 = arith.constant 2139095040 : i32
    %86 = vector.broadcast %c2139095040_i32_30 : i32 to vector<16x16xi32>
    %87 = arith.select %85, %86, %75 : vector<16x16xi1>, vector<16x16xi32>
    %cst_31 = arith.constant dense<2147483647> : vector<16xi32>
    %88 = vector.multi_reduction <minsi>, %87, %cst_31 [1] : vector<16x16xi32> to vector<16xi32>
    %89 = vector.shape_cast %88 : vector<16xi32> to vector<16x1xi32>
    %c15_i32_32 = arith.constant 15 : i32
    %90 = vector.broadcast %c15_i32_32 : i32 to vector<16x1xi32>
    %91 = arith.andi %89, %90 : vector<16x1xi32>
    %c2139095040_i32_33 = arith.constant 2139095040 : i32
    %92 = vector.broadcast %c2139095040_i32_33 : i32 to vector<16x1xi32>
    %93 = arith.cmpi slt, %89, %92 : vector<16x1xi32>
    %94 = arith.extui %93 : vector<16x1xi1> to vector<16x1xi32>
    %95 = arith.sitofp %94 : vector<16x1xi32> to vector<16x1xf32>
    %96 = vector.broadcast %89 : vector<16x1xi32> to vector<16x16xi32>
    %97 = arith.cmpi eq, %87, %96 : vector<16x16xi32>
    %c2139095040_i32_34 = arith.constant 2139095040 : i32
    %98 = vector.broadcast %c2139095040_i32_34 : i32 to vector<16x16xi32>
    %99 = arith.select %97, %98, %87 : vector<16x16xi1>, vector<16x16xi32>
    %cst_35 = arith.constant dense<2147483647> : vector<16xi32>
    %100 = vector.multi_reduction <minsi>, %99, %cst_35 [1] : vector<16x16xi32> to vector<16xi32>
    %101 = vector.shape_cast %100 : vector<16xi32> to vector<16x1xi32>
    %c15_i32_36 = arith.constant 15 : i32
    %102 = vector.broadcast %c15_i32_36 : i32 to vector<16x1xi32>
    %103 = arith.andi %101, %102 : vector<16x1xi32>
    %c2139095040_i32_37 = arith.constant 2139095040 : i32
    %104 = vector.broadcast %c2139095040_i32_37 : i32 to vector<16x1xi32>
    %105 = arith.cmpi slt, %101, %104 : vector<16x1xi32>
    %106 = arith.extui %105 : vector<16x1xi1> to vector<16x1xi32>
    %107 = arith.sitofp %106 : vector<16x1xi32> to vector<16x1xf32>
    %108 = vector.broadcast %101 : vector<16x1xi32> to vector<16x16xi32>
    %109 = arith.cmpi eq, %99, %108 : vector<16x16xi32>
    %c2139095040_i32_38 = arith.constant 2139095040 : i32
    %110 = vector.broadcast %c2139095040_i32_38 : i32 to vector<16x16xi32>
    %111 = arith.select %109, %110, %99 : vector<16x16xi1>, vector<16x16xi32>
    %cst_39 = arith.constant dense<2147483647> : vector<16xi32>
    %112 = vector.multi_reduction <minsi>, %111, %cst_39 [1] : vector<16x16xi32> to vector<16xi32>
    %113 = vector.shape_cast %112 : vector<16xi32> to vector<16x1xi32>
    %c15_i32_40 = arith.constant 15 : i32
    %114 = vector.broadcast %c15_i32_40 : i32 to vector<16x1xi32>
    %115 = arith.andi %113, %114 : vector<16x1xi32>
    %c2139095040_i32_41 = arith.constant 2139095040 : i32
    %116 = vector.broadcast %c2139095040_i32_41 : i32 to vector<16x1xi32>
    %117 = arith.cmpi slt, %113, %116 : vector<16x1xi32>
    %118 = arith.extui %117 : vector<16x1xi1> to vector<16x1xi32>
    %119 = arith.sitofp %118 : vector<16x1xi32> to vector<16x1xf32>
    %120 = tpu.concatenate %43, %55, %67, %79, %91, %103, %115 in 1 : vector<16x1xi32>, vector<16x1xi32>, vector<16x1xi32>, vector<16x1xi32>, vector<16x1xi32>, vector<16x1xi32>, vector<16x1xi32> -> vector<16x7xi32>
    %c0_42 = arith.constant 0 : index
    %c0_43 = arith.constant 0 : index
    %121 = vector.load %arg5[%c0_42, %c0_43] : memref<16x7xi32, #tpu.memory_space<vmem>>, vector<16x7xi32>
    tpu.vector_store %arg5[%c0_42, %c0_43], %120 {strides = array<i32>} : memref<16x7xi32, #tpu.memory_space<vmem>>, vector<16x7xi32>,
    %122 = tpu.concatenate %47, %59, %71, %83, %95, %107, %119 in 1 : vector<16x1xf32>, vector<16x1xf32>, vector<16x1xf32>, vector<16x1xf32>, vector<16x1xf32>, vector<16x1xf32>, vector<16x1xf32> -> vector<16x7xf32>
    %c0_44 = arith.constant 0 : index
    %c0_45 = arith.constant 0 : index
    %123 = vector.load %arg6[%c0_44, %c0_45] : memref<16x7xf32, #tpu.memory_space<vmem>>, vector<16x7xf32>
    tpu.vector_store %arg6[%c0_44, %c0_45], %122 {strides = array<i32>} : memref<16x7xf32, #tpu.memory_space<vmem>>, vector<16x7xf32>,
    return
  }
  func.func @transform_0(%arg0: i32) -> (i32, i32) {
    %c0_i32 = arith.constant 0 : i32
    %c0_i32_0 = arith.constant 0 : i32
    return %arg0, %c0_i32 : i32, i32
  }
  func.func @transform_1(%arg0: i32) -> (i32, i32) {
    %c0_i32 = arith.constant 0 : i32
    %c0_i32_0 = arith.constant 0 : i32
    %c0_i32_1 = arith.constant 0 : i32
    return %c0_i32, %c0_i32_0 : i32, i32
  }
  func.func @transform_2(%arg0: i32) -> (i32, i32) {
    %c0_i32 = arith.constant 0 : i32
    %c0_i32_0 = arith.constant 0 : i32
    return %arg0, %c0_i32 : i32, i32
  }
  func.func @transform_3(%arg0: i32) -> (i32, i32) {
    %c0_i32 = arith.constant 0 : i32
    %c0_i32_0 = arith.constant 0 : i32
    %c0_i32_1 = arith.constant 0 : i32
    return %c0_i32, %c0_i32_0 : i32, i32
  }
  func.func @transform_4(%arg0: i32) -> (i32, i32) {
    %c0_i32 = arith.constant 0 : i32
    %c0_i32_0 = arith.constant 0 : i32
    return %arg0, %c0_i32 : i32, i32
  }
  func.func @transform_5(%arg0: i32) -> (i32, i32) {
    %c0_i32 = arith.constant 0 : i32
    %c0_i32_0 = arith.constant 0 : i32
    return %arg0, %c0_i32 : i32, i32
  }
}

module attributes {stable_mosaic.version = 11 : i64} {
  func.func @_edge_conv_kernel(%arg0: i32, %arg1: memref<16x4xbf16, #tpu.memory_space<vmem>>, %arg2: memref<7x16x4xbf16, #tpu.memory_space<vmem>>, %arg3: memref<7x16x1xf32, #tpu.memory_space<vmem>>, %arg4: memref<4x32xbf16, #tpu.memory_space<vmem>>, %arg5: memref<4x32xbf16, #tpu.memory_space<vmem>>, %arg6: memref<1x32xf32, #tpu.memory_space<vmem>>, %arg7: memref<32x32xbf16, #tpu.memory_space<vmem>>, %arg8: memref<1x32xf32, #tpu.memory_space<vmem>>, %arg9: memref<32x32xbf16, #tpu.memory_space<vmem>>, %arg10: memref<1x32xf32, #tpu.memory_space<vmem>>, %arg11: memref<4x32xbf16, #tpu.memory_space<vmem>>, %arg12: memref<1x32xf32, #tpu.memory_space<vmem>>, %arg13: memref<32x32xbf16, #tpu.memory_space<vmem>>, %arg14: memref<1x32xf32, #tpu.memory_space<vmem>>, %arg15: memref<32x32xbf16, #tpu.memory_space<vmem>>, %arg16: memref<1x32xf32, #tpu.memory_space<vmem>>, %arg17: memref<16x32xbf16, #tpu.memory_space<vmem>>) attributes {dimension_semantics = [#tpu.dimension_semantics<parallel>], iteration_bounds = array<i64: 1>, scalar_prefetch = 0 : i64, scratch_operands = 0 : i64, tpu.core_type = #tpu.core_type<tc>, window_params = [{transform_indices = @transform_0, window_bounds = array<i64: 16, 4>}, {transform_indices = @transform_1, window_bounds = array<i64: 7, 16, 4>}, {transform_indices = @transform_2, window_bounds = array<i64: 7, 16, 1>}, {pipeline_mode = #tpu.pipeline_mode<synchronous>, transform_indices = @transform_3, window_bounds = array<i64: 4, 32>}, {pipeline_mode = #tpu.pipeline_mode<synchronous>, transform_indices = @transform_4, window_bounds = array<i64: 4, 32>}, {pipeline_mode = #tpu.pipeline_mode<synchronous>, transform_indices = @transform_5, window_bounds = array<i64: 1, 32>}, {pipeline_mode = #tpu.pipeline_mode<synchronous>, transform_indices = @transform_6, window_bounds = array<i64: 32, 32>}, {pipeline_mode = #tpu.pipeline_mode<synchronous>, transform_indices = @transform_7, window_bounds = array<i64: 1, 32>}, {pipeline_mode = #tpu.pipeline_mode<synchronous>, transform_indices = @transform_8, window_bounds = array<i64: 32, 32>}, {pipeline_mode = #tpu.pipeline_mode<synchronous>, transform_indices = @transform_9, window_bounds = array<i64: 1, 32>}, {pipeline_mode = #tpu.pipeline_mode<synchronous>, transform_indices = @transform_10, window_bounds = array<i64: 4, 32>}, {pipeline_mode = #tpu.pipeline_mode<synchronous>, transform_indices = @transform_11, window_bounds = array<i64: 1, 32>}, {pipeline_mode = #tpu.pipeline_mode<synchronous>, transform_indices = @transform_12, window_bounds = array<i64: 32, 32>}, {pipeline_mode = #tpu.pipeline_mode<synchronous>, transform_indices = @transform_13, window_bounds = array<i64: 1, 32>}, {pipeline_mode = #tpu.pipeline_mode<synchronous>, transform_indices = @transform_14, window_bounds = array<i64: 32, 32>}, {pipeline_mode = #tpu.pipeline_mode<synchronous>, transform_indices = @transform_15, window_bounds = array<i64: 1, 32>}, {transform_indices = @transform_16, window_bounds = array<i64: 16, 32>}]} {
    %c0 = arith.constant 0 : index
    %c0_0 = arith.constant 0 : index
    %0 = vector.load %arg1[%c0, %c0_0] : memref<16x4xbf16, #tpu.memory_space<vmem>>, vector<16x4xbf16>
    %c0_1 = arith.constant 0 : index
    %c0_2 = arith.constant 0 : index
    %1 = vector.load %arg4[%c0_1, %c0_2] : memref<4x32xbf16, #tpu.memory_space<vmem>>, vector<4x32xbf16>
    %cst = arith.constant dense<0.000000e+00> : vector<16x32xf32>
    %2 = tpu.matmul %0, %1, %cst {dimension_numbers = #tpu.dot_dimension_numbers<[1], [0], [0], [1], [0, 0, 1, 1], [], []>} : vector<16x4xbf16>, vector<4x32xbf16>, vector<16x32xf32> -> vector<16x32xf32>
    %c0_3 = arith.constant 0 : index
    %c0_4 = arith.constant 0 : index
    %c0_5 = arith.constant 0 : index
    %3 = vector.load %arg2[%c0_3, %c0_4, %c0_5] : memref<7x16x4xbf16, #tpu.memory_space<vmem>>, vector<1x16x4xbf16>
    %4 = vector.shape_cast %3 : vector<1x16x4xbf16> to vector<16x4xbf16>
    %c1 = arith.constant 1 : index
    %c0_6 = arith.constant 0 : index
    %c0_7 = arith.constant 0 : index
    %5 = vector.load %arg2[%c1, %c0_6, %c0_7] : memref<7x16x4xbf16, #tpu.memory_space<vmem>>, vector<1x16x4xbf16>
    %6 = vector.shape_cast %5 : vector<1x16x4xbf16> to vector<16x4xbf16>
    %c2 = arith.constant 2 : index
    %c0_8 = arith.constant 0 : index
    %c0_9 = arith.constant 0 : index
    %7 = vector.load %arg2[%c2, %c0_8, %c0_9] : memref<7x16x4xbf16, #tpu.memory_space<vmem>>, vector<1x16x4xbf16>
    %8 = vector.shape_cast %7 : vector<1x16x4xbf16> to vector<16x4xbf16>
    %c3 = arith.constant 3 : index
    %c0_10 = arith.constant 0 : index
    %c0_11 = arith.constant 0 : index
    %9 = vector.load %arg2[%c3, %c0_10, %c0_11] : memref<7x16x4xbf16, #tpu.memory_space<vmem>>, vector<1x16x4xbf16>
    %10 = vector.shape_cast %9 : vector<1x16x4xbf16> to vector<16x4xbf16>
    %c4 = arith.constant 4 : index
    %c0_12 = arith.constant 0 : index
    %c0_13 = arith.constant 0 : index
    %11 = vector.load %arg2[%c4, %c0_12, %c0_13] : memref<7x16x4xbf16, #tpu.memory_space<vmem>>, vector<1x16x4xbf16>
    %12 = vector.shape_cast %11 : vector<1x16x4xbf16> to vector<16x4xbf16>
    %c5 = arith.constant 5 : index
    %c0_14 = arith.constant 0 : index
    %c0_15 = arith.constant 0 : index
    %13 = vector.load %arg2[%c5, %c0_14, %c0_15] : memref<7x16x4xbf16, #tpu.memory_space<vmem>>, vector<1x16x4xbf16>
    %14 = vector.shape_cast %13 : vector<1x16x4xbf16> to vector<16x4xbf16>
    %c6 = arith.constant 6 : index
    %c0_16 = arith.constant 0 : index
    %c0_17 = arith.constant 0 : index
    %15 = vector.load %arg2[%c6, %c0_16, %c0_17] : memref<7x16x4xbf16, #tpu.memory_space<vmem>>, vector<1x16x4xbf16>
    %16 = vector.shape_cast %15 : vector<1x16x4xbf16> to vector<16x4xbf16>
    %17 = tpu.concatenate %4, %6, %8, %10, %12, %14, %16 in 0 : vector<16x4xbf16>, vector<16x4xbf16>, vector<16x4xbf16>, vector<16x4xbf16>, vector<16x4xbf16>, vector<16x4xbf16>, vector<16x4xbf16> -> vector<112x4xbf16>
    %c0_18 = arith.constant 0 : index
    %c0_19 = arith.constant 0 : index
    %18 = vector.load %arg5[%c0_18, %c0_19] : memref<4x32xbf16, #tpu.memory_space<vmem>>, vector<4x32xbf16>
    %cst_20 = arith.constant dense<0.000000e+00> : vector<112x32xf32>
    %19 = tpu.matmul %17, %18, %cst_20 {dimension_numbers = #tpu.dot_dimension_numbers<[1], [0], [0], [1], [0, 0, 1, 1], [], []>} : vector<112x4xbf16>, vector<4x32xbf16>, vector<112x32xf32> -> vector<112x32xf32>
    %20 = tpu.concatenate %2, %2, %2, %2, %2, %2, %2 in 0 : vector<16x32xf32>, vector<16x32xf32>, vector<16x32xf32>, vector<16x32xf32>, vector<16x32xf32>, vector<16x32xf32>, vector<16x32xf32> -> vector<112x32xf32>
    %21 = arith.addf %19, %20 : vector<112x32xf32>
    %c0_21 = arith.constant 0 : index
    %c0_22 = arith.constant 0 : index
    %22 = vector.load %arg6[%c0_21, %c0_22] : memref<1x32xf32, #tpu.memory_space<vmem>>, vector<1x32xf32>
    %23 = vector.broadcast %22 : vector<1x32xf32> to vector<112x32xf32>
    %24 = arith.addf %21, %23 : vector<112x32xf32>
    %cst_23 = arith.constant 0.000000e+00 : f32
    %25 = vector.broadcast %cst_23 : f32 to vector<112x32xf32>
    %26 = arith.maximumf %24, %25 : vector<112x32xf32>
    %27 = arith.truncf %26 : vector<112x32xf32> to vector<112x32xbf16>
    %c0_24 = arith.constant 0 : index
    %c0_25 = arith.constant 0 : index
    %28 = vector.load %arg7[%c0_24, %c0_25] : memref<32x32xbf16, #tpu.memory_space<vmem>>, vector<32x32xbf16>
    %cst_26 = arith.constant dense<0.000000e+00> : vector<112x32xf32>
    %29 = tpu.matmul %27, %28, %cst_26 {dimension_numbers = #tpu.dot_dimension_numbers<[1], [0], [0], [1], [0, 0, 1, 1], [], []>} : vector<112x32xbf16>, vector<32x32xbf16>, vector<112x32xf32> -> vector<112x32xf32>
    %c0_27 = arith.constant 0 : index
    %c0_28 = arith.constant 0 : index
    %30 = vector.load %arg8[%c0_27, %c0_28] : memref<1x32xf32, #tpu.memory_space<vmem>>, vector<1x32xf32>
    %31 = vector.broadcast %30 : vector<1x32xf32> to vector<112x32xf32>
    %32 = arith.addf %29, %31 : vector<112x32xf32>
    %cst_29 = arith.constant 0.000000e+00 : f32
    %33 = vector.broadcast %cst_29 : f32 to vector<112x32xf32>
    %34 = arith.maximumf %32, %33 : vector<112x32xf32>
    %35 = arith.truncf %34 : vector<112x32xf32> to vector<112x32xbf16>
    %c0_30 = arith.constant 0 : index
    %c0_31 = arith.constant 0 : index
    %36 = vector.load %arg9[%c0_30, %c0_31] : memref<32x32xbf16, #tpu.memory_space<vmem>>, vector<32x32xbf16>
    %cst_32 = arith.constant dense<0.000000e+00> : vector<112x32xf32>
    %37 = tpu.matmul %35, %36, %cst_32 {dimension_numbers = #tpu.dot_dimension_numbers<[1], [0], [0], [1], [0, 0, 1, 1], [], []>} : vector<112x32xbf16>, vector<32x32xbf16>, vector<112x32xf32> -> vector<112x32xf32>
    %c0_33 = arith.constant 0 : index
    %c0_34 = arith.constant 0 : index
    %38 = vector.load %arg10[%c0_33, %c0_34] : memref<1x32xf32, #tpu.memory_space<vmem>>, vector<1x32xf32>
    %39 = vector.broadcast %38 : vector<1x32xf32> to vector<112x32xf32>
    %40 = arith.addf %37, %39 : vector<112x32xf32>
    %cst_35 = arith.constant 0.000000e+00 : f32
    %41 = vector.broadcast %cst_35 : f32 to vector<112x32xf32>
    %42 = arith.maximumf %40, %41 : vector<112x32xf32>
    %c0_36 = arith.constant 0 : index
    %c0_37 = arith.constant 0 : index
    %c0_38 = arith.constant 0 : index
    %43 = vector.load %arg3[%c0_36, %c0_37, %c0_38] : memref<7x16x1xf32, #tpu.memory_space<vmem>>, vector<1x16x1xf32>
    %44 = vector.shape_cast %43 : vector<1x16x1xf32> to vector<16x1xf32>
    %c1_39 = arith.constant 1 : index
    %c0_40 = arith.constant 0 : index
    %c0_41 = arith.constant 0 : index
    %45 = vector.load %arg3[%c1_39, %c0_40, %c0_41] : memref<7x16x1xf32, #tpu.memory_space<vmem>>, vector<1x16x1xf32>
    %46 = vector.shape_cast %45 : vector<1x16x1xf32> to vector<16x1xf32>
    %c2_42 = arith.constant 2 : index
    %c0_43 = arith.constant 0 : index
    %c0_44 = arith.constant 0 : index
    %47 = vector.load %arg3[%c2_42, %c0_43, %c0_44] : memref<7x16x1xf32, #tpu.memory_space<vmem>>, vector<1x16x1xf32>
    %48 = vector.shape_cast %47 : vector<1x16x1xf32> to vector<16x1xf32>
    %c3_45 = arith.constant 3 : index
    %c0_46 = arith.constant 0 : index
    %c0_47 = arith.constant 0 : index
    %49 = vector.load %arg3[%c3_45, %c0_46, %c0_47] : memref<7x16x1xf32, #tpu.memory_space<vmem>>, vector<1x16x1xf32>
    %50 = vector.shape_cast %49 : vector<1x16x1xf32> to vector<16x1xf32>
    %c4_48 = arith.constant 4 : index
    %c0_49 = arith.constant 0 : index
    %c0_50 = arith.constant 0 : index
    %51 = vector.load %arg3[%c4_48, %c0_49, %c0_50] : memref<7x16x1xf32, #tpu.memory_space<vmem>>, vector<1x16x1xf32>
    %52 = vector.shape_cast %51 : vector<1x16x1xf32> to vector<16x1xf32>
    %c5_51 = arith.constant 5 : index
    %c0_52 = arith.constant 0 : index
    %c0_53 = arith.constant 0 : index
    %53 = vector.load %arg3[%c5_51, %c0_52, %c0_53] : memref<7x16x1xf32, #tpu.memory_space<vmem>>, vector<1x16x1xf32>
    %54 = vector.shape_cast %53 : vector<1x16x1xf32> to vector<16x1xf32>
    %c6_54 = arith.constant 6 : index
    %c0_55 = arith.constant 0 : index
    %c0_56 = arith.constant 0 : index
    %55 = vector.load %arg3[%c6_54, %c0_55, %c0_56] : memref<7x16x1xf32, #tpu.memory_space<vmem>>, vector<1x16x1xf32>
    %56 = vector.shape_cast %55 : vector<1x16x1xf32> to vector<16x1xf32>
    %57 = tpu.concatenate %44, %46, %48, %50, %52, %54, %56 in 0 : vector<16x1xf32>, vector<16x1xf32>, vector<16x1xf32>, vector<16x1xf32>, vector<16x1xf32>, vector<16x1xf32>, vector<16x1xf32> -> vector<112x1xf32>
    %cst_57 = arith.constant 5.000000e-01 : f32
    %58 = vector.broadcast %cst_57 : f32 to vector<112x1xf32>
    %59 = arith.cmpf ogt, %57, %58 : vector<112x1xf32>
    %cst_58 = arith.constant -1.000000e+09 : f32
    %60 = vector.shape_cast %59 : vector<112x1xi1> to vector<112x1xi1>
    %61 = vector.broadcast %60 : vector<112x1xi1> to vector<112x32xi1>
    %62 = vector.broadcast %cst_58 : f32 to vector<112x32xf32>
    %63 = arith.select %61, %42, %62 : vector<112x32xi1>, vector<112x32xf32>
    %64 = vector.extract_strided_slice %63 {offsets = [0, 0], sizes = [16, 32], strides = [1, 1]} : vector<112x32xf32> to vector<16x32xf32>
    %65 = vector.extract_strided_slice %63 {offsets = [16, 0], sizes = [16, 32], strides = [1, 1]} : vector<112x32xf32> to vector<16x32xf32>
    %66 = arith.maximumf %64, %65 : vector<16x32xf32>
    %67 = vector.extract_strided_slice %63 {offsets = [32, 0], sizes = [16, 32], strides = [1, 1]} : vector<112x32xf32> to vector<16x32xf32>
    %68 = arith.maximumf %66, %67 : vector<16x32xf32>
    %69 = vector.extract_strided_slice %63 {offsets = [48, 0], sizes = [16, 32], strides = [1, 1]} : vector<112x32xf32> to vector<16x32xf32>
    %70 = arith.maximumf %68, %69 : vector<16x32xf32>
    %71 = vector.extract_strided_slice %63 {offsets = [64, 0], sizes = [16, 32], strides = [1, 1]} : vector<112x32xf32> to vector<16x32xf32>
    %72 = arith.maximumf %70, %71 : vector<16x32xf32>
    %73 = vector.extract_strided_slice %63 {offsets = [80, 0], sizes = [16, 32], strides = [1, 1]} : vector<112x32xf32> to vector<16x32xf32>
    %74 = arith.maximumf %72, %73 : vector<16x32xf32>
    %75 = vector.extract_strided_slice %63 {offsets = [96, 0], sizes = [16, 32], strides = [1, 1]} : vector<112x32xf32> to vector<16x32xf32>
    %76 = arith.maximumf %74, %75 : vector<16x32xf32>
    %cst_59 = arith.constant -5.000000e+08 : f32
    %77 = vector.broadcast %cst_59 : f32 to vector<16x32xf32>
    %78 = arith.cmpf ole, %76, %77 : vector<16x32xf32>
    %cst_60 = arith.constant 0.000000e+00 : f32
    %79 = vector.broadcast %cst_60 : f32 to vector<16x32xf32>
    %80 = arith.select %78, %79, %76 : vector<16x32xi1>, vector<16x32xf32>
    %c0_61 = arith.constant 0 : index
    %c0_62 = arith.constant 0 : index
    %81 = vector.load %arg11[%c0_61, %c0_62] : memref<4x32xbf16, #tpu.memory_space<vmem>>, vector<4x32xbf16>
    %cst_63 = arith.constant dense<0.000000e+00> : vector<16x32xf32>
    %82 = tpu.matmul %0, %81, %cst_63 {dimension_numbers = #tpu.dot_dimension_numbers<[1], [0], [0], [1], [0, 0, 1, 1], [], []>} : vector<16x4xbf16>, vector<4x32xbf16>, vector<16x32xf32> -> vector<16x32xf32>
    %c0_64 = arith.constant 0 : index
    %c0_65 = arith.constant 0 : index
    %83 = vector.load %arg12[%c0_64, %c0_65] : memref<1x32xf32, #tpu.memory_space<vmem>>, vector<1x32xf32>
    %84 = vector.broadcast %83 : vector<1x32xf32> to vector<16x32xf32>
    %85 = arith.addf %82, %84 : vector<16x32xf32>
    %cst_66 = arith.constant 0.000000e+00 : f32
    %86 = vector.broadcast %cst_66 : f32 to vector<16x32xf32>
    %87 = arith.maximumf %85, %86 : vector<16x32xf32>
    %88 = arith.truncf %87 : vector<16x32xf32> to vector<16x32xbf16>
    %c0_67 = arith.constant 0 : index
    %c0_68 = arith.constant 0 : index
    %89 = vector.load %arg13[%c0_67, %c0_68] : memref<32x32xbf16, #tpu.memory_space<vmem>>, vector<32x32xbf16>
    %cst_69 = arith.constant dense<0.000000e+00> : vector<16x32xf32>
    %90 = tpu.matmul %88, %89, %cst_69 {dimension_numbers = #tpu.dot_dimension_numbers<[1], [0], [0], [1], [0, 0, 1, 1], [], []>} : vector<16x32xbf16>, vector<32x32xbf16>, vector<16x32xf32> -> vector<16x32xf32>
    %c0_70 = arith.constant 0 : index
    %c0_71 = arith.constant 0 : index
    %91 = vector.load %arg14[%c0_70, %c0_71] : memref<1x32xf32, #tpu.memory_space<vmem>>, vector<1x32xf32>
    %92 = vector.broadcast %91 : vector<1x32xf32> to vector<16x32xf32>
    %93 = arith.addf %90, %92 : vector<16x32xf32>
    %cst_72 = arith.constant 0.000000e+00 : f32
    %94 = vector.broadcast %cst_72 : f32 to vector<16x32xf32>
    %95 = arith.maximumf %93, %94 : vector<16x32xf32>
    %96 = arith.truncf %95 : vector<16x32xf32> to vector<16x32xbf16>
    %c0_73 = arith.constant 0 : index
    %c0_74 = arith.constant 0 : index
    %97 = vector.load %arg15[%c0_73, %c0_74] : memref<32x32xbf16, #tpu.memory_space<vmem>>, vector<32x32xbf16>
    %cst_75 = arith.constant dense<0.000000e+00> : vector<16x32xf32>
    %98 = tpu.matmul %96, %97, %cst_75 {dimension_numbers = #tpu.dot_dimension_numbers<[1], [0], [0], [1], [0, 0, 1, 1], [], []>} : vector<16x32xbf16>, vector<32x32xbf16>, vector<16x32xf32> -> vector<16x32xf32>
    %c0_76 = arith.constant 0 : index
    %c0_77 = arith.constant 0 : index
    %99 = vector.load %arg16[%c0_76, %c0_77] : memref<1x32xf32, #tpu.memory_space<vmem>>, vector<1x32xf32>
    %100 = vector.broadcast %99 : vector<1x32xf32> to vector<16x32xf32>
    %101 = arith.addf %98, %100 : vector<16x32xf32>
    %cst_78 = arith.constant 0.000000e+00 : f32
    %102 = vector.broadcast %cst_78 : f32 to vector<16x32xf32>
    %103 = arith.maximumf %101, %102 : vector<16x32xf32>
    %104 = arith.addf %80, %103 : vector<16x32xf32>
    %105 = arith.truncf %104 : vector<16x32xf32> to vector<16x32xbf16>
    %c0_79 = arith.constant 0 : index
    %c0_80 = arith.constant 0 : index
    %106 = vector.load %arg17[%c0_79, %c0_80] : memref<16x32xbf16, #tpu.memory_space<vmem>>, vector<16x32xbf16>
    tpu.vector_store %arg17[%c0_79, %c0_80], %105 {strides = array<i32>} : memref<16x32xbf16, #tpu.memory_space<vmem>>, vector<16x32xbf16>,
    return
  }
  func.func @transform_0(%arg0: i32) -> (i32, i32) {
    %c0_i32 = arith.constant 0 : i32
    %c0_i32_0 = arith.constant 0 : i32
    return %arg0, %c0_i32 : i32, i32
  }
  func.func @transform_1(%arg0: i32) -> (i32, i32, i32) {
    %c0_i32 = arith.constant 0 : i32
    %c0_i32_0 = arith.constant 0 : i32
    %c0_i32_1 = arith.constant 0 : i32
    return %c0_i32, %arg0, %c0_i32_0 : i32, i32, i32
  }
  func.func @transform_2(%arg0: i32) -> (i32, i32, i32) {
    %c0_i32 = arith.constant 0 : i32
    %c0_i32_0 = arith.constant 0 : i32
    %c0_i32_1 = arith.constant 0 : i32
    return %c0_i32, %arg0, %c0_i32_0 : i32, i32, i32
  }
  func.func @transform_3(%arg0: i32) -> (i32, i32) {
    %c0_i32 = arith.constant 0 : i32
    %c0_i32_0 = arith.constant 0 : i32
    %c0_i32_1 = arith.constant 0 : i32
    return %c0_i32, %c0_i32_0 : i32, i32
  }
  func.func @transform_4(%arg0: i32) -> (i32, i32) {
    %c0_i32 = arith.constant 0 : i32
    %c0_i32_0 = arith.constant 0 : i32
    %c0_i32_1 = arith.constant 0 : i32
    return %c0_i32, %c0_i32_0 : i32, i32
  }
  func.func @transform_5(%arg0: i32) -> (i32, i32) {
    %c0_i32 = arith.constant 0 : i32
    %c0_i32_0 = arith.constant 0 : i32
    %c0_i32_1 = arith.constant 0 : i32
    return %c0_i32, %c0_i32_0 : i32, i32
  }
  func.func @transform_6(%arg0: i32) -> (i32, i32) {
    %c0_i32 = arith.constant 0 : i32
    %c0_i32_0 = arith.constant 0 : i32
    %c0_i32_1 = arith.constant 0 : i32
    return %c0_i32, %c0_i32_0 : i32, i32
  }
  func.func @transform_7(%arg0: i32) -> (i32, i32) {
    %c0_i32 = arith.constant 0 : i32
    %c0_i32_0 = arith.constant 0 : i32
    %c0_i32_1 = arith.constant 0 : i32
    return %c0_i32, %c0_i32_0 : i32, i32
  }
  func.func @transform_8(%arg0: i32) -> (i32, i32) {
    %c0_i32 = arith.constant 0 : i32
    %c0_i32_0 = arith.constant 0 : i32
    %c0_i32_1 = arith.constant 0 : i32
    return %c0_i32, %c0_i32_0 : i32, i32
  }
  func.func @transform_9(%arg0: i32) -> (i32, i32) {
    %c0_i32 = arith.constant 0 : i32
    %c0_i32_0 = arith.constant 0 : i32
    %c0_i32_1 = arith.constant 0 : i32
    return %c0_i32, %c0_i32_0 : i32, i32
  }
  func.func @transform_10(%arg0: i32) -> (i32, i32) {
    %c0_i32 = arith.constant 0 : i32
    %c0_i32_0 = arith.constant 0 : i32
    %c0_i32_1 = arith.constant 0 : i32
    return %c0_i32, %c0_i32_0 : i32, i32
  }
  func.func @transform_11(%arg0: i32) -> (i32, i32) {
    %c0_i32 = arith.constant 0 : i32
    %c0_i32_0 = arith.constant 0 : i32
    %c0_i32_1 = arith.constant 0 : i32
    return %c0_i32, %c0_i32_0 : i32, i32
  }
  func.func @transform_12(%arg0: i32) -> (i32, i32) {
    %c0_i32 = arith.constant 0 : i32
    %c0_i32_0 = arith.constant 0 : i32
    %c0_i32_1 = arith.constant 0 : i32
    return %c0_i32, %c0_i32_0 : i32, i32
  }
  func.func @transform_13(%arg0: i32) -> (i32, i32) {
    %c0_i32 = arith.constant 0 : i32
    %c0_i32_0 = arith.constant 0 : i32
    %c0_i32_1 = arith.constant 0 : i32
    return %c0_i32, %c0_i32_0 : i32, i32
  }
  func.func @transform_14(%arg0: i32) -> (i32, i32) {
    %c0_i32 = arith.constant 0 : i32
    %c0_i32_0 = arith.constant 0 : i32
    %c0_i32_1 = arith.constant 0 : i32
    return %c0_i32, %c0_i32_0 : i32, i32
  }
  func.func @transform_15(%arg0: i32) -> (i32, i32) {
    %c0_i32 = arith.constant 0 : i32
    %c0_i32_0 = arith.constant 0 : i32
    %c0_i32_1 = arith.constant 0 : i32
    return %c0_i32, %c0_i32_0 : i32, i32
  }
  func.func @transform_16(%arg0: i32) -> (i32, i32) {
    %c0_i32 = arith.constant 0 : i32
    %c0_i32_0 = arith.constant 0 : i32
    return %arg0, %c0_i32 : i32, i32
  }
}

module attributes {stable_mosaic.version = 11 : i64} {
  func.func @_pool_kernel(%arg0: i32, %arg1: memref<2x16xf32, #tpu.memory_space<vmem>>, %arg2: memref<16x128xf32, #tpu.memory_space<vmem>>, %arg3: memref<2x128xf32, #tpu.memory_space<vmem>>) attributes {dimension_semantics = [#tpu.dimension_semantics<arbitrary>], iteration_bounds = array<i64: 1>, scalar_prefetch = 0 : i64, scratch_operands = 0 : i64, tpu.core_type = #tpu.core_type<tc>, window_params = [{transform_indices = @transform_0, window_bounds = array<i64: 2, 16>}, {transform_indices = @transform_1, window_bounds = array<i64: 16, 128>}, {pipeline_mode = #tpu.pipeline_mode<synchronous>, transform_indices = @transform_2, window_bounds = array<i64: 2, 128>}]} {
    %c0_i32 = arith.constant 0 : i32
    %0 = arith.cmpi eq, %arg0, %c0_i32 : i32
    %1 = arith.extui %0 : i1 to i32
    %c0_i32_0 = arith.constant 0 : i32
    %2 = arith.cmpi ne, %1, %c0_i32_0 : i32
    scf.if %2 {
      %cst_8 = arith.constant 0.000000e+00 : f32
      %9 = vector.broadcast %cst_8 : f32 to vector<2x128xf32>
      %c0_9 = arith.constant 0 : index
      %c0_10 = arith.constant 0 : index
      %10 = vector.load %arg3[%c0_9, %c0_10] : memref<2x128xf32, #tpu.memory_space<vmem>>, vector<2x128xf32>
      tpu.vector_store %arg3[%c0_9, %c0_10], %9 {strides = array<i32>} : memref<2x128xf32, #tpu.memory_space<vmem>>, vector<2x128xf32>,
    } else {
    }
    %c0 = arith.constant 0 : index
    %c0_1 = arith.constant 0 : index
    %3 = vector.load %arg3[%c0, %c0_1] : memref<2x128xf32, #tpu.memory_space<vmem>>, vector<2x128xf32>
    %c0_2 = arith.constant 0 : index
    %c0_3 = arith.constant 0 : index
    %4 = vector.load %arg1[%c0_2, %c0_3] : memref<2x16xf32, #tpu.memory_space<vmem>>, vector<2x16xf32>
    %c0_4 = arith.constant 0 : index
    %c0_5 = arith.constant 0 : index
    %5 = vector.load %arg2[%c0_4, %c0_5] : memref<16x128xf32, #tpu.memory_space<vmem>>, vector<16x128xf32>
    %cst = arith.constant dense<0.000000e+00> : vector<2x128xf32>
    %6 = tpu.matmul %4, %5, %cst {dimension_numbers = #tpu.dot_dimension_numbers<[1], [0], [0], [1], [0, 0, 1, 1], [], []>} : vector<2x16xf32>, vector<16x128xf32>, vector<2x128xf32> -> vector<2x128xf32>
    %7 = arith.addf %3, %6 : vector<2x128xf32>
    %c0_6 = arith.constant 0 : index
    %c0_7 = arith.constant 0 : index
    %8 = vector.load %arg3[%c0_6, %c0_7] : memref<2x128xf32, #tpu.memory_space<vmem>>, vector<2x128xf32>
    tpu.vector_store %arg3[%c0_6, %c0_7], %7 {strides = array<i32>} : memref<2x128xf32, #tpu.memory_space<vmem>>, vector<2x128xf32>,
    return
  }
  func.func @transform_0(%arg0: i32) -> (i32, i32) {
    %c0_i32 = arith.constant 0 : i32
    %c0_i32_0 = arith.constant 0 : i32
    return %c0_i32, %arg0 : i32, i32
  }
  func.func @transform_1(%arg0: i32) -> (i32, i32) {
    %c0_i32 = arith.constant 0 : i32
    %c0_i32_0 = arith.constant 0 : i32
    return %arg0, %c0_i32 : i32, i32
  }
  func.func @transform_2(%arg0: i32) -> (i32, i32) {
    %c0_i32 = arith.constant 0 : i32
    %c0_i32_0 = arith.constant 0 : i32
    %c0_i32_1 = arith.constant 0 : i32
    return %c0_i32, %c0_i32_0 : i32, i32
  }
}

module attributes {stable_mosaic.version = 11 : i64} {
  func.func @_edge_conv_kernel(%arg0: i32, %arg1: memref<16x32xbf16, #tpu.memory_space<vmem>>, %arg2: memref<7x16x32xbf16, #tpu.memory_space<vmem>>, %arg3: memref<7x16x1xf32, #tpu.memory_space<vmem>>, %arg4: memref<32x64xbf16, #tpu.memory_space<vmem>>, %arg5: memref<32x64xbf16, #tpu.memory_space<vmem>>, %arg6: memref<1x64xf32, #tpu.memory_space<vmem>>, %arg7: memref<64x64xbf16, #tpu.memory_space<vmem>>, %arg8: memref<1x64xf32, #tpu.memory_space<vmem>>, %arg9: memref<64x128xbf16, #tpu.memory_space<vmem>>, %arg10: memref<1x128xf32, #tpu.memory_space<vmem>>, %arg11: memref<32x64xbf16, #tpu.memory_space<vmem>>, %arg12: memref<1x64xf32, #tpu.memory_space<vmem>>, %arg13: memref<64x64xbf16, #tpu.memory_space<vmem>>, %arg14: memref<1x64xf32, #tpu.memory_space<vmem>>, %arg15: memref<64x128xbf16, #tpu.memory_space<vmem>>, %arg16: memref<1x128xf32, #tpu.memory_space<vmem>>, %arg17: memref<16x128xf32, #tpu.memory_space<vmem>>) attributes {dimension_semantics = [#tpu.dimension_semantics<parallel>], iteration_bounds = array<i64: 1>, scalar_prefetch = 0 : i64, scratch_operands = 0 : i64, tpu.core_type = #tpu.core_type<tc>, window_params = [{transform_indices = @transform_0, window_bounds = array<i64: 16, 32>}, {transform_indices = @transform_1, window_bounds = array<i64: 7, 16, 32>}, {transform_indices = @transform_2, window_bounds = array<i64: 7, 16, 1>}, {pipeline_mode = #tpu.pipeline_mode<synchronous>, transform_indices = @transform_3, window_bounds = array<i64: 32, 64>}, {pipeline_mode = #tpu.pipeline_mode<synchronous>, transform_indices = @transform_4, window_bounds = array<i64: 32, 64>}, {pipeline_mode = #tpu.pipeline_mode<synchronous>, transform_indices = @transform_5, window_bounds = array<i64: 1, 64>}, {pipeline_mode = #tpu.pipeline_mode<synchronous>, transform_indices = @transform_6, window_bounds = array<i64: 64, 64>}, {pipeline_mode = #tpu.pipeline_mode<synchronous>, transform_indices = @transform_7, window_bounds = array<i64: 1, 64>}, {pipeline_mode = #tpu.pipeline_mode<synchronous>, transform_indices = @transform_8, window_bounds = array<i64: 64, 128>}, {pipeline_mode = #tpu.pipeline_mode<synchronous>, transform_indices = @transform_9, window_bounds = array<i64: 1, 128>}, {pipeline_mode = #tpu.pipeline_mode<synchronous>, transform_indices = @transform_10, window_bounds = array<i64: 32, 64>}, {pipeline_mode = #tpu.pipeline_mode<synchronous>, transform_indices = @transform_11, window_bounds = array<i64: 1, 64>}, {pipeline_mode = #tpu.pipeline_mode<synchronous>, transform_indices = @transform_12, window_bounds = array<i64: 64, 64>}, {pipeline_mode = #tpu.pipeline_mode<synchronous>, transform_indices = @transform_13, window_bounds = array<i64: 1, 64>}, {pipeline_mode = #tpu.pipeline_mode<synchronous>, transform_indices = @transform_14, window_bounds = array<i64: 64, 128>}, {pipeline_mode = #tpu.pipeline_mode<synchronous>, transform_indices = @transform_15, window_bounds = array<i64: 1, 128>}, {transform_indices = @transform_16, window_bounds = array<i64: 16, 128>}]} {
    %c0 = arith.constant 0 : index
    %c0_0 = arith.constant 0 : index
    %0 = vector.load %arg1[%c0, %c0_0] : memref<16x32xbf16, #tpu.memory_space<vmem>>, vector<16x32xbf16>
    %c0_1 = arith.constant 0 : index
    %c0_2 = arith.constant 0 : index
    %1 = vector.load %arg4[%c0_1, %c0_2] : memref<32x64xbf16, #tpu.memory_space<vmem>>, vector<32x64xbf16>
    %cst = arith.constant dense<0.000000e+00> : vector<16x64xf32>
    %2 = tpu.matmul %0, %1, %cst {dimension_numbers = #tpu.dot_dimension_numbers<[1], [0], [0], [1], [0, 0, 1, 1], [], []>} : vector<16x32xbf16>, vector<32x64xbf16>, vector<16x64xf32> -> vector<16x64xf32>
    %c0_3 = arith.constant 0 : index
    %c0_4 = arith.constant 0 : index
    %c0_5 = arith.constant 0 : index
    %3 = vector.load %arg2[%c0_3, %c0_4, %c0_5] : memref<7x16x32xbf16, #tpu.memory_space<vmem>>, vector<1x16x32xbf16>
    %4 = vector.shape_cast %3 : vector<1x16x32xbf16> to vector<16x32xbf16>
    %c1 = arith.constant 1 : index
    %c0_6 = arith.constant 0 : index
    %c0_7 = arith.constant 0 : index
    %5 = vector.load %arg2[%c1, %c0_6, %c0_7] : memref<7x16x32xbf16, #tpu.memory_space<vmem>>, vector<1x16x32xbf16>
    %6 = vector.shape_cast %5 : vector<1x16x32xbf16> to vector<16x32xbf16>
    %c2 = arith.constant 2 : index
    %c0_8 = arith.constant 0 : index
    %c0_9 = arith.constant 0 : index
    %7 = vector.load %arg2[%c2, %c0_8, %c0_9] : memref<7x16x32xbf16, #tpu.memory_space<vmem>>, vector<1x16x32xbf16>
    %8 = vector.shape_cast %7 : vector<1x16x32xbf16> to vector<16x32xbf16>
    %c3 = arith.constant 3 : index
    %c0_10 = arith.constant 0 : index
    %c0_11 = arith.constant 0 : index
    %9 = vector.load %arg2[%c3, %c0_10, %c0_11] : memref<7x16x32xbf16, #tpu.memory_space<vmem>>, vector<1x16x32xbf16>
    %10 = vector.shape_cast %9 : vector<1x16x32xbf16> to vector<16x32xbf16>
    %c4 = arith.constant 4 : index
    %c0_12 = arith.constant 0 : index
    %c0_13 = arith.constant 0 : index
    %11 = vector.load %arg2[%c4, %c0_12, %c0_13] : memref<7x16x32xbf16, #tpu.memory_space<vmem>>, vector<1x16x32xbf16>
    %12 = vector.shape_cast %11 : vector<1x16x32xbf16> to vector<16x32xbf16>
    %c5 = arith.constant 5 : index
    %c0_14 = arith.constant 0 : index
    %c0_15 = arith.constant 0 : index
    %13 = vector.load %arg2[%c5, %c0_14, %c0_15] : memref<7x16x32xbf16, #tpu.memory_space<vmem>>, vector<1x16x32xbf16>
    %14 = vector.shape_cast %13 : vector<1x16x32xbf16> to vector<16x32xbf16>
    %c6 = arith.constant 6 : index
    %c0_16 = arith.constant 0 : index
    %c0_17 = arith.constant 0 : index
    %15 = vector.load %arg2[%c6, %c0_16, %c0_17] : memref<7x16x32xbf16, #tpu.memory_space<vmem>>, vector<1x16x32xbf16>
    %16 = vector.shape_cast %15 : vector<1x16x32xbf16> to vector<16x32xbf16>
    %17 = tpu.concatenate %4, %6, %8, %10, %12, %14, %16 in 0 : vector<16x32xbf16>, vector<16x32xbf16>, vector<16x32xbf16>, vector<16x32xbf16>, vector<16x32xbf16>, vector<16x32xbf16>, vector<16x32xbf16> -> vector<112x32xbf16>
    %c0_18 = arith.constant 0 : index
    %c0_19 = arith.constant 0 : index
    %18 = vector.load %arg5[%c0_18, %c0_19] : memref<32x64xbf16, #tpu.memory_space<vmem>>, vector<32x64xbf16>
    %cst_20 = arith.constant dense<0.000000e+00> : vector<112x64xf32>
    %19 = tpu.matmul %17, %18, %cst_20 {dimension_numbers = #tpu.dot_dimension_numbers<[1], [0], [0], [1], [0, 0, 1, 1], [], []>} : vector<112x32xbf16>, vector<32x64xbf16>, vector<112x64xf32> -> vector<112x64xf32>
    %20 = tpu.concatenate %2, %2, %2, %2, %2, %2, %2 in 0 : vector<16x64xf32>, vector<16x64xf32>, vector<16x64xf32>, vector<16x64xf32>, vector<16x64xf32>, vector<16x64xf32>, vector<16x64xf32> -> vector<112x64xf32>
    %21 = arith.addf %19, %20 : vector<112x64xf32>
    %c0_21 = arith.constant 0 : index
    %c0_22 = arith.constant 0 : index
    %22 = vector.load %arg6[%c0_21, %c0_22] : memref<1x64xf32, #tpu.memory_space<vmem>>, vector<1x64xf32>
    %23 = vector.broadcast %22 : vector<1x64xf32> to vector<112x64xf32>
    %24 = arith.addf %21, %23 : vector<112x64xf32>
    %cst_23 = arith.constant 0.000000e+00 : f32
    %25 = vector.broadcast %cst_23 : f32 to vector<112x64xf32>
    %26 = arith.maximumf %24, %25 : vector<112x64xf32>
    %27 = arith.truncf %26 : vector<112x64xf32> to vector<112x64xbf16>
    %c0_24 = arith.constant 0 : index
    %c0_25 = arith.constant 0 : index
    %28 = vector.load %arg7[%c0_24, %c0_25] : memref<64x64xbf16, #tpu.memory_space<vmem>>, vector<64x64xbf16>
    %cst_26 = arith.constant dense<0.000000e+00> : vector<112x64xf32>
    %29 = tpu.matmul %27, %28, %cst_26 {dimension_numbers = #tpu.dot_dimension_numbers<[1], [0], [0], [1], [0, 0, 1, 1], [], []>} : vector<112x64xbf16>, vector<64x64xbf16>, vector<112x64xf32> -> vector<112x64xf32>
    %c0_27 = arith.constant 0 : index
    %c0_28 = arith.constant 0 : index
    %30 = vector.load %arg8[%c0_27, %c0_28] : memref<1x64xf32, #tpu.memory_space<vmem>>, vector<1x64xf32>
    %31 = vector.broadcast %30 : vector<1x64xf32> to vector<112x64xf32>
    %32 = arith.addf %29, %31 : vector<112x64xf32>
    %cst_29 = arith.constant 0.000000e+00 : f32
    %33 = vector.broadcast %cst_29 : f32 to vector<112x64xf32>
    %34 = arith.maximumf %32, %33 : vector<112x64xf32>
    %35 = arith.truncf %34 : vector<112x64xf32> to vector<112x64xbf16>
    %c0_30 = arith.constant 0 : index
    %c0_31 = arith.constant 0 : index
    %36 = vector.load %arg9[%c0_30, %c0_31] : memref<64x128xbf16, #tpu.memory_space<vmem>>, vector<64x128xbf16>
    %cst_32 = arith.constant dense<0.000000e+00> : vector<112x128xf32>
    %37 = tpu.matmul %35, %36, %cst_32 {dimension_numbers = #tpu.dot_dimension_numbers<[1], [0], [0], [1], [0, 0, 1, 1], [], []>} : vector<112x64xbf16>, vector<64x128xbf16>, vector<112x128xf32> -> vector<112x128xf32>
    %c0_33 = arith.constant 0 : index
    %c0_34 = arith.constant 0 : index
    %38 = vector.load %arg10[%c0_33, %c0_34] : memref<1x128xf32, #tpu.memory_space<vmem>>, vector<1x128xf32>
    %39 = vector.broadcast %38 : vector<1x128xf32> to vector<112x128xf32>
    %40 = arith.addf %37, %39 : vector<112x128xf32>
    %cst_35 = arith.constant 0.000000e+00 : f32
    %41 = vector.broadcast %cst_35 : f32 to vector<112x128xf32>
    %42 = arith.maximumf %40, %41 : vector<112x128xf32>
    %c0_36 = arith.constant 0 : index
    %c0_37 = arith.constant 0 : index
    %c0_38 = arith.constant 0 : index
    %43 = vector.load %arg3[%c0_36, %c0_37, %c0_38] : memref<7x16x1xf32, #tpu.memory_space<vmem>>, vector<1x16x1xf32>
    %44 = vector.shape_cast %43 : vector<1x16x1xf32> to vector<16x1xf32>
    %c1_39 = arith.constant 1 : index
    %c0_40 = arith.constant 0 : index
    %c0_41 = arith.constant 0 : index
    %45 = vector.load %arg3[%c1_39, %c0_40, %c0_41] : memref<7x16x1xf32, #tpu.memory_space<vmem>>, vector<1x16x1xf32>
    %46 = vector.shape_cast %45 : vector<1x16x1xf32> to vector<16x1xf32>
    %c2_42 = arith.constant 2 : index
    %c0_43 = arith.constant 0 : index
    %c0_44 = arith.constant 0 : index
    %47 = vector.load %arg3[%c2_42, %c0_43, %c0_44] : memref<7x16x1xf32, #tpu.memory_space<vmem>>, vector<1x16x1xf32>
    %48 = vector.shape_cast %47 : vector<1x16x1xf32> to vector<16x1xf32>
    %c3_45 = arith.constant 3 : index
    %c0_46 = arith.constant 0 : index
    %c0_47 = arith.constant 0 : index
    %49 = vector.load %arg3[%c3_45, %c0_46, %c0_47] : memref<7x16x1xf32, #tpu.memory_space<vmem>>, vector<1x16x1xf32>
    %50 = vector.shape_cast %49 : vector<1x16x1xf32> to vector<16x1xf32>
    %c4_48 = arith.constant 4 : index
    %c0_49 = arith.constant 0 : index
    %c0_50 = arith.constant 0 : index
    %51 = vector.load %arg3[%c4_48, %c0_49, %c0_50] : memref<7x16x1xf32, #tpu.memory_space<vmem>>, vector<1x16x1xf32>
    %52 = vector.shape_cast %51 : vector<1x16x1xf32> to vector<16x1xf32>
    %c5_51 = arith.constant 5 : index
    %c0_52 = arith.constant 0 : index
    %c0_53 = arith.constant 0 : index
    %53 = vector.load %arg3[%c5_51, %c0_52, %c0_53] : memref<7x16x1xf32, #tpu.memory_space<vmem>>, vector<1x16x1xf32>
    %54 = vector.shape_cast %53 : vector<1x16x1xf32> to vector<16x1xf32>
    %c6_54 = arith.constant 6 : index
    %c0_55 = arith.constant 0 : index
    %c0_56 = arith.constant 0 : index
    %55 = vector.load %arg3[%c6_54, %c0_55, %c0_56] : memref<7x16x1xf32, #tpu.memory_space<vmem>>, vector<1x16x1xf32>
    %56 = vector.shape_cast %55 : vector<1x16x1xf32> to vector<16x1xf32>
    %57 = tpu.concatenate %44, %46, %48, %50, %52, %54, %56 in 0 : vector<16x1xf32>, vector<16x1xf32>, vector<16x1xf32>, vector<16x1xf32>, vector<16x1xf32>, vector<16x1xf32>, vector<16x1xf32> -> vector<112x1xf32>
    %cst_57 = arith.constant 5.000000e-01 : f32
    %58 = vector.broadcast %cst_57 : f32 to vector<112x1xf32>
    %59 = arith.cmpf ogt, %57, %58 : vector<112x1xf32>
    %cst_58 = arith.constant -1.000000e+09 : f32
    %60 = vector.shape_cast %59 : vector<112x1xi1> to vector<112x1xi1>
    %61 = vector.broadcast %60 : vector<112x1xi1> to vector<112x128xi1>
    %62 = vector.broadcast %cst_58 : f32 to vector<112x128xf32>
    %63 = arith.select %61, %42, %62 : vector<112x128xi1>, vector<112x128xf32>
    %64 = vector.extract_strided_slice %63 {offsets = [0, 0], sizes = [16, 128], strides = [1, 1]} : vector<112x128xf32> to vector<16x128xf32>
    %65 = vector.extract_strided_slice %63 {offsets = [16, 0], sizes = [16, 128], strides = [1, 1]} : vector<112x128xf32> to vector<16x128xf32>
    %66 = arith.maximumf %64, %65 : vector<16x128xf32>
    %67 = vector.extract_strided_slice %63 {offsets = [32, 0], sizes = [16, 128], strides = [1, 1]} : vector<112x128xf32> to vector<16x128xf32>
    %68 = arith.maximumf %66, %67 : vector<16x128xf32>
    %69 = vector.extract_strided_slice %63 {offsets = [48, 0], sizes = [16, 128], strides = [1, 1]} : vector<112x128xf32> to vector<16x128xf32>
    %70 = arith.maximumf %68, %69 : vector<16x128xf32>
    %71 = vector.extract_strided_slice %63 {offsets = [64, 0], sizes = [16, 128], strides = [1, 1]} : vector<112x128xf32> to vector<16x128xf32>
    %72 = arith.maximumf %70, %71 : vector<16x128xf32>
    %73 = vector.extract_strided_slice %63 {offsets = [80, 0], sizes = [16, 128], strides = [1, 1]} : vector<112x128xf32> to vector<16x128xf32>
    %74 = arith.maximumf %72, %73 : vector<16x128xf32>
    %75 = vector.extract_strided_slice %63 {offsets = [96, 0], sizes = [16, 128], strides = [1, 1]} : vector<112x128xf32> to vector<16x128xf32>
    %76 = arith.maximumf %74, %75 : vector<16x128xf32>
    %cst_59 = arith.constant -5.000000e+08 : f32
    %77 = vector.broadcast %cst_59 : f32 to vector<16x128xf32>
    %78 = arith.cmpf ole, %76, %77 : vector<16x128xf32>
    %cst_60 = arith.constant 0.000000e+00 : f32
    %79 = vector.broadcast %cst_60 : f32 to vector<16x128xf32>
    %80 = arith.select %78, %79, %76 : vector<16x128xi1>, vector<16x128xf32>
    %c0_61 = arith.constant 0 : index
    %c0_62 = arith.constant 0 : index
    %81 = vector.load %arg11[%c0_61, %c0_62] : memref<32x64xbf16, #tpu.memory_space<vmem>>, vector<32x64xbf16>
    %cst_63 = arith.constant dense<0.000000e+00> : vector<16x64xf32>
    %82 = tpu.matmul %0, %81, %cst_63 {dimension_numbers = #tpu.dot_dimension_numbers<[1], [0], [0], [1], [0, 0, 1, 1], [], []>} : vector<16x32xbf16>, vector<32x64xbf16>, vector<16x64xf32> -> vector<16x64xf32>
    %c0_64 = arith.constant 0 : index
    %c0_65 = arith.constant 0 : index
    %83 = vector.load %arg12[%c0_64, %c0_65] : memref<1x64xf32, #tpu.memory_space<vmem>>, vector<1x64xf32>
    %84 = vector.broadcast %83 : vector<1x64xf32> to vector<16x64xf32>
    %85 = arith.addf %82, %84 : vector<16x64xf32>
    %cst_66 = arith.constant 0.000000e+00 : f32
    %86 = vector.broadcast %cst_66 : f32 to vector<16x64xf32>
    %87 = arith.maximumf %85, %86 : vector<16x64xf32>
    %88 = arith.truncf %87 : vector<16x64xf32> to vector<16x64xbf16>
    %c0_67 = arith.constant 0 : index
    %c0_68 = arith.constant 0 : index
    %89 = vector.load %arg13[%c0_67, %c0_68] : memref<64x64xbf16, #tpu.memory_space<vmem>>, vector<64x64xbf16>
    %cst_69 = arith.constant dense<0.000000e+00> : vector<16x64xf32>
    %90 = tpu.matmul %88, %89, %cst_69 {dimension_numbers = #tpu.dot_dimension_numbers<[1], [0], [0], [1], [0, 0, 1, 1], [], []>} : vector<16x64xbf16>, vector<64x64xbf16>, vector<16x64xf32> -> vector<16x64xf32>
    %c0_70 = arith.constant 0 : index
    %c0_71 = arith.constant 0 : index
    %91 = vector.load %arg14[%c0_70, %c0_71] : memref<1x64xf32, #tpu.memory_space<vmem>>, vector<1x64xf32>
    %92 = vector.broadcast %91 : vector<1x64xf32> to vector<16x64xf32>
    %93 = arith.addf %90, %92 : vector<16x64xf32>
    %cst_72 = arith.constant 0.000000e+00 : f32
    %94 = vector.broadcast %cst_72 : f32 to vector<16x64xf32>
    %95 = arith.maximumf %93, %94 : vector<16x64xf32>
    %96 = arith.truncf %95 : vector<16x64xf32> to vector<16x64xbf16>
    %c0_73 = arith.constant 0 : index
    %c0_74 = arith.constant 0 : index
    %97 = vector.load %arg15[%c0_73, %c0_74] : memref<64x128xbf16, #tpu.memory_space<vmem>>, vector<64x128xbf16>
    %cst_75 = arith.constant dense<0.000000e+00> : vector<16x128xf32>
    %98 = tpu.matmul %96, %97, %cst_75 {dimension_numbers = #tpu.dot_dimension_numbers<[1], [0], [0], [1], [0, 0, 1, 1], [], []>} : vector<16x64xbf16>, vector<64x128xbf16>, vector<16x128xf32> -> vector<16x128xf32>
    %c0_76 = arith.constant 0 : index
    %c0_77 = arith.constant 0 : index
    %99 = vector.load %arg16[%c0_76, %c0_77] : memref<1x128xf32, #tpu.memory_space<vmem>>, vector<1x128xf32>
    %100 = vector.broadcast %99 : vector<1x128xf32> to vector<16x128xf32>
    %101 = arith.addf %98, %100 : vector<16x128xf32>
    %cst_78 = arith.constant 0.000000e+00 : f32
    %102 = vector.broadcast %cst_78 : f32 to vector<16x128xf32>
    %103 = arith.maximumf %101, %102 : vector<16x128xf32>
    %104 = arith.addf %80, %103 : vector<16x128xf32>
    %c0_79 = arith.constant 0 : index
    %c0_80 = arith.constant 0 : index
    %105 = vector.load %arg17[%c0_79, %c0_80] : memref<16x128xf32, #tpu.memory_space<vmem>>, vector<16x128xf32>
    tpu.vector_store %arg17[%c0_79, %c0_80], %104 {strides = array<i32>} : memref<16x128xf32, #tpu.memory_space<vmem>>, vector<16x128xf32>,
    return
  }
  func.func @transform_0(%arg0: i32) -> (i32, i32) {
    %c0_i32 = arith.constant 0 : i32
    %c0_i32_0 = arith.constant 0 : i32
    return %arg0, %c0_i32 : i32, i32
  }
  func.func @transform_1(%arg0: i32) -> (i32, i32, i32) {
    %c0_i32 = arith.constant 0 : i32
    %c0_i32_0 = arith.constant 0 : i32
    %c0_i32_1 = arith.constant 0 : i32
    return %c0_i32, %arg0, %c0_i32_0 : i32, i32, i32
  }
  func.func @transform_2(%arg0: i32) -> (i32, i32, i32) {
    %c0_i32 = arith.constant 0 : i32
    %c0_i32_0 = arith.constant 0 : i32
    %c0_i32_1 = arith.constant 0 : i32
    return %c0_i32, %arg0, %c0_i32_0 : i32, i32, i32
  }
  func.func @transform_3(%arg0: i32) -> (i32, i32) {
    %c0_i32 = arith.constant 0 : i32
    %c0_i32_0 = arith.constant 0 : i32
    %c0_i32_1 = arith.constant 0 : i32
    return %c0_i32, %c0_i32_0 : i32, i32
  }
  func.func @transform_4(%arg0: i32) -> (i32, i32) {
    %c0_i32 = arith.constant 0 : i32
    %c0_i32_0 = arith.constant 0 : i32
    %c0_i32_1 = arith.constant 0 : i32
    return %c0_i32, %c0_i32_0 : i32, i32
  }
  func.func @transform_5(%arg0: i32) -> (i32, i32) {
    %c0_i32 = arith.constant 0 : i32
    %c0_i32_0 = arith.constant 0 : i32
    %c0_i32_1 = arith.constant 0 : i32
    return %c0_i32, %c0_i32_0 : i32, i32
  }
  func.func @transform_6(%arg0: i32) -> (i32, i32) {
    %c0_i32 = arith.constant 0 : i32
    %c0_i32_0 = arith.constant 0 : i32
    %c0_i32_1 = arith.constant 0 : i32
    return %c0_i32, %c0_i32_0 : i32, i32
  }
  func.func @transform_7(%arg0: i32) -> (i32, i32) {
    %c0_i32 = arith.constant 0 : i32
    %c0_i32_0 = arith.constant 0 : i32
    %c0_i32_1 = arith.constant 0 : i32
    return %c0_i32, %c0_i32_0 : i32, i32
  }
  func.func @transform_8(%arg0: i32) -> (i32, i32) {
    %c0_i32 = arith.constant 0 : i32
    %c0_i32_0 = arith.constant 0 : i32
    %c0_i32_1 = arith.constant 0 : i32
    return %c0_i32, %c0_i32_0 : i32, i32
  }
  func.func @transform_9(%arg0: i32) -> (i32, i32) {
    %c0_i32 = arith.constant 0 : i32
    %c0_i32_0 = arith.constant 0 : i32
    %c0_i32_1 = arith.constant 0 : i32
    return %c0_i32, %c0_i32_0 : i32, i32
  }
  func.func @transform_10(%arg0: i32) -> (i32, i32) {
    %c0_i32 = arith.constant 0 : i32
    %c0_i32_0 = arith.constant 0 : i32
    %c0_i32_1 = arith.constant 0 : i32
    return %c0_i32, %c0_i32_0 : i32, i32
  }
  func.func @transform_11(%arg0: i32) -> (i32, i32) {
    %c0_i32 = arith.constant 0 : i32
    %c0_i32_0 = arith.constant 0 : i32
    %c0_i32_1 = arith.constant 0 : i32
    return %c0_i32, %c0_i32_0 : i32, i32
  }
  func.func @transform_12(%arg0: i32) -> (i32, i32) {
    %c0_i32 = arith.constant 0 : i32
    %c0_i32_0 = arith.constant 0 : i32
    %c0_i32_1 = arith.constant 0 : i32
    return %c0_i32, %c0_i32_0 : i32, i32
  }
  func.func @transform_13(%arg0: i32) -> (i32, i32) {
    %c0_i32 = arith.constant 0 : i32
    %c0_i32_0 = arith.constant 0 : i32
    %c0_i32_1 = arith.constant 0 : i32
    return %c0_i32, %c0_i32_0 : i32, i32
  }
  func.func @transform_14(%arg0: i32) -> (i32, i32) {
    %c0_i32 = arith.constant 0 : i32
    %c0_i32_0 = arith.constant 0 : i32
    %c0_i32_1 = arith.constant 0 : i32
    return %c0_i32, %c0_i32_0 : i32, i32
  }
  func.func @transform_15(%arg0: i32) -> (i32, i32) {
    %c0_i32 = arith.constant 0 : i32
    %c0_i32_0 = arith.constant 0 : i32
    %c0_i32_1 = arith.constant 0 : i32
    return %c0_i32, %c0_i32_0 : i32, i32
  }
  func.func @transform_16(%arg0: i32) -> (i32, i32) {
    %c0_i32 = arith.constant 0 : i32
    %c0_i32_0 = arith.constant 0 : i32
    return %arg0, %c0_i32 : i32, i32
  }
}

</mosaic_0001>

<bundles_post_ra>
// kernel: dgcnn_forward.5
= control target key start
LH: loop header
LB: loop body
LE: loop exit
PB: predicated region body
PF: predicated region fallthrough
CT: control target
= control target key end

     0   :  { %v467_v0 = vmov 1   ;;  %v468_v1 = vmov 0   ;;  %v469_v3 = vmov 2   ;;  %v20_v23 = vlaneseq  ;;  %s578_s0 = inlined_call_operand.vmem [shape: f32[16,3], index: 0, kind: input, shape index: {}]   ;;  %s579_s1 = inlined_call_operand.vmem [shape: f32[3,16], index: 1, kind: input, shape index: {}]   ;;  %s580_s3 = inlined_call_operand.vmem [shape: s32[1,16], index: 3, kind: input, shape index: {}]   ;;  %s581_s2 = inlined_call_operand.vmem [shape: s32[16,1], index: 2, kind: input, shape index: {}]   ;;  %s582_s4 = inlined_call_operand.vmem [shape: s32[16,7], index: 4, kind: output, shape index: {0}]   ;;  %s583_s5 = inlined_call_operand.vmem [shape: f32[16,7], index: 5, kind: output, shape index: {1}]  }
   0x1   :  { %460 = vset.pattern.permute.xlu1 %v467_v0  ;;  %459 = vset.pattern.permute.xlu0 %v468_v1  ;;  %v28_v2 = vld [vmem:[%s578_s0] sm:$0xff]  ;;  %v29_v4 = vld [vmem:[%s578_s0 + $0x8] sm:$0xff]  ;;  %vm470_vm2 = vmmov 1   ;;  %vm106_vm6 = vcmask 130048  }
   0x2   :  { %50 = vperm.xlu1 %460, %v28_v2   ;;  %33 = vperm.xlu0 %459, %v28_v2   ;;  %v80_v5 = vld [vmem:[%s581_s2] sm:$0xff]  ;;  %v81_v6 = vld [vmem:[%s581_s2 + $0x8] sm:$0xff]  ;;  %v23_v28 = vshrl.u32 %v20_v23, 7  ;;  %v21_v35 = vand.u32 127, %v20_v23 }
   0x3   :  { %461 = vset.pattern.permute.xlu2 %v469_v3  ;;  %v464_v8 = vld [vmem:[%s579_s1 + $0x1] ss:$0 sm:$0xff]  ;;  %v465_v9 = vld [vmem:[%s579_s1] ss:$0 sm:$0xff]  ;;  %v463_v10 = vld [vmem:[%s579_s1 + $0x2] ss:$0 sm:$0xff] }
   0x4   :  { %66 = vperm.xlu2 %461, %v28_v2   ;;  %v466_v33 = vld [vmem:[%s580_s3] ss:$0 sm:$0xff]  ;;  %v24_v36 = vadd.s32 8, %v23_v28  ;;  %vm94_vm0 = vcmp.eq.s32.totalorder %v21_v35, %v23_v28 }
   0x6   :  { %vm95_vm4 = vcmp.eq.s32.totalorder %v21_v35, %v24_v36 }
   0xa   :  { %54 = vperm.xlu1 %460, %v29_v4   ;;  %38 = vperm.xlu0 %459, %v29_v4  }
   0xc   :  { %70 = vperm.xlu2 %461, %v29_v4  }
  0x12   :  { %462 = vset.pattern.permute.xlu1 %v468_v1  ;;  %84 = vperm.xlu0 %459, %v80_v5  }
  0x13   :  { %87 = vperm.xlu1 %462, %v81_v6  }
  0x5e   :  { %v67_v7 = vpop.permute.xlu2 %66 }
  0x5f   :  { %v74_v15 = vsub.f32 %v67_v7, %v463_v10 }
  0x61   :  { %v76_v18 = vmul.f32 %v74_v15, %v74_v15 }
  0x66   :  { %v71_v20 = vpop.permute.xlu2 %70 }
  0x67   :  { %v75_v24 = vsub.f32 %v71_v20, %v463_v10 }
  0x69   :  { %v77_v31 = vmul.f32 %v75_v24, %v75_v24 }
  0x74   :  { %v51_v11 = vpop.permute.xlu1 %50  ;;  %v34_v12 = vpop.permute.xlu0 %33 }
  0x75   :  { %v58_v13 = vsub.f32 %v51_v11, %v464_v8  ;;  %v42_v14 = vsub.f32 %v34_v12, %v465_v9 }
  0x77   :  { %v60_v16 = vmul.f32 %v58_v13, %v58_v13  ;;  %v44_v17 = vmul.f32 %v42_v14, %v42_v14 }
  0x79   :  { %v62_v19 = vadd.f32 %v60_v16, %v44_v17 }
  0x7b   :  { %v78_v27 = vadd.f32 %v76_v18, %v62_v19 }
  0x7c   :  { %v55_v21 = vpop.permute.xlu1 %54  ;;  %v39_v22 = vpop.permute.xlu0 %38 }
  0x7d   :  { %v59_v25 = vsub.f32 %v55_v21, %v464_v8  ;;  %v43_v26 = vsub.f32 %v39_v22, %v465_v9  ;;  %v100_v34 = vand.u32 4294967280, %v78_v27 }
  0x7f   :  { %v61_v29 = vmul.f32 %v59_v25, %v59_v25  ;;  %v45_v30 = vmul.f32 %v43_v26, %v43_v26  ;;  %v102_v41 = vor.u32 %v100_v34, %v21_v35 }
  0x81   :  { %v63_v32 = vadd.f32 %v61_v29, %v45_v30 }
  0x83   :  { %v79_v37 = vadd.f32 %v77_v31, %v63_v32 }
  0x84   :  { %v85_v38 = vpop.permute.xlu0 %84 }
  0x85   :  { %v101_v39 = vand.u32 4294967280, %v79_v37  ;;  %vm90_vm1 = vcmp.eq.s32.totalorder %v85_v38, %v466_v33  ;;  %v88_v40 = vpop.permute.xlu1 %87 }
  0x86   :  { %vm92_vm3 = vmxor %vm90_vm1, %vm470_vm2  ;;  %vm91_vm5 = vcmp.eq.s32.totalorder %v88_v40, %v466_v33  ;;  %v471_v33 = vmov 0.0  }
  0x87   :  { %vm96_vm7 = vmor %vm92_vm3, %vm94_vm0  ;;  %v103_v42 = vor.u32 %v101_v39, %v21_v35 }
  0x88   :  { %v104_v43 = vsel %vm96_vm7, 2139095040, %v102_v41  ;;  %vm93_vm8 = vmxor %vm91_vm5, %vm470_vm2  ;;  %vm397_vm2 = vcmask 7168  }
  0x89   :  { %vm97_vm9 = vmor %vm93_vm8, %vm95_vm4  ;;  %v107_v44 = vsel %vm106_vm6, %v104_v43, 2147483647 }
  0x8a   :  { %v105_v45 = vsel %vm97_vm9, 2139095040, %v103_v42  ;;  %v109_v46 = vshra.s32 %v107_v44, 16  ;;  %v108_v51 = vand.u32 65535, %v107_v44 }
  0x8b   :  { %v122_v47 = vsel %vm106_vm6, %v105_v45, 2147483647 }
  0x8c   :  { %v111_v48 = vcvt.s32.f32 %v109_v46  ;;  %v124_v49 = vshra.s32 %v122_v47, 16  ;;  %v123_v52 = vand.u32 65535, %v122_v47  ;;  %v110_v54 = vcvt.s32.f32 %v108_v51 }
  0x8e   :  { %112 = vmin.xlane.f32.xlu2 %v111_v48  ;;  %v126_v50 = vcvt.s32.f32 %v124_v49  ;;  %v125_v57 = vcvt.s32.f32 %v123_v52 }
  0x90   :  { %127 = vmin.xlane.f32.xlu0 %v126_v50 }
 0x101   :  { %v113_v53 = vpop.xlane.xlu2 %112 }
 0x102   :  { %vm114_vm10 = vcmp.eq.f32.partialorder %v111_v48, %v113_v53  ;;  %v119_v59 = vcvt.f32.s32 %v113_v53 }
 0x103   :  { %v128_v55 = vpop.xlane.xlu0 %127  ;;  %v115_v56 = vsel %vm114_vm10, %v110_v54, inf  ;;  %vm400_vm10 = vcmask 15360  }
 0x104   :  { %116 = vmin.xlane.f32.xlu1 %v115_v56  ;;  %vm129_vm11 = vcmp.eq.f32.partialorder %v126_v50, %v128_v55  ;;  %v134_v60 = vcvt.f32.s32 %v128_v55  ;;  %v120_v62 = vshll.u32 %v119_v59, 16 }
 0x105   :  { %v130_v58 = vsel %vm129_vm11, %v125_v57, inf }
 0x106   :  { %131 = vmin.xlane.f32.xlu2 %v130_v58  ;;  %v135_v1 = vshll.u32 %v134_v60, 16 }
 0x177   :  { %v117_v61 = vpop.xlane.xlu1 %116 }
 0x178   :  { %v118_v63 = vcvt.f32.s32 %v117_v61 }
 0x179   :  { %v132_v0 = vpop.xlane.xlu2 %131 }
 0x17a   :  { %v121_v2 = vadd.s32 %v120_v62, %v118_v63  ;;  %v133_v3 = vcvt.f32.s32 %v132_v0 }
 0x17c   :  { %v136_v4 = vadd.s32 %v135_v1, %v133_v3  ;;  %vm145_vm12 = vcmp.eq.s32.totalorder %v104_v43, %v121_v2  ;;  %vm139_vm0 = vcmp.lt.s32.totalorder %v121_v2, 2139095040  ;;  %v137_v30 = vand.u32 15, %v121_v2 }
 0x17d   :  { %v147_v5 = vsel %vm145_vm12, 2139095040, %v104_v43  ;;  %v440_v34 = vsel %vm139_vm0, 1.0, %v471_v33 }
 0x17e   :  { %v149_v6 = vsel %vm106_vm6, %v147_v5, 2147483647  ;;  %vm146_vm13 = vcmp.eq.s32.totalorder %v105_v45, %v136_v4  ;;  %vm140_vm1 = vcmp.lt.s32.totalorder %v136_v4, 2139095040  ;;  %v138_v35 = vand.u32 15, %v136_v4 }
 0x17f   :  { %v151_v7 = vshra.s32 %v149_v6, 16  ;;  %v148_v8 = vsel %vm146_vm13, 2139095040, %v105_v45  ;;  %v150_v13 = vand.u32 65535, %v149_v6  ;;  %v441_v41 = vsel %vm140_vm1, 1.0, %v471_v33 }
 0x180   :  { %v164_v9 = vsel %vm106_vm6, %v148_v8, 2147483647  ;;  %vm403_vm1 = vcmask 23552  }
 0x181   :  { %v153_v10 = vcvt.s32.f32 %v151_v7  ;;  %v166_v11 = vshra.s32 %v164_v9, 16  ;;  %v165_v14 = vand.u32 65535, %v164_v9  ;;  %v152_v16 = vcvt.s32.f32 %v150_v13 }
 0x183   :  { %154 = vmin.xlane.f32.xlu2 %v153_v10  ;;  %v168_v12 = vcvt.s32.f32 %v166_v11  ;;  %v167_v19 = vcvt.s32.f32 %v165_v14 }
 0x185   :  { %169 = vmin.xlane.f32.xlu0 %v168_v12 }
 0x1f6   :  { %v155_v15 = vpop.xlane.xlu2 %154 }
 0x1f7   :  { %vm156_vm14 = vcmp.eq.f32.partialorder %v153_v10, %v155_v15  ;;  %v161_v21 = vcvt.f32.s32 %v155_v15 }
 0x1f8   :  { %v170_v17 = vpop.xlane.xlu0 %169  ;;  %v157_v18 = vsel %vm156_vm14, %v152_v16, inf }
 0x1f9   :  { %158 = vmin.xlane.f32.xlu1 %v157_v18  ;;  %vm171_vm15 = vcmp.eq.f32.partialorder %v168_v12, %v170_v17  ;;  %v176_v22 = vcvt.f32.s32 %v170_v17  ;;  %v162_v24 = vshll.u32 %v161_v21, 16 }
 0x1fa   :  { %v172_v20 = vsel %vm171_vm15, %v167_v19, inf }
 0x1fb   :  { %173 = vmin.xlane.f32.xlu2 %v172_v20  ;;  %v177_v27 = vshll.u32 %v176_v22, 16 }
 0x26c   :  { %v159_v23 = vpop.xlane.xlu1 %158 }
 0x26d   :  { %v160_v25 = vcvt.f32.s32 %v159_v23 }
 0x26e   :  { %v174_v26 = vpop.xlane.xlu2 %173 }
 0x26f   :  { %v163_v28 = vadd.s32 %v162_v24, %v160_v25  ;;  %v175_v29 = vcvt.f32.s32 %v174_v26 }
 0x271   :  { %v179_v31 = vand.u32 15, %v163_v28  ;;  %vm181_vm3 = vcmp.lt.s32.totalorder %v163_v28, 2139095040  ;;  %v178_v32 = vadd.s32 %v177_v27, %v175_v29  ;;  %vm187_vm4 = vcmp.eq.s32.totalorder %v147_v5, %v163_v28 }
 0x272   :  { %v442_v36 = vsel %vm181_vm3, 1.0, %v471_v33  ;;  %v189_v37 = vsel %vm187_vm4, 2139095040, %v147_v5 }
 0x273   :  { %v398_v38 = vsel %vm397_vm2, %v137_v30, %v179_v31  ;;  %v418_v39 = vsel %vm397_vm2, %v440_v34, %v442_v36  ;;  %v180_v40 = vand.u32 15, %v178_v32  ;;  %vm182_vm5 = vcmp.lt.s32.totalorder %v178_v32, 2139095040 }
 0x274   :  { %v443_v42 = vsel %vm182_vm5, 1.0, %v471_v33  ;;  %v191_v43 = vsel %vm106_vm6, %v189_v37, 2147483647  ;;  %vm188_vm7 = vcmp.eq.s32.totalorder %v148_v8, %v178_v32 }
 0x275   :  { %v399_v44 = vsel %vm397_vm2, %v138_v35, %v180_v40  ;;  %v419_v45 = vsel %vm397_vm2, %v441_v41, %v443_v42  ;;  %v193_v46 = vshra.s32 %v191_v43, 16  ;;  %v190_v47 = vsel %vm188_vm7, 2139095040, %v148_v8 }
 0x276   :  { %v206_v48 = vsel %vm106_vm6, %v190_v47, 2147483647  ;;  %v192_v52 = vand.u32 65535, %v191_v43 }
 0x277   :  { %v195_v49 = vcvt.s32.f32 %v193_v46  ;;  %v208_v50 = vshra.s32 %v206_v48, 16  ;;  %v207_v53 = vand.u32 65535, %v206_v48 }
 0x278   :  { %v194_v55 = vcvt.s32.f32 %v192_v52 }
 0x279   :  { %196 = vmin.xlane.f32.xlu0 %v195_v49  ;;  %v210_v51 = vcvt.s32.f32 %v208_v50  ;;  %v209_v58 = vcvt.s32.f32 %v207_v53 }
 0x27b   :  { %211 = vmin.xlane.f32.xlu1 %v210_v51 }
 0x2ec   :  { %v197_v54 = vpop.xlane.xlu0 %196 }
 0x2ed   :  { %vm198_vm8 = vcmp.eq.f32.partialorder %v195_v49, %v197_v54  ;;  %v203_v60 = vcvt.f32.s32 %v197_v54 }
 0x2ee   :  { %v212_v56 = vpop.xlane.xlu1 %211  ;;  %v199_v57 = vsel %vm198_vm8, %v194_v55, inf }
 0x2ef   :  { %200 = vmin.xlane.f32.xlu2 %v199_v57  ;;  %vm213_vm9 = vcmp.eq.f32.partialorder %v210_v51, %v212_v56  ;;  %v218_v61 = vcvt.f32.s32 %v212_v56  ;;  %v204_v63 = vshll.u32 %v203_v60, 16 }
 0x2f0   :  { %v214_v59 = vsel %vm213_vm9, %v209_v58, inf  ;;  %vm406_vm9 = vcmask 31744  }
 0x2f1   :  { %215 = vmin.xlane.f32.xlu0 %v214_v59  ;;  %v219_v2 = vshll.u32 %v218_v61, 16 }
 0x362   :  { %v201_v62 = vpop.xlane.xlu2 %200 }
 0x363   :  { %v202_v0 = vcvt.f32.s32 %v201_v62 }
 0x364   :  { %v216_v1 = vpop.xlane.xlu0 %215 }
 0x365   :  { %v205_v3 = vadd.s32 %v204_v63, %v202_v0  ;;  %v217_v4 = vcvt.f32.s32 %v216_v1 }
 0x367   :  { %v221_v5 = vand.u32 15, %v205_v3  ;;  %vm223_vm11 = vcmp.lt.s32.totalorder %v205_v3, 2139095040  ;;  %v220_v6 = vadd.s32 %v219_v2, %v217_v4  ;;  %vm229_vm12 = vcmp.eq.s32.totalorder %v189_v37, %v205_v3 }
 0x368   :  { %v444_v7 = vsel %vm223_vm11, 1.0, %v471_v33  ;;  %v231_v8 = vsel %vm229_vm12, 2139095040, %v189_v37 }
 0x369   :  { %v401_v9 = vsel %vm400_vm10, %v398_v38, %v221_v5  ;;  %v420_v10 = vsel %vm400_vm10, %v418_v39, %v444_v7  ;;  %v222_v11 = vand.u32 15, %v220_v6  ;;  %vm224_vm13 = vcmp.lt.s32.totalorder %v220_v6, 2139095040 }
 0x36a   :  { %v445_v12 = vsel %vm224_vm13, 1.0, %v471_v33  ;;  %v233_v13 = vsel %vm106_vm6, %v231_v8, 2147483647  ;;  %vm230_vm14 = vcmp.eq.s32.totalorder %v190_v47, %v220_v6 }
 0x36b   :  { %v402_v14 = vsel %vm400_vm10, %v399_v44, %v222_v11  ;;  %v421_v15 = vsel %vm400_vm10, %v419_v45, %v445_v12  ;;  %v235_v16 = vshra.s32 %v233_v13, 16  ;;  %v232_v17 = vsel %vm230_vm14, 2139095040, %v190_v47 }
 0x36c   :  { %v248_v18 = vsel %vm106_vm6, %v232_v17, 2147483647  ;;  %v234_v22 = vand.u32 65535, %v233_v13 }
 0x36d   :  { %v237_v19 = vcvt.s32.f32 %v235_v16  ;;  %v250_v20 = vshra.s32 %v248_v18, 16  ;;  %v249_v23 = vand.u32 65535, %v248_v18 }
 0x36e   :  { %v236_v25 = vcvt.s32.f32 %v234_v22 }
 0x36f   :  { %238 = vmin.xlane.f32.xlu1 %v237_v19  ;;  %v252_v21 = vcvt.s32.f32 %v250_v20  ;;  %v251_v28 = vcvt.s32.f32 %v249_v23 }
 0x371   :  { %253 = vmin.xlane.f32.xlu2 %v252_v21 }
 0x3e2   :  { %v239_v24 = vpop.xlane.xlu1 %238 }
 0x3e3   :  { %vm240_vm15 = vcmp.eq.f32.partialorder %v237_v19, %v239_v24  ;;  %v245_v30 = vcvt.f32.s32 %v239_v24 }
 0x3e4   :  { %v254_v26 = vpop.xlane.xlu2 %253  ;;  %v241_v27 = vsel %vm240_vm15, %v236_v25, inf }
 0x3e5   :  { %242 = vmin.xlane.f32.xlu0 %v241_v27  ;;  %vm255_vm0 = vcmp.eq.f32.partialorder %v252_v21, %v254_v26  ;;  %v260_v31 = vcvt.f32.s32 %v254_v26  ;;  %v246_v34 = vshll.u32 %v245_v30, 16 }
 0x3e6   :  { %v256_v29 = vsel %vm255_vm0, %v251_v28, inf }
 0x3e7   :  { %257 = vmin.xlane.f32.xlu1 %v256_v29  ;;  %v261_v37 = vshll.u32 %v260_v31, 16 }
 0x458   :  { %v243_v32 = vpop.xlane.xlu0 %242 }
 0x459   :  { %v244_v35 = vcvt.f32.s32 %v243_v32 }
 0x45a   :  { %v258_v36 = vpop.xlane.xlu1 %257 }
 0x45b   :  { %v247_v38 = vadd.s32 %v246_v34, %v244_v35  ;;  %v259_v39 = vcvt.f32.s32 %v258_v36 }
 0x45d   :  { %v263_v40 = vand.u32 15, %v247_v38  ;;  %vm265_vm2 = vcmp.lt.s32.totalorder %v247_v38, 2139095040  ;;  %v262_v41 = vadd.s32 %v261_v37, %v259_v39  ;;  %vm271_vm3 = vcmp.eq.s32.totalorder %v231_v8, %v247_v38 }
 0x45e   :  { %v446_v42 = vsel %vm265_vm2, 1.0, %v471_v33  ;;  %v273_v43 = vsel %vm271_vm3, 2139095040, %v231_v8  ;;  %vm409_vm2 = vcmask 39936  }
 0x45f   :  { %v404_v44 = vsel %vm403_vm1, %v401_v9, %v263_v40  ;;  %v422_v45 = vsel %vm403_vm1, %v420_v10, %v446_v42  ;;  %v264_v46 = vand.u32 15, %v262_v41  ;;  %vm266_vm4 = vcmp.lt.s32.totalorder %v262_v41, 2139095040 }
 0x460   :  { %v447_v47 = vsel %vm266_vm4, 1.0, %v471_v33  ;;  %v275_v48 = vsel %vm106_vm6, %v273_v43, 2147483647  ;;  %vm272_vm5 = vcmp.eq.s32.totalorder %v232_v17, %v262_v41 }
 0x461   :  { %v405_v49 = vsel %vm403_vm1, %v402_v14, %v264_v46  ;;  %v423_v50 = vsel %vm403_vm1, %v421_v15, %v447_v47  ;;  %v277_v51 = vshra.s32 %v275_v48, 16  ;;  %v274_v52 = vsel %vm272_vm5, 2139095040, %v232_v17 }
 0x462   :  { %v290_v53 = vsel %vm106_vm6, %v274_v52, 2147483647  ;;  %v276_v57 = vand.u32 65535, %v275_v48 }
 0x463   :  { %v279_v54 = vcvt.s32.f32 %v277_v51  ;;  %v292_v55 = vshra.s32 %v290_v53, 16  ;;  %v291_v58 = vand.u32 65535, %v290_v53 }
 0x464   :  { %v278_v60 = vcvt.s32.f32 %v276_v57 }
 0x465   :  { %280 = vmin.xlane.f32.xlu2 %v279_v54  ;;  %v294_v56 = vcvt.s32.f32 %v292_v55  ;;  %v293_v63 = vcvt.s32.f32 %v291_v58 }
 0x467   :  { %295 = vmin.xlane.f32.xlu0 %v294_v56 }
 0x4d8   :  { %v281_v59 = vpop.xlane.xlu2 %280 }
 0x4d9   :  { %vm282_vm7 = vcmp.eq.f32.partialorder %v279_v54, %v281_v59  ;;  %v287_v1 = vcvt.f32.s32 %v281_v59 }
 0x4da   :  { %v296_v61 = vpop.xlane.xlu0 %295  ;;  %v283_v62 = vsel %vm282_vm7, %v278_v60, inf }
 0x4db   :  { %284 = vmin.xlane.f32.xlu1 %v283_v62  ;;  %vm297_vm8 = vcmp.eq.f32.partialorder %v294_v56, %v296_v61  ;;  %v302_v2 = vcvt.f32.s32 %v296_v61  ;;  %v288_v4 = vshll.u32 %v287_v1, 16 }
 0x4dc   :  { %v298_v0 = vsel %vm297_vm8, %v293_v63, inf  ;;  %vm415_vm8 = vcmask 56320  }
 0x4dd   :  { %299 = vmin.xlane.f32.xlu2 %v298_v0  ;;  %v303_v7 = vshll.u32 %v302_v2, 16 }
 0x54e   :  { %v285_v3 = vpop.xlane.xlu1 %284 }
 0x54f   :  { %v286_v5 = vcvt.f32.s32 %v285_v3 }
 0x550   :  { %v300_v6 = vpop.xlane.xlu2 %299 }
 0x551   :  { %v289_v8 = vadd.s32 %v288_v4, %v286_v5  ;;  %v301_v9 = vcvt.f32.s32 %v300_v6 }
 0x553   :  { %v305_v10 = vand.u32 15, %v289_v8  ;;  %vm307_vm10 = vcmp.lt.s32.totalorder %v289_v8, 2139095040  ;;  %v304_v11 = vadd.s32 %v303_v7, %v301_v9  ;;  %vm313_vm11 = vcmp.eq.s32.totalorder %v273_v43, %v289_v8 }
 0x554   :  { %v448_v12 = vsel %vm307_vm10, 1.0, %v471_v33  ;;  %v315_v13 = vsel %vm313_vm11, 2139095040, %v273_v43 }
 0x555   :  { %v407_v14 = vsel %vm406_vm9, %v404_v44, %v305_v10  ;;  %v424_v15 = vsel %vm406_vm9, %v422_v45, %v448_v12  ;;  %v306_v16 = vand.u32 15, %v304_v11  ;;  %vm308_vm12 = vcmp.lt.s32.totalorder %v304_v11, 2139095040 }
 0x556   :  { %v449_v17 = vsel %vm308_vm12, 1.0, %v471_v33  ;;  %v317_v18 = vsel %vm106_vm6, %v315_v13, 2147483647  ;;  %vm314_vm13 = vcmp.eq.s32.totalorder %v274_v52, %v304_v11 }
 0x557   :  { %v408_v19 = vsel %vm406_vm9, %v405_v49, %v306_v16  ;;  %v425_v20 = vsel %vm406_vm9, %v423_v50, %v449_v17  ;;  %v319_v21 = vshra.s32 %v317_v18, 16  ;;  %v316_v22 = vsel %vm314_vm13, 2139095040, %v274_v52 }
 0x558   :  { %v332_v23 = vsel %vm106_vm6, %v316_v22, 2147483647  ;;  %v318_v27 = vand.u32 65535, %v317_v18 }
 0x559   :  { %v321_v24 = vcvt.s32.f32 %v319_v21  ;;  %v334_v25 = vshra.s32 %v332_v23, 16  ;;  %v333_v28 = vand.u32 65535, %v332_v23 }
 0x55a   :  { %v320_v30 = vcvt.s32.f32 %v318_v27 }
 0x55b   :  { %322 = vmin.xlane.f32.xlu0 %v321_v24  ;;  %v336_v26 = vcvt.s32.f32 %v334_v25  ;;  %v335_v34 = vcvt.s32.f32 %v333_v28 }
 0x55d   :  { %337 = vmin.xlane.f32.xlu1 %v336_v26 }
 0x5ce   :  { %v323_v29 = vpop.xlane.xlu0 %322 }
 0x5cf   :  { %vm324_vm14 = vcmp.eq.f32.partialorder %v321_v24, %v323_v29  ;;  %v329_v36 = vcvt.f32.s32 %v323_v29 }
 0x5d0   :  { %v338_v31 = vpop.xlane.xlu1 %337  ;;  %v325_v32 = vsel %vm324_vm14, %v320_v30, inf }
 0x5d1   :  { %326 = vmin.xlane.f32.xlu2 %v325_v32  ;;  %vm339_vm15 = vcmp.eq.f32.partialorder %v336_v26, %v338_v31  ;;  %v344_v37 = vcvt.f32.s32 %v338_v31  ;;  %v330_v39 = vshll.u32 %v329_v36, 16 }
 0x5d2   :  { %v340_v35 = vsel %vm339_vm15, %v335_v34, inf }
 0x5d3   :  { %341 = vmin.xlane.f32.xlu0 %v340_v35  ;;  %v345_v42 = vshll.u32 %v344_v37, 16 }
 0x644   :  { %v327_v38 = vpop.xlane.xlu2 %326 }
 0x645   :  { %v328_v40 = vcvt.f32.s32 %v327_v38 }
 0x646   :  { %v342_v41 = vpop.xlane.xlu0 %341 }
 0x647   :  { %v331_v43 = vadd.s32 %v330_v39, %v328_v40  ;;  %v343_v44 = vcvt.f32.s32 %v342_v41 }
 0x649   :  { %v347_v45 = vand.u32 15, %v331_v43  ;;  %vm349_vm0 = vcmp.lt.s32.totalorder %v331_v43, 2139095040  ;;  %v346_v46 = vadd.s32 %v345_v42, %v343_v44  ;;  %vm355_vm1 = vcmp.eq.s32.totalorder %v315_v13, %v331_v43 }
 0x64a   :  { %v450_v47 = vsel %vm349_vm0, 1.0, %v471_v33  ;;  %v357_v48 = vsel %vm355_vm1, 2139095040, %v315_v13 }
 0x64b   :  { %v348_v49 = vand.u32 15, %v346_v46  ;;  %vm350_vm3 = vcmp.lt.s32.totalorder %v346_v46, 2139095040  ;;  %v359_v50 = vsel %vm106_vm6, %v357_v48, 2147483647  ;;  %vm356_vm4 = vcmp.eq.s32.totalorder %v316_v22, %v346_v46 }
 0x64c   :  { %v451_v51 = vsel %vm350_vm3, 1.0, %v471_v33  ;;  %v361_v52 = vshra.s32 %v359_v50, 16  ;;  %v358_v53 = vsel %vm356_vm4, 2139095040, %v316_v22  ;;  %v410_v55 = vsel %vm409_vm2, %v407_v14, %v347_v45 }
 0x64d   :  { %v374_v54 = vsel %vm106_vm6, %v358_v53, 2147483647  ;;  %v426_v56 = vsel %vm409_vm2, %v424_v15, %v450_v47  ;;  %v411_v57 = vsel %vm409_vm2, %v408_v19, %v348_v49  ;;  %v427_v60 = vsel %vm409_vm2, %v425_v20, %v451_v51 }
 0x64e   :  { %v363_v58 = vcvt.s32.f32 %v361_v52  ;;  %v376_v59 = vshra.s32 %v374_v54, 16  ;;  %v360_v62 = vand.u32 65535, %v359_v50  ;;  %v375_v63 = vand.u32 65535, %v374_v54 }
 0x64f   :  { %vm412_vm6 = vcmask 48128  }
 0x650   :  { %364 = vmin.xlane.f32.xlu1 %v363_v58  ;;  %v378_v61 = vcvt.s32.f32 %v376_v59  ;;  %v362_v1 = vcvt.s32.f32 %v360_v62  ;;  %v377_v4 = vcvt.s32.f32 %v375_v63 }
 0x652   :  { %379 = vmin.xlane.f32.xlu2 %v378_v61 }
 0x6c3   :  { %v365_v0 = vpop.xlane.xlu1 %364 }
 0x6c4   :  { %vm366_vm5 = vcmp.eq.f32.partialorder %v363_v58, %v365_v0  ;;  %v371_v6 = vcvt.f32.s32 %v365_v0 }
 0x6c5   :  { %v380_v2 = vpop.xlane.xlu2 %379  ;;  %v367_v3 = vsel %vm366_vm5, %v362_v1, inf }
 0x6c6   :  { %vm381_vm7 = vcmp.eq.f32.partialorder %v378_v61, %v380_v2  ;;  %368 = vmin.xlane.f32.xlu0 %v367_v3  ;;  %v386_v7 = vcvt.f32.s32 %v380_v2  ;;  %v372_v9 = vshll.u32 %v371_v6, 16 }
 0x6c7   :  { %v382_v5 = vsel %vm381_vm7, %v377_v4, inf }
 0x6c8   :  { %383 = vmin.xlane.f32.xlu1 %v382_v5  ;;  %v387_v12 = vshll.u32 %v386_v7, 16 }
 0x739   :  { %v369_v8 = vpop.xlane.xlu0 %368 }
 0x73a   :  { %v370_v10 = vcvt.f32.s32 %v369_v8 }
 0x73b   :  { %v384_v11 = vpop.xlane.xlu1 %383 }
 0x73c   :  { %v373_v13 = vadd.s32 %v372_v9, %v370_v10  ;;  %v385_v14 = vcvt.f32.s32 %v384_v11 }
 0x73e   :  { %v389_v15 = vand.u32 15, %v373_v13  ;;  %vm391_vm9 = vcmp.lt.s32.totalorder %v373_v13, 2139095040  ;;  %v388_v16 = vadd.s32 %v387_v12, %v385_v14 }
 0x73f   :  { %v452_v17 = vsel %vm391_vm9, 1.0, %v471_v33 }
 0x740   :  { %v413_v18 = vsel %vm412_vm6, %v410_v55, %v389_v15  ;;  %v428_v19 = vsel %vm412_vm6, %v426_v56, %v452_v17  ;;  %v390_v20 = vand.u32 15, %v388_v16  ;;  %vm392_vm10 = vcmp.lt.s32.totalorder %v388_v16, 2139095040 }
 0x741   :  { %416 = vst.msk [vmem:[%s582_s4] sm:$0xff] %vm415_vm8, %v413_v18  ;;  %v453_v21 = vsel %vm392_vm10, 1.0, %v471_v33 }
 0x742   :  { %430 = vst.msk [vmem:[%s583_s5] sm:$0xff] %vm415_vm8, %v428_v19  ;;  %v414_v22 = vsel %vm412_vm6, %v411_v57, %v390_v20  ;;  %v429_v23 = vsel %vm412_vm6, %v427_v60, %v453_v21 }
 0x743   :  { %417 = vst.msk [vmem:[%s582_s4 + $0x8] sm:$0xff] %vm415_vm8, %v414_v22 }
 0x744   :  { %431 = vst.msk [vmem:[%s583_s5 + $0x8] sm:$0xff] %vm415_vm8, %v429_v23 }

// kernel: dgcnn_forward.7
= control target key start
LH: loop header
LB: loop body
LE: loop exit
PB: predicated region body
PF: predicated region fallthrough
CT: control target
= control target key end

     0   :  { %v505_v1 = vmov 0   ;;  %vm52_vm0 = vcmask 261120   ;;  %vm88_vm1 = vcmask 130048   ;;  %v21_v38 = vlaneseq  ;;  %s639_s1 = inlined_call_operand.vmem [shape: bf16[32,16], index: 1, kind: input, shape index: {}]   ;;  %s640_s2 = inlined_call_operand.vmem [shape: s32[16,1], index: 2, kind: input, shape index: {}]   ;;  %s641_s0 = inlined_call_operand.vmem [shape: bf16[16,32], index: 0, kind: input, shape index: {}]   ;;  %s642_s3 = inlined_call_operand.vmem [shape: s32[1,16], index: 3, kind: input, shape index: {}]   ;;  %s643_s4 = inlined_call_operand.vmem [shape: s32[16,7], index: 4, kind: output, shape index: {0}]   ;;  %s644_s5 = inlined_call_operand.vmem [shape: f32[16,7], index: 5, kind: output, shape index: {1}]  }
   0x1   :  { %v498_v0 = vld [vmem:[%s639_s1 + $0x8] sm:$0xff]  ;;  %502 = vset.pattern.permute.xlu1 %v505_v1  ;;  %503 = vset.pattern.permute.xlu0 %v505_v1  ;;  %v110_v2 = vld [vmem:[%s640_s2] sm:$0xff]  ;;  %vm506_vm4 = vmmov 1  }
   0x2   :  { %v29_v3 = vld [vmem:[%s641_s0] sm:$0xff]   ;;  %62 = vmatpush.bf16.msra.mxu0 %v498_v0  ;;  %114 = vperm.xlu1 %502, %v110_v2   ;;  %v111_v10 = vld [vmem:[%s640_s2 + $0x8] sm:$0xff]  ;;  %v22_v42 = vand.u32 127, %v21_v38  ;;  %v24_v44 = vshrl.u32 %v21_v38, 7 }
   0x3   :  { %v497_v4 = vld [vmem:[%s639_s1] sm:$0xff]  ;;  %v70_v5 = vunpack.c.l.bf16 %v29_v3  ;;  %v71_v7 = vunpack.c.h.bf16 %v29_v3  ;;  %v33_v16 = vld [vmem:[%s639_s1 + $0x8] sm:$0xff]  }
   0x4   :  { %v496_v8 = vld [vmem:[%s641_s0] sm:$0xff]  ;;  %v74_v17 = vunpack.c.l.bf16 %v33_v16  ;;  %v75_v20 = vunpack.c.h.bf16 %v33_v16  ;;  %vm124_vm3 = vcmp.eq.s32.totalorder %v22_v42, %v24_v44  ;;  %v25_v54 = vadd.s32 8, %v24_v44 }
   0x5   :  { %v76_v6 = vmul.f32 %v70_v5, %v70_v5  ;;  %v77_v11 = vmul.f32 %v71_v7, %v71_v7  ;;  %v31_v13 = vld [vmem:[%s639_s1] sm:$0xff]  }
   0x6   :  { %63 = vmatpush.bf16.msra.mxu0 %v497_v4  ;;  %v72_v14 = vunpack.c.l.bf16 %v31_v13  ;;  %v73_v15 = vunpack.c.h.bf16 %v31_v13  ;;  %v86_v21 = vmul.f32 %v74_v17, %v74_v17  ;;  %v87_v25 = vmul.f32 %v75_v20, %v75_v20  ;;  %v504_v37 = vld [vmem:[%s642_s3] ss:$0 sm:$0xff] }
   0x7   :  { %v78_v9 = vsel %vm52_vm0, %v76_v6, 0.0  ;;  %v81_v12 = vsel %vm52_vm0, %v77_v11, 0.0  ;;  %vm125_vm8 = vcmp.eq.s32.totalorder %v22_v42, %v25_v54 }
   0x8   :  { %79 = vadd.xlane.f32.xlu0 %v78_v9  ;;  %v84_v18 = vmul.f32 %v72_v14, %v72_v14  ;;  %v85_v19 = vmul.f32 %v73_v15, %v73_v15  ;;  %v92_v26 = vsel %vm88_vm1, %v86_v21, 0.0  ;;  %v94_v28 = vsel %vm88_vm1, %v87_v25, 0.0 }
   0x9   :  { %481 = vmatmul.msk.bf16.vlgmr.msra.gmra.mxu0 %vm52_vm0, %v496_v8 }
   0xa   :  { %117 = vperm.xlu1 %502, %v111_v10   ;;  %v89_v22 = vsel %vm88_vm1, %v84_v18, 0.0  ;;  %v90_v23 = vsel %vm88_vm1, %v85_v19, 0.0 }
   0xb   :  { %v91_v24 = vadd.f32 %v90_v23, %v89_v22 }
   0xd   :  { %v93_v27 = vadd.f32 %v92_v26, %v91_v24 }
   0xf   :  { %v95_v29 = vadd.f32 %v94_v28, %v93_v27 }
  0x10   :  { %82 = vadd.xlane.f32.xlu0 %v81_v12 }
  0x11   :  { %v96_v30 = vrot.slane %v95_v29, 4 }
  0x13   :  { %v97_v31 = vadd.f32 %v96_v30, %v95_v29 }
  0x15   :  { %v98_v32 = vrot.slane %v97_v31, 2 }
  0x17   :  { %v99_v33 = vadd.f32 %v98_v32, %v97_v31 }
  0x19   :  { %v100_v34 = vrot.slane %v99_v33, 1 }
  0x1b   :  { %v101_v36 = vadd.f32 %v100_v34, %v99_v33 }
  0x74   :  { %v115_v39 = vpop.permute.xlu1 %114 }
  0x75   :  { %vm120_vm2 = vcmp.eq.s32.totalorder %v115_v39, %v504_v37 }
  0x76   :  { %vm122_vm5 = vmxor %vm120_vm2, %vm506_vm4 }
  0x77   :  { %vm126_vm6 = vmor %vm122_vm5, %vm124_vm3  ;;  %vm426_vm3 = vcmask 7168  }
  0x7b   :  { %v80_v35 = vpop.xlane.xlu0 %79 }
  0x7c   :  { %v102_v40 = vadd.f32 %v101_v36, %v80_v35  ;;  %v118_v52 = vpop.permute.xlu1 %117 }
  0x7d   :  { %vm121_vm7 = vcmp.eq.s32.totalorder %v118_v52, %v504_v37 }
  0x7e   :  { %vm123_vm9 = vmxor %vm121_vm7, %vm506_vm4 }
  0x7f   :  { %vm127_vm10 = vmor %vm123_vm9, %vm125_vm8 }
  0x83   :  { %v83_v46 = vpop.xlane.xlu0 %82 }
  0x84   :  { %v103_v49 = vadd.f32 %v101_v36, %v83_v46 }
  0x86   :  { %v65_v41 = vpop.f32.mrf.mxu0 }
  0x87   :  { %v104_v43 = vmul.f32 2.0, %v65_v41 }
  0x89   :  { %v106_v45 = vsub.f32 %v102_v40, %v104_v43 }
  0x8b   :  { %v108_v47 = vmax.f32 %v106_v45, 0.0  ;;  %v507_v45 = vmov 0.0  }
  0x8d   :  { %v130_v48 = vand.u32 4294967280, %v108_v47 }
  0x8e   :  { %v67_v50 = vpop.f32.mrf.mxu0 }
  0x8f   :  { %v132_v51 = vor.u32 %v130_v48, %v22_v42  ;;  %v105_v53 = vmul.f32 2.0, %v67_v50 }
  0x91   :  { %v107_v55 = vsub.f32 %v103_v49, %v105_v53  ;;  %v134_v56 = vsel %vm126_vm6, 2139095040, %v132_v51 }
  0x92   :  { %v136_v57 = vsel %vm88_vm1, %v134_v56, 2147483647 }
  0x93   :  { %v109_v58 = vmax.f32 %v107_v55, 0.0  ;;  %v138_v59 = vshra.s32 %v136_v57, 16  ;;  %v137_v3 = vand.u32 65535, %v136_v57 }
  0x95   :  { %v131_v60 = vand.u32 4294967280, %v109_v58  ;;  %v140_v61 = vcvt.s32.f32 %v138_v59  ;;  %v139_v5 = vcvt.s32.f32 %v137_v3 }
  0x97   :  { %v133_v62 = vor.u32 %v131_v60, %v22_v42  ;;  %141 = vmin.xlane.f32.xlu2 %v140_v61 }
  0x99   :  { %v135_v63 = vsel %vm127_vm10, 2139095040, %v133_v62 }
  0x9a   :  { %v151_v0 = vsel %vm88_vm1, %v135_v63, 2147483647 }
  0x9b   :  { %v153_v1 = vshra.s32 %v151_v0, 16  ;;  %v152_v7 = vand.u32 65535, %v151_v0 }
  0x9d   :  { %v155_v2 = vcvt.s32.f32 %v153_v1  ;;  %v154_v9 = vcvt.s32.f32 %v152_v7 }
  0x9f   :  { %156 = vmin.xlane.f32.xlu2 %v155_v2 }
 0x10a   :  { %v142_v4 = vpop.xlane.xlu2 %141 }
 0x10b   :  { %vm143_vm11 = vcmp.eq.f32.partialorder %v140_v61, %v142_v4  ;;  %v148_v11 = vcvt.f32.s32 %v142_v4 }
 0x10c   :  { %v144_v6 = vsel %vm143_vm11, %v139_v5, inf  ;;  %vm429_vm11 = vcmask 15360  }
 0x10d   :  { %145 = vmin.xlane.f32.xlu0 %v144_v6  ;;  %v149_v13 = vshll.u32 %v148_v11, 16 }
 0x112   :  { %v157_v8 = vpop.xlane.xlu2 %156 }
 0x113   :  { %vm158_vm12 = vcmp.eq.f32.partialorder %v155_v2, %v157_v8  ;;  %v163_v16 = vcvt.f32.s32 %v157_v8 }
 0x114   :  { %v159_v10 = vsel %vm158_vm12, %v154_v9, inf }
 0x115   :  { %160 = vmin.xlane.f32.xlu1 %v159_v10  ;;  %v164_v21 = vshll.u32 %v163_v16, 16 }
 0x180   :  { %v146_v12 = vpop.xlane.xlu0 %145 }
 0x181   :  { %v147_v14 = vcvt.f32.s32 %v146_v12 }
 0x183   :  { %v150_v15 = vadd.s32 %v149_v13, %v147_v14 }
 0x185   :  { %vm174_vm13 = vcmp.eq.s32.totalorder %v134_v56, %v150_v15  ;;  %vm168_vm2 = vcmp.lt.s32.totalorder %v150_v15, 2139095040  ;;  %v166_v42 = vand.u32 15, %v150_v15 }
 0x186   :  { %v176_v17 = vsel %vm174_vm13, 2139095040, %v134_v56  ;;  %v482_v46 = vsel %vm168_vm2, 1.0, %v507_v45 }
 0x187   :  { %v178_v18 = vsel %vm88_vm1, %v176_v17, 2147483647 }
 0x188   :  { %v161_v19 = vpop.xlane.xlu1 %160  ;;  %v180_v20 = vshra.s32 %v178_v18, 16  ;;  %v179_v29 = vand.u32 65535, %v178_v18 }
 0x189   :  { %v162_v22 = vcvt.f32.s32 %v161_v19 }
 0x18a   :  { %v182_v23 = vcvt.s32.f32 %v180_v20  ;;  %v181_v31 = vcvt.s32.f32 %v179_v29 }
 0x18b   :  { %v165_v24 = vadd.s32 %v164_v21, %v162_v22 }
 0x18c   :  { %183 = vmin.xlane.f32.xlu2 %v182_v23 }
 0x18d   :  { %vm175_vm14 = vcmp.eq.s32.totalorder %v135_v63, %v165_v24  ;;  %vm169_vm6 = vcmp.lt.s32.totalorder %v165_v24, 2139095040  ;;  %v167_v58 = vand.u32 15, %v165_v24 }
 0x18e   :  { %v177_v25 = vsel %vm175_vm14, 2139095040, %v135_v63  ;;  %v483_v60 = vsel %vm169_vm6, 1.0, %v507_v45 }
 0x18f   :  { %v193_v26 = vsel %vm88_vm1, %v177_v25, 2147483647 }
 0x190   :  { %v195_v27 = vshra.s32 %v193_v26, 16  ;;  %v194_v33 = vand.u32 65535, %v193_v26 }
 0x192   :  { %v197_v28 = vcvt.s32.f32 %v195_v27  ;;  %v196_v35 = vcvt.s32.f32 %v194_v33 }
 0x194   :  { %198 = vmin.xlane.f32.xlu0 %v197_v28 }
 0x1ff   :  { %v184_v30 = vpop.xlane.xlu2 %183 }
 0x200   :  { %vm185_vm15 = vcmp.eq.f32.partialorder %v182_v23, %v184_v30  ;;  %v190_v37 = vcvt.f32.s32 %v184_v30 }
 0x201   :  { %v186_v32 = vsel %vm185_vm15, %v181_v31, inf }
 0x202   :  { %187 = vmin.xlane.f32.xlu2 %v186_v32  ;;  %v191_v39 = vshll.u32 %v190_v37, 16 }
 0x207   :  { %v199_v34 = vpop.xlane.xlu0 %198 }
 0x208   :  { %vm200_vm0 = vcmp.eq.f32.partialorder %v197_v28, %v199_v34  ;;  %v205_v43 = vcvt.f32.s32 %v199_v34 }
 0x209   :  { %v201_v36 = vsel %vm200_vm0, %v196_v35, inf }
 0x20a   :  { %202 = vmin.xlane.f32.xlu0 %v201_v36  ;;  %v206_v54 = vshll.u32 %v205_v43, 16 }
 0x275   :  { %v188_v38 = vpop.xlane.xlu2 %187 }
 0x276   :  { %v189_v40 = vcvt.f32.s32 %v188_v38 }
 0x278   :  { %v192_v41 = vadd.s32 %v191_v39, %v189_v40 }
 0x27a   :  { %v208_v44 = vand.u32 15, %v192_v41  ;;  %vm210_vm4 = vcmp.lt.s32.totalorder %v192_v41, 2139095040  ;;  %vm216_vm5 = vcmp.eq.s32.totalorder %v176_v17, %v192_v41 }
 0x27b   :  { %v484_v47 = vsel %vm210_vm4, 1.0, %v507_v45  ;;  %v218_v48 = vsel %vm216_vm5, 2139095040, %v176_v17 }
 0x27c   :  { %v427_v49 = vsel %vm426_vm3, %v166_v42, %v208_v44  ;;  %v447_v50 = vsel %vm426_vm3, %v482_v46, %v484_v47  ;;  %v220_v51 = vsel %vm88_vm1, %v218_v48, 2147483647 }
 0x27d   :  { %v203_v52 = vpop.xlane.xlu0 %202  ;;  %v222_v53 = vshra.s32 %v220_v51, 16  ;;  %v221_v4 = vand.u32 65535, %v220_v51 }
 0x27e   :  { %v204_v55 = vcvt.f32.s32 %v203_v52 }
 0x27f   :  { %v224_v56 = vcvt.s32.f32 %v222_v53  ;;  %v223_v6 = vcvt.s32.f32 %v221_v4 }
 0x280   :  { %v207_v57 = vadd.s32 %v206_v54, %v204_v55 }
 0x281   :  { %225 = vmin.xlane.f32.xlu2 %v224_v56 }
 0x282   :  { %v209_v59 = vand.u32 15, %v207_v57  ;;  %vm211_vm7 = vcmp.lt.s32.totalorder %v207_v57, 2139095040  ;;  %vm217_vm8 = vcmp.eq.s32.totalorder %v177_v25, %v207_v57 }
 0x283   :  { %v485_v61 = vsel %vm211_vm7, 1.0, %v507_v45  ;;  %v219_v62 = vsel %vm217_vm8, 2139095040, %v177_v25 }
 0x284   :  { %v428_v63 = vsel %vm426_vm3, %v167_v58, %v209_v59  ;;  %v448_v0 = vsel %vm426_vm3, %v483_v60, %v485_v61  ;;  %v235_v1 = vsel %vm88_vm1, %v219_v62, 2147483647  ;;  %vm432_vm3 = vcmask 23552  }
 0x285   :  { %v237_v2 = vshra.s32 %v235_v1, 16  ;;  %v236_v8 = vand.u32 65535, %v235_v1 }
 0x287   :  { %v239_v3 = vcvt.s32.f32 %v237_v2  ;;  %v238_v10 = vcvt.s32.f32 %v236_v8 }
 0x289   :  { %240 = vmin.xlane.f32.xlu0 %v239_v3 }
 0x2f4   :  { %v226_v5 = vpop.xlane.xlu2 %225 }
 0x2f5   :  { %vm227_vm9 = vcmp.eq.f32.partialorder %v224_v56, %v226_v5  ;;  %v232_v12 = vcvt.f32.s32 %v226_v5 }
 0x2f6   :  { %v228_v7 = vsel %vm227_vm9, %v223_v6, inf }
 0x2f7   :  { %229 = vmin.xlane.f32.xlu2 %v228_v7  ;;  %v233_v14 = vshll.u32 %v232_v12, 16 }
 0x2fc   :  { %v241_v9 = vpop.xlane.xlu0 %240 }
 0x2fd   :  { %vm242_vm10 = vcmp.eq.f32.partialorder %v239_v3, %v241_v9  ;;  %v247_v17 = vcvt.f32.s32 %v241_v9 }
 0x2fe   :  { %v243_v11 = vsel %vm242_vm10, %v238_v10, inf  ;;  %vm435_vm10 = vcmask 31744  }
 0x2ff   :  { %244 = vmin.xlane.f32.xlu0 %v243_v11  ;;  %v248_v26 = vshll.u32 %v247_v17, 16 }
 0x36a   :  { %v230_v13 = vpop.xlane.xlu2 %229 }
 0x36b   :  { %v231_v15 = vcvt.f32.s32 %v230_v13 }
 0x36d   :  { %v234_v16 = vadd.s32 %v233_v14, %v231_v15 }
 0x36f   :  { %v250_v18 = vand.u32 15, %v234_v16  ;;  %vm252_vm12 = vcmp.lt.s32.totalorder %v234_v16, 2139095040  ;;  %vm258_vm13 = vcmp.eq.s32.totalorder %v218_v48, %v234_v16 }
 0x370   :  { %v486_v19 = vsel %vm252_vm12, 1.0, %v507_v45  ;;  %v260_v20 = vsel %vm258_vm13, 2139095040, %v218_v48 }
 0x371   :  { %v430_v21 = vsel %vm429_vm11, %v427_v49, %v250_v18  ;;  %v449_v22 = vsel %vm429_vm11, %v447_v50, %v486_v19  ;;  %v262_v23 = vsel %vm88_vm1, %v260_v20, 2147483647 }
 0x372   :  { %v245_v24 = vpop.xlane.xlu0 %244  ;;  %v264_v25 = vshra.s32 %v262_v23, 16  ;;  %v263_v38 = vand.u32 65535, %v262_v23 }
 0x373   :  { %v246_v27 = vcvt.f32.s32 %v245_v24 }
 0x374   :  { %v266_v28 = vcvt.s32.f32 %v264_v25  ;;  %v265_v40 = vcvt.s32.f32 %v263_v38 }
 0x375   :  { %v249_v29 = vadd.s32 %v248_v26, %v246_v27 }
 0x376   :  { %267 = vmin.xlane.f32.xlu2 %v266_v28 }
 0x377   :  { %v251_v30 = vand.u32 15, %v249_v29  ;;  %vm253_vm14 = vcmp.lt.s32.totalorder %v249_v29, 2139095040  ;;  %vm259_vm15 = vcmp.eq.s32.totalorder %v219_v62, %v249_v29 }
 0x378   :  { %v487_v31 = vsel %vm253_vm14, 1.0, %v507_v45  ;;  %v261_v32 = vsel %vm259_vm15, 2139095040, %v219_v62 }
 0x379   :  { %v431_v33 = vsel %vm429_vm11, %v428_v63, %v251_v30  ;;  %v450_v34 = vsel %vm429_vm11, %v448_v0, %v487_v31  ;;  %v277_v35 = vsel %vm88_vm1, %v261_v32, 2147483647 }
 0x37a   :  { %v279_v36 = vshra.s32 %v277_v35, 16  ;;  %v278_v42 = vand.u32 65535, %v277_v35 }
 0x37c   :  { %v281_v37 = vcvt.s32.f32 %v279_v36  ;;  %v280_v44 = vcvt.s32.f32 %v278_v42 }
 0x37e   :  { %282 = vmin.xlane.f32.xlu0 %v281_v37 }
 0x3e9   :  { %v268_v39 = vpop.xlane.xlu2 %267 }
 0x3ea   :  { %vm269_vm0 = vcmp.eq.f32.partialorder %v266_v28, %v268_v39  ;;  %v274_v47 = vcvt.f32.s32 %v268_v39 }
 0x3eb   :  { %v270_v41 = vsel %vm269_vm0, %v265_v40, inf }
 0x3ec   :  { %271 = vmin.xlane.f32.xlu2 %v270_v41  ;;  %v275_v49 = vshll.u32 %v274_v47, 16 }
 0x3f1   :  { %v283_v43 = vpop.xlane.xlu0 %282 }
 0x3f2   :  { %vm284_vm2 = vcmp.eq.f32.partialorder %v281_v37, %v283_v43  ;;  %v289_v52 = vcvt.f32.s32 %v283_v43 }
 0x3f3   :  { %v285_v46 = vsel %vm284_vm2, %v280_v44, inf  ;;  %vm438_vm2 = vcmask 39936  }
 0x3f4   :  { %286 = vmin.xlane.f32.xlu1 %v285_v46  ;;  %v290_v61 = vshll.u32 %v289_v52, 16 }
 0x45f   :  { %v272_v48 = vpop.xlane.xlu2 %271 }
 0x460   :  { %v273_v50 = vcvt.f32.s32 %v272_v48 }
 0x462   :  { %v276_v51 = vadd.s32 %v275_v49, %v273_v50 }
 0x464   :  { %v292_v53 = vand.u32 15, %v276_v51  ;;  %vm294_vm4 = vcmp.lt.s32.totalorder %v276_v51, 2139095040  ;;  %vm300_vm5 = vcmp.eq.s32.totalorder %v260_v20, %v276_v51 }
 0x465   :  { %v488_v54 = vsel %vm294_vm4, 1.0, %v507_v45  ;;  %v302_v55 = vsel %vm300_vm5, 2139095040, %v260_v20 }
 0x466   :  { %v433_v56 = vsel %vm432_vm3, %v430_v21, %v292_v53  ;;  %v451_v57 = vsel %vm432_vm3, %v449_v22, %v488_v54  ;;  %v304_v58 = vsel %vm88_vm1, %v302_v55, 2147483647 }
 0x467   :  { %v287_v59 = vpop.xlane.xlu1 %286  ;;  %v306_v60 = vshra.s32 %v304_v58, 16  ;;  %v305_v9 = vand.u32 65535, %v304_v58 }
 0x468   :  { %v288_v62 = vcvt.f32.s32 %v287_v59 }
 0x469   :  { %v308_v63 = vcvt.s32.f32 %v306_v60  ;;  %v307_v11 = vcvt.s32.f32 %v305_v9 }
 0x46a   :  { %v291_v0 = vadd.s32 %v290_v61, %v288_v62 }
 0x46b   :  { %309 = vmin.xlane.f32.xlu0 %v308_v63 }
 0x46c   :  { %v293_v1 = vand.u32 15, %v291_v0  ;;  %vm295_vm6 = vcmp.lt.s32.totalorder %v291_v0, 2139095040  ;;  %vm301_vm7 = vcmp.eq.s32.totalorder %v261_v32, %v291_v0 }
 0x46d   :  { %v489_v2 = vsel %vm295_vm6, 1.0, %v507_v45  ;;  %v303_v3 = vsel %vm301_vm7, 2139095040, %v261_v32 }
 0x46e   :  { %v434_v4 = vsel %vm432_vm3, %v431_v33, %v293_v1  ;;  %v452_v5 = vsel %vm432_vm3, %v450_v34, %v489_v2  ;;  %v319_v6 = vsel %vm88_vm1, %v303_v3, 2147483647 }
 0x46f   :  { %v321_v7 = vshra.s32 %v319_v6, 16  ;;  %v320_v13 = vand.u32 65535, %v319_v6 }
 0x471   :  { %v323_v8 = vcvt.s32.f32 %v321_v7  ;;  %v322_v15 = vcvt.s32.f32 %v320_v13 }
 0x473   :  { %324 = vmin.xlane.f32.xlu2 %v323_v8 }
 0x4de   :  { %v310_v10 = vpop.xlane.xlu0 %309 }
 0x4df   :  { %vm311_vm8 = vcmp.eq.f32.partialorder %v308_v63, %v310_v10  ;;  %v316_v17 = vcvt.f32.s32 %v310_v10 }
 0x4e0   :  { %v312_v12 = vsel %vm311_vm8, %v307_v11, inf }
 0x4e1   :  { %313 = vmin.xlane.f32.xlu1 %v312_v12  ;;  %v317_v19 = vshll.u32 %v316_v17, 16 }
 0x4e6   :  { %v325_v14 = vpop.xlane.xlu2 %324 }
 0x4e7   :  { %vm326_vm9 = vcmp.eq.f32.partialorder %v323_v8, %v325_v14  ;;  %v331_v22 = vcvt.f32.s32 %v325_v14 }
 0x4e8   :  { %v327_v16 = vsel %vm326_vm9, %v322_v15, inf  ;;  %vm444_vm9 = vcmask 56320  }
 0x4e9   :  { %328 = vmin.xlane.f32.xlu0 %v327_v16  ;;  %v332_v31 = vshll.u32 %v331_v22, 16 }
 0x554   :  { %v314_v18 = vpop.xlane.xlu1 %313 }
 0x555   :  { %v315_v20 = vcvt.f32.s32 %v314_v18 }
 0x557   :  { %v318_v21 = vadd.s32 %v317_v19, %v315_v20 }
 0x559   :  { %v334_v23 = vand.u32 15, %v318_v21  ;;  %vm336_vm11 = vcmp.lt.s32.totalorder %v318_v21, 2139095040  ;;  %vm342_vm12 = vcmp.eq.s32.totalorder %v302_v55, %v318_v21 }
 0x55a   :  { %v490_v24 = vsel %vm336_vm11, 1.0, %v507_v45  ;;  %v344_v25 = vsel %vm342_vm12, 2139095040, %v302_v55 }
 0x55b   :  { %v436_v26 = vsel %vm435_vm10, %v433_v56, %v334_v23  ;;  %v453_v27 = vsel %vm435_vm10, %v451_v57, %v490_v24  ;;  %v346_v28 = vsel %vm88_vm1, %v344_v25, 2147483647 }
 0x55c   :  { %v329_v29 = vpop.xlane.xlu0 %328  ;;  %v348_v30 = vshra.s32 %v346_v28, 16  ;;  %v347_v43 = vand.u32 65535, %v346_v28 }
 0x55d   :  { %v330_v32 = vcvt.f32.s32 %v329_v29 }
 0x55e   :  { %v350_v33 = vcvt.s32.f32 %v348_v30  ;;  %v349_v46 = vcvt.s32.f32 %v347_v43 }
 0x55f   :  { %v333_v34 = vadd.s32 %v332_v31, %v330_v32 }
 0x560   :  { %351 = vmin.xlane.f32.xlu2 %v350_v33 }
 0x561   :  { %v335_v35 = vand.u32 15, %v333_v34  ;;  %vm337_vm13 = vcmp.lt.s32.totalorder %v333_v34, 2139095040  ;;  %vm343_vm14 = vcmp.eq.s32.totalorder %v303_v3, %v333_v34 }
 0x562   :  { %v491_v36 = vsel %vm337_vm13, 1.0, %v507_v45  ;;  %v345_v37 = vsel %vm343_vm14, 2139095040, %v303_v3 }
 0x563   :  { %v437_v38 = vsel %vm435_vm10, %v434_v4, %v335_v35  ;;  %v454_v39 = vsel %vm435_vm10, %v452_v5, %v491_v36  ;;  %v361_v40 = vsel %vm88_vm1, %v345_v37, 2147483647 }
 0x564   :  { %v363_v41 = vshra.s32 %v361_v40, 16  ;;  %v362_v48 = vand.u32 65535, %v361_v40 }
 0x566   :  { %v365_v42 = vcvt.s32.f32 %v363_v41  ;;  %v364_v50 = vcvt.s32.f32 %v362_v48 }
 0x568   :  { %366 = vmin.xlane.f32.xlu1 %v365_v42 }
 0x5d3   :  { %v352_v44 = vpop.xlane.xlu2 %351 }
 0x5d4   :  { %vm353_vm15 = vcmp.eq.f32.partialorder %v350_v33, %v352_v44  ;;  %v358_v52 = vcvt.f32.s32 %v352_v44 }
 0x5d5   :  { %v354_v47 = vsel %vm353_vm15, %v349_v46, inf }
 0x5d6   :  { %355 = vmin.xlane.f32.xlu0 %v354_v47  ;;  %v359_v54 = vshll.u32 %v358_v52, 16 }
 0x5db   :  { %v367_v49 = vpop.xlane.xlu1 %366 }
 0x5dc   :  { %vm368_vm0 = vcmp.eq.f32.partialorder %v365_v42, %v367_v49  ;;  %v373_v57 = vcvt.f32.s32 %v367_v49 }
 0x5dd   :  { %v369_v51 = vsel %vm368_vm0, %v364_v50, inf }
 0x5de   :  { %370 = vmin.xlane.f32.xlu2 %v369_v51  ;;  %v374_v2 = vshll.u32 %v373_v57, 16 }
 0x649   :  { %v356_v53 = vpop.xlane.xlu0 %355 }
 0x64a   :  { %v357_v55 = vcvt.f32.s32 %v356_v53 }
 0x64c   :  { %v360_v56 = vadd.s32 %v359_v54, %v357_v55 }
 0x64e   :  { %v376_v58 = vand.u32 15, %v360_v56  ;;  %vm378_vm3 = vcmp.lt.s32.totalorder %v360_v56, 2139095040  ;;  %vm384_vm4 = vcmp.eq.s32.totalorder %v344_v25, %v360_v56 }
 0x64f   :  { %v492_v59 = vsel %vm378_vm3, 1.0, %v507_v45  ;;  %v386_v60 = vsel %vm384_vm4, 2139095040, %v344_v25 }
 0x650   :  { %v388_v61 = vsel %vm88_vm1, %v386_v60, 2147483647  ;;  %v439_v62 = vsel %vm438_vm2, %v436_v26, %v376_v58  ;;  %v455_v63 = vsel %vm438_vm2, %v453_v27, %v492_v59 }
 0x651   :  { %v371_v0 = vpop.xlane.xlu2 %370  ;;  %v390_v1 = vshra.s32 %v388_v61, 16  ;;  %v389_v14 = vand.u32 65535, %v388_v61 }
 0x652   :  { %v372_v3 = vcvt.f32.s32 %v371_v0 }
 0x653   :  { %v392_v4 = vcvt.s32.f32 %v390_v1  ;;  %v391_v16 = vcvt.s32.f32 %v389_v14 }
 0x654   :  { %v375_v5 = vadd.s32 %v374_v2, %v372_v3 }
 0x655   :  { %393 = vmin.xlane.f32.xlu1 %v392_v4 }
 0x656   :  { %v377_v6 = vand.u32 15, %v375_v5  ;;  %vm379_vm5 = vcmp.lt.s32.totalorder %v375_v5, 2139095040  ;;  %vm385_vm6 = vcmp.eq.s32.totalorder %v345_v37, %v375_v5 }
 0x657   :  { %v493_v7 = vsel %vm379_vm5, 1.0, %v507_v45  ;;  %v387_v8 = vsel %vm385_vm6, 2139095040, %v345_v37 }
 0x658   :  { %v403_v9 = vsel %vm88_vm1, %v387_v8, 2147483647  ;;  %v440_v10 = vsel %vm438_vm2, %v437_v38, %v377_v6  ;;  %v456_v11 = vsel %vm438_vm2, %v454_v39, %v493_v7  ;;  %vm441_vm1 = vcmask 48128  }
 0x659   :  { %v405_v12 = vshra.s32 %v403_v9, 16  ;;  %v404_v18 = vand.u32 65535, %v403_v9 }
 0x65b   :  { %v407_v13 = vcvt.s32.f32 %v405_v12  ;;  %v406_v20 = vcvt.s32.f32 %v404_v18 }
 0x65d   :  { %408 = vmin.xlane.f32.xlu0 %v407_v13 }
 0x6c8   :  { %v394_v15 = vpop.xlane.xlu1 %393 }
 0x6c9   :  { %vm395_vm7 = vcmp.eq.f32.partialorder %v392_v4, %v394_v15  ;;  %v400_v22 = vcvt.f32.s32 %v394_v15 }
 0x6ca   :  { %v396_v17 = vsel %vm395_vm7, %v391_v16, inf }
 0x6cb   :  { %397 = vmin.xlane.f32.xlu2 %v396_v17  ;;  %v401_v24 = vshll.u32 %v400_v22, 16 }
 0x6d0   :  { %v409_v19 = vpop.xlane.xlu0 %408 }
 0x6d1   :  { %vm410_vm8 = vcmp.eq.f32.partialorder %v407_v13, %v409_v19  ;;  %v415_v27 = vcvt.f32.s32 %v409_v19 }
 0x6d2   :  { %v411_v21 = vsel %vm410_vm8, %v406_v20, inf }
 0x6d3   :  { %412 = vmin.xlane.f32.xlu1 %v411_v21  ;;  %v416_v33 = vshll.u32 %v415_v27, 16 }
 0x73e   :  { %v398_v23 = vpop.xlane.xlu2 %397 }
 0x73f   :  { %v399_v25 = vcvt.f32.s32 %v398_v23 }
 0x741   :  { %v402_v26 = vadd.s32 %v401_v24, %v399_v25 }
 0x743   :  { %v418_v28 = vand.u32 15, %v402_v26  ;;  %vm420_vm10 = vcmp.lt.s32.totalorder %v402_v26, 2139095040 }
 0x744   :  { %v494_v29 = vsel %vm420_vm10, 1.0, %v507_v45 }
 0x745   :  { %v442_v30 = vsel %vm441_vm1, %v439_v62, %v418_v28  ;;  %v457_v31 = vsel %vm441_vm1, %v455_v63, %v494_v29 }
 0x746   :  { %445 = vst.msk [vmem:[%s643_s4] sm:$0xff] %vm444_vm9, %v442_v30  ;;  %v413_v32 = vpop.xlane.xlu1 %412 }
 0x747   :  { %459 = vst.msk [vmem:[%s644_s5] sm:$0xff] %vm444_vm9, %v457_v31  ;;  %v414_v34 = vcvt.f32.s32 %v413_v32 }
 0x749   :  { %v417_v35 = vadd.s32 %v416_v33, %v414_v34 }
 0x74b   :  { %v419_v36 = vand.u32 15, %v417_v35  ;;  %vm421_vm11 = vcmp.lt.s32.totalorder %v417_v35, 2139095040 }
 0x74c   :  { %v495_v37 = vsel %vm421_vm11, 1.0, %v507_v45 }
 0x74d   :  { %v443_v38 = vsel %vm441_vm1, %v440_v10, %v419_v36  ;;  %v458_v39 = vsel %vm441_vm1, %v456_v11, %v495_v37 }
 0x74e   :  { %446 = vst.msk [vmem:[%s643_s4 + $0x8] sm:$0xff] %vm444_vm9, %v443_v38 }
 0x74f   :  { %460 = vst.msk [vmem:[%s644_s5 + $0x8] sm:$0xff] %vm444_vm9, %v458_v39 }

// kernel: dgcnn_forward.6
= control target key start
LH: loop header
LB: loop body
LE: loop exit
PB: predicated region body
PF: predicated region fallthrough
CT: control target
= control target key end

     0   :  { %vm66_vm0 = vcmask 1041408   ;;  %vm62_vm1 = vcmask 31744   ;;  %vm267_vm2 = vcmask 261120   ;;  %s1161_s3 = inlined_call_operand.vmem [shape: bf16[4,32], index: 3, kind: input, shape index: {}]   ;;  %s1162_s4 = inlined_call_operand.vmem [shape: bf16[4,32], index: 4, kind: input, shape index: {}]   ;;  %s1163_s0 = inlined_call_operand.vmem [shape: bf16[16,4], index: 0, kind: input, shape index: {}]   ;;  %s1164_s1 = inlined_call_operand.vmem [shape: bf16[7,16,4], index: 1, kind: input, shape index: {}]   ;;  %s1165_s5 = inlined_call_operand.vmem [shape: f32[1,32], index: 5, kind: input, shape index: {}]   ;;  %s1166_s10 = inlined_call_operand.vmem [shape: bf16[4,32], index: 10, kind: input, shape index: {}]   ;;  %s1167_s11 = inlined_call_operand.vmem [shape: f32[1,32], index: 11, kind: input, shape index: {}]   ;;  %s1168_s6 = inlined_call_operand.vmem [shape: bf16[32,32], index: 6, kind: input, shape index: {}]   ;;  %s1169_s7 = inlined_call_operand.vmem [shape: f32[1,32], index: 7, kind: input, shape index: {}]   ;;  %s1170_s12 = inlined_call_operand.vmem [shape: bf16[32,32], index: 12, kind: input, shape index: {}]   ;;  %s1171_s13 = inlined_call_operand.vmem [shape: f32[1,32], index: 13, kind: input, shape index: {}]   ;;  %s1172_s8 = inlined_call_operand.vmem [shape: bf16[32,32], index: 8, kind: input, shape index: {}]   ;;  %s1173_s9 = inlined_call_operand.vmem [shape: f32[1,32], index: 9, kind: input, shape index: {}]   ;;  %s1174_s2 = inlined_call_operand.vmem [shape: f32[7,16,1], index: 2, kind: input, shape index: {}]   ;;  %s1175_s14 = inlined_call_operand.vmem [shape: bf16[32,32], index: 14, kind: input, shape index: {}]   ;;  %s1176_s15 = inlined_call_operand.vmem [shape: f32[1,32], index: 15, kind: input, shape index: {}]   ;;  %s1177_s16 = inlined_call_operand.vmem [shape: bf16[16,32], index: 16, kind: output, shape index: {}]  }
   0x1   :  { %1178 = sst [smem:[#allocation2_spill]] %s1161_s3  ;;  %v139_v1 = vld [vmem:[%s1162_s4] sm:$0x3]  ;;  %v817_v6 = vld [vmem:[%s1164_s1 + $0x8] sm:$0xff]  ;;  %v818_v7 = vld [vmem:[%s1164_s1 + $0x10] sm:$0xff] }
   0x2   :  { %s1179_s23 = sld [smem:[#allocation2_spill]]  ;;  %v162_v3 = vsel %vm66_vm0, %v139_v1, 0  ;;  %v815_v4 = vld [vmem:[%s1163_s0] sm:$0xff]  ;;  %v819_v8 = vld [vmem:[%s1164_s1 + $0x18] sm:$0xff]  ;;  %v821_v12 = vld [vmem:[%s1164_s1 + $0x28] sm:$0xff] }
   0x3   :  { %v816_v5 = vld [vmem:[%s1164_s1] sm:$0xff]  ;;  %171 = vmatpush.bf16.msra.mxu1 %v162_v3  ;;  %v822_v13 = vld [vmem:[%s1164_s1 + $0x30] sm:$0xff]  ;;  %v824_v14 = vld [vmem:[%s1168_s6 + $0x8] sm:$0xff] }
   0x4   :  { %v587_v9 = vld [vmem:[%s1166_s10] sm:$0x3]  ;;  %295 = vmatpush.bf16.msra.mxu2 %v824_v14  ;;  %v828_v59 = vld [vmem:[%s1170_s12 + $0x8] sm:$0xff] }
   0x5   :  { %v593_v10 = vsel %vm66_vm0, %v587_v9, 0  ;;  %v820_v11 = vld [vmem:[%s1164_s1 + $0x20] sm:$0xff] }
   0x6   :  { %747 = vmatmul.msk.bf16.vlgmr.msra.gmra.mxu1 %vm62_vm1, %v816_v5  ;;  %v823_v15 = vld [vmem:[%s1168_s6] sm:$0xff] }
   0x7   :  { %v984_v19 = vld [vmem:[%s1165_s5] ss:$0 sm:$0xff] }
   0x8   :  { %v56_v0 = vld [vmem:[%s1179_s23] sm:$0x3]  ;;  %296 = vmatpush.bf16.msra.mxu2 %v823_v15 }
   0x9   :  { %v68_v2 = vsel %vm66_vm0, %v56_v0, 0  ;;  %v836_v55 = vld [vmem:[%s1167_s11] ss:$0 sm:$0xff] }
   0xa   :  { %77 = vmatpush.bf16.msra.mxu0 %v68_v2  ;;  %v827_v0 = vld [vmem:[%s1170_s12] sm:$0xff] }
   0xd   :  { %706 = vmatmul.msk.bf16.vlgmr.msra.gmra.mxu0 %vm62_vm1, %v815_v4 }
   0xe   :  { %602 = vmatpush.bf16.msrb.mxu0 %v593_v10 }
  0x12   :  { %641 = vmatpush.bf16.msra.mxu0 %v828_v59 }
  0x16   :  { %748 = vmatmul.msk.bf16.gmra.mxu1 %vm62_vm1, %v817_v6  ;;  %642 = vmatpush.bf16.msra.mxu0 %v827_v0 }
  0x1d   :  { %796 = vmatmul.msk.bf16.vlgmr.msrb.gmra.mxu0 %vm62_vm1, %v815_v4 }
  0x26   :  { %749 = vmatmul.msk.bf16.gmra.mxu1 %vm62_vm1, %v818_v7 }
  0x36   :  { %750 = vmatmul.msk.bf16.gmra.mxu1 %vm62_vm1, %v819_v8 }
  0x46   :  { %751 = vmatmul.msk.bf16.gmra.mxu1 %vm62_vm1, %v820_v11 }
  0x56   :  { %752 = vmatmul.msk.bf16.gmra.mxu1 %vm62_vm1, %v821_v12 }
  0x66   :  { %753 = vmatmul.msk.bf16.gmra.mxu1 %vm62_vm1, %v822_v13 }
  0x83   :  { %v173_v17 = vpop.f32.mrf.mxu1 }
  0x8a   :  { %v978_v16 = vpop.f32.mrf.mxu0 }
  0x8b   :  { %v174_v18 = vadd.f32 %v173_v17, %v978_v16  ;;  %v175_v21 = vpop.f32.mrf.mxu1 }
  0x8d   :  { %v212_v22 = vadd.f32 %v984_v19, %v174_v18 }
  0x8f   :  { %v226_v25 = vmax.f32 %v212_v22, 0.0 }
  0x92   :  { %v986_v20 = vpop.f32.mrf.mxu0 }
  0x93   :  { %v176_v23 = vadd.f32 %v175_v21, %v986_v20  ;;  %v178_v28 = vpop.f32.mrf.mxu1 }
  0x94   :  { %v179_v29 = vadd.f32 %v178_v28, %v978_v16 }
  0x95   :  { %v213_v24 = vadd.f32 %v984_v19, %v176_v23 }
  0x96   :  { %v214_v31 = vadd.f32 %v984_v19, %v179_v29 }
  0x97   :  { %v227_v26 = vmax.f32 %v213_v24, 0.0 }
  0x98   :  { %v228_v34 = vmax.f32 %v214_v31, 0.0  ;;  %v826_v31 = vld [vmem:[%s1172_s8 + $0x8] sm:$0xff] }
  0x99   :  { %v240_v27 = vpack.c.bf16 %v227_v26, %v226_v25  ;;  %401 = vmatpush.bf16.msra.mxu3 %v826_v31 }
  0x9a   :  { %v604_v52 = vpop.f32.mrf.mxu0 }
  0x9b   :  { %762 = vmatmul.msk.bf16.vlgmr.msra.gmra.mxu2 %vm267_vm2, %v240_v27  ;;  %v180_v30 = vpop.f32.mrf.mxu1  ;;  %v605_v58 = vadd.f32 %v836_v55, %v604_v52 }
  0x9c   :  { %v181_v32 = vadd.f32 %v180_v30, %v986_v20 }
  0x9d   :  { %v609_v61 = vmax.f32 %v605_v58, 0.0 }
  0x9e   :  { %v215_v33 = vadd.f32 %v984_v19, %v181_v32 }
  0xa0   :  { %v229_v35 = vmax.f32 %v215_v33, 0.0 }
  0xa2   :  { %v241_v36 = vpack.c.bf16 %v229_v35, %v228_v34  ;;  %v606_v60 = vpop.f32.mrf.mxu0  ;;  %v1047_v34 = vld [vmem:[%s1169_s7] ss:$0 sm:$0xff] }
  0xa3   :  { %v183_v37 = vpop.f32.mrf.mxu1  ;;  %v607_v62 = vadd.f32 %v836_v55, %v606_v60 }
  0xa4   :  { %v184_v38 = vadd.f32 %v183_v37, %v978_v16  ;;  %v454_v37 = vld [vmem:[%s1174_s2 + $0x8] sm:$0xff] }
  0xa5   :  { %v610_v1 = vmax.f32 %v607_v62, 0.0  ;;  %vm474_vm4 = vcmp.gt.f32.partialorder %v454_v37, 0.5  ;;  %v788_v62 = vld [vmem:[%s1174_s2 + $0x30] sm:$0xff] }
  0xa6   :  { %v216_v40 = vadd.f32 %v984_v19, %v184_v38  ;;  %vm479_vm7 = vcmp.gt.f32.partialorder %v788_v62, 0.5 }
  0xa7   :  { %v611_v3 = vpack.c.bf16 %v610_v1, %v609_v61  ;;  %v838_v1 = vld [vmem:[%s1171_s13] ss:$0 sm:$0xff] }
  0xa8   :  { %v230_v43 = vmax.f32 %v216_v40, 0.0 }
  0xa9   :  { %805 = vmatmul.msk.bf16.vlgmr.msra.gmra.mxu0 %vm267_vm2, %v611_v3 }
  0xab   :  { %763 = vmatmul.msk.bf16.gmra.mxu2 %vm267_vm2, %v241_v36  ;;  %v185_v39 = vpop.f32.mrf.mxu1 }
  0xac   :  { %v186_v41 = vadd.f32 %v185_v39, %v986_v20 }
  0xae   :  { %v217_v42 = vadd.f32 %v984_v19, %v186_v41 }
  0xb0   :  { %v231_v44 = vmax.f32 %v217_v42, 0.0 }
  0xb2   :  { %v242_v45 = vpack.c.bf16 %v231_v44, %v230_v43  ;;  %v784_v44 = vld [vmem:[%s1174_s2 + $0x10] sm:$0xff] }
  0xb3   :  { %v188_v46 = vpop.f32.mrf.mxu1  ;;  %vm475_vm5 = vcmp.gt.f32.partialorder %v784_v44, 0.5 }
  0xb4   :  { %v189_v47 = vadd.f32 %v188_v46, %v978_v16 }
  0xb6   :  { %v218_v49 = vadd.f32 %v984_v19, %v189_v47 }
  0xb8   :  { %v232_v53 = vmax.f32 %v218_v49, 0.0 }
  0xbb   :  { %764 = vmatmul.msk.bf16.gmra.mxu2 %vm267_vm2, %v242_v45  ;;  %v190_v48 = vpop.f32.mrf.mxu1 }
  0xbc   :  { %v191_v50 = vadd.f32 %v190_v48, %v986_v20  ;;  %v785_v48 = vld [vmem:[%s1174_s2 + $0x18] sm:$0xff] }
  0xbd   :  { %vm476_vm6 = vcmp.gt.f32.partialorder %v785_v48, 0.5 }
  0xbe   :  { %v219_v51 = vadd.f32 %v984_v19, %v191_v50 }
  0xc0   :  { %v233_v54 = vmax.f32 %v219_v51, 0.0 }
  0xc2   :  { %v243_v56 = vpack.c.bf16 %v233_v54, %v232_v53 }
  0xc3   :  { %v193_v57 = vpop.f32.mrf.mxu1 }
  0xc4   :  { %v194_v63 = vadd.f32 %v193_v57, %v978_v16 }
  0xc6   :  { %v220_v4 = vadd.f32 %v984_v19, %v194_v63 }
  0xc8   :  { %v234_v7 = vmax.f32 %v220_v4, 0.0 }
  0xcb   :  { %765 = vmatmul.msk.bf16.gmra.mxu2 %vm267_vm2, %v243_v56  ;;  %v195_v2 = vpop.f32.mrf.mxu1 }
  0xcc   :  { %v196_v5 = vadd.f32 %v195_v2, %v986_v20 }
  0xce   :  { %v221_v6 = vadd.f32 %v984_v19, %v196_v5  ;;  %v786_v5 = vld [vmem:[%s1174_s2 + $0x20] sm:$0xff] }
  0xcf   :  { %vm477_vm8 = vcmp.gt.f32.partialorder %v786_v5, 0.5 }
  0xd0   :  { %v235_v8 = vmax.f32 %v221_v6, 0.0  ;;  %v789_v6 = vld [vmem:[%s1174_s2 + $0x38] sm:$0xff] }
  0xd1   :  { %vm480_vm9 = vcmp.gt.f32.partialorder %v789_v6, 0.5 }
  0xd2   :  { %v244_v9 = vpack.c.bf16 %v235_v8, %v234_v7  ;;  %v830_v8 = vld [vmem:[%s1175_s14 + $0x8] sm:$0xff] }
  0xd3   :  { %v198_v10 = vpop.f32.mrf.mxu1  ;;  %681 = vmatpush.bf16.msrb.mxu0 %v830_v8 }
  0xd4   :  { %v199_v11 = vadd.f32 %v198_v10, %v978_v16 }
  0xd6   :  { %v222_v13 = vadd.f32 %v984_v19, %v199_v11 }
  0xd8   :  { %v236_v17 = vmax.f32 %v222_v13, 0.0 }
  0xdb   :  { %766 = vmatmul.msk.bf16.gmra.mxu2 %vm267_vm2, %v244_v9  ;;  %v200_v12 = vpop.f32.mrf.mxu1 }
  0xdc   :  { %v201_v14 = vadd.f32 %v200_v12, %v986_v20 }
  0xde   :  { %v223_v15 = vadd.f32 %v984_v19, %v201_v14 }
  0xe0   :  { %v237_v18 = vmax.f32 %v223_v15, 0.0 }
  0xe2   :  { %v245_v21 = vpack.c.bf16 %v237_v18, %v236_v17  ;;  %v829_v18 = vld [vmem:[%s1175_s14] sm:$0xff] }
  0xe3   :  { %v203_v22 = vpop.f32.mrf.mxu1  ;;  %682 = vmatpush.bf16.msrb.mxu0 %v829_v18 }
  0xe4   :  { %v204_v23 = vadd.f32 %v203_v22, %v978_v16  ;;  %v825_v16 = vld [vmem:[%s1172_s8] sm:$0xff] }
  0xe5   :  { %402 = vmatpush.bf16.msra.mxu3 %v825_v16  ;;  %v795_v16 = vld [vmem:[%s1174_s2 + $0x68] sm:$0xff] }
  0xe6   :  { %v224_v25 = vadd.f32 %v984_v19, %v204_v23  ;;  %vm486_vm13 = vcmp.gt.f32.partialorder %v795_v16, 0.5 }
  0xe8   :  { %v238_v28 = vmax.f32 %v224_v25, 0.0  ;;  %v792_v25 = vld [vmem:[%s1174_s2 + $0x50] sm:$0xff] }
  0xe9   :  { %vm483_vm11 = vcmp.gt.f32.partialorder %v792_v25, 0.5 }
  0xeb   :  { %767 = vmatmul.msk.bf16.gmra.mxu2 %vm267_vm2, %v245_v21  ;;  %v205_v24 = vpop.f32.mrf.mxu1 }
  0xec   :  { %v206_v26 = vadd.f32 %v205_v24, %v986_v20  ;;  %v841_v20 = vmov 0   ;;  %v787_v24 = vld [vmem:[%s1174_s2 + $0x28] sm:$0xff] }
  0xed   :  { %832 = vset.pattern.permute.xlu0 %v841_v20  ;;  %833 = vset.pattern.permute.xlu1 %v841_v20  ;;  %v488_v39 = vsel %vm474_vm4, 1, %v841_v20  ;;  %v489_v45 = vsel %vm475_vm5, 1, %v841_v20  ;;  %v490_v50 = vsel %vm476_vm6, 1, %v841_v20  ;;  %v493_v63 = vsel %vm479_vm7, 1, %v841_v20 }
  0xee   :  { %v225_v27 = vadd.f32 %v984_v19, %v206_v26  ;;  %v453_v19 = vld [vmem:[%s1174_s2] sm:$0xff]  ;;  %834 = vset.pattern.permute.xlu2 %v841_v20  ;;  %508 = vperm.xlu1 %833, %v489_v45   ;;  %v491_v9 = vsel %vm477_vm8, 1, %v841_v20  ;;  %v494_v10 = vsel %vm480_vm9, 1, %v841_v20  ;;  %v791_v26 = vld [vmem:[%s1174_s2 + $0x48] sm:$0xff]  ;;  %vm478_vm10 = vcmp.gt.f32.partialorder %v787_v24, 0.5 }
  0xef   :  { %vm473_vm3 = vcmp.gt.f32.partialorder %v453_v19, 0.5  ;;  %514 = vperm.xlu2 %834, %v491_v9   ;;  %vm482_vm12 = vcmp.gt.f32.partialorder %v791_v26, 0.5 }
  0xf0   :  { %v239_v29 = vmax.f32 %v225_v27, 0.0  ;;  %v487_v33 = vsel %vm473_vm3, 1, %v841_v20  ;;  %v492_v27 = vsel %vm478_vm10, 1, %v841_v20 }
  0xf1   :  { %502 = vperm.xlu0 %832, %v487_v33   ;;  %v500_v33 = vsel %vm486_vm13, 1, %v841_v20 }
  0xf2   :  { %v246_v30 = vpack.c.bf16 %v239_v29, %v238_v28  ;;  %v497_v28 = vsel %vm483_vm11, 1, %v841_v20  ;;  %v496_v29 = vsel %vm482_vm12, 1, %v841_v20 }
  0xf6   :  { %511 = vperm.xlu1 %833, %v490_v50  }
  0xf7   :  { %517 = vperm.xlu2 %834, %v492_v27  }
  0xf9   :  { %505 = vperm.xlu0 %832, %v488_v39   ;;  %v790_v39 = vld [vmem:[%s1174_s2 + $0x40] sm:$0xff] }
  0xfa   :  { %vm481_vm15 = vcmp.gt.f32.partialorder %v790_v39, 0.5 }
  0xfb   :  { %768 = vmatmul.msk.bf16.gmra.mxu2 %vm267_vm2, %v246_v30 }
  0xfe   :  { %523 = vperm.xlu1 %833, %v494_v10  }
 0x101   :  { %520 = vperm.xlu0 %832, %v493_v63  }
 0x106   :  { %532 = vperm.xlu1 %833, %v497_v28  }
 0x109   :  { %529 = vperm.xlu0 %832, %v496_v29  }
 0x10e   :  { %541 = vperm.xlu1 %833, %v500_v33  }
 0x11e   :  { %v298_v32 = vpop.f32.mrf.mxu2 }
 0x11f   :  { %v299_v35 = vadd.f32 %v1047_v34, %v298_v32  ;;  %v794_v32 = vld [vmem:[%s1174_s2 + $0x60] sm:$0xff] }
 0x120   :  { %vm485_vm14 = vcmp.gt.f32.partialorder %v794_v32, 0.5 }
 0x121   :  { %v333_v40 = vmax.f32 %v299_v35, 0.0  ;;  %v499_v35 = vsel %vm485_vm14, 1, %v841_v20 }
 0x122   :  { %538 = vperm.xlu0 %832, %v499_v35  }
 0x126   :  { %v300_v36 = vpop.f32.mrf.mxu2  ;;  %v644_v0 = vpop.f32.mrf.mxu0 }
 0x127   :  { %v301_v38 = vadd.f32 %v1047_v34, %v300_v36  ;;  %v645_v4 = vadd.f32 %v838_v1, %v644_v0 }
 0x129   :  { %v334_v41 = vmax.f32 %v301_v38, 0.0  ;;  %v649_v14 = vmax.f32 %v645_v4, 0.0 }
 0x12b   :  { %v347_v42 = vpack.c.bf16 %v334_v41, %v333_v40  ;;  %v495_v41 = vsel %vm481_vm15, 1, %v841_v20  ;;  %vm695_vm15 = vcmask 257024  }
 0x12c   :  { %526 = vperm.xlu2 %834, %v495_v41  }
 0x12d   :  { %777 = vmatmul.msk.bf16.vlgmr.msra.gmra.mxu3 %vm267_vm2, %v347_v42  ;;  %v793_v42 = vld [vmem:[%s1174_s2 + $0x58] sm:$0xff] }
 0x12e   :  { %v303_v43 = vpop.f32.mrf.mxu2  ;;  %v646_v13 = vpop.f32.mrf.mxu0  ;;  %vm484_vm0 = vcmp.gt.f32.partialorder %v793_v42, 0.5 }
 0x12f   :  { %v304_v46 = vadd.f32 %v1047_v34, %v303_v43  ;;  %v647_v15 = vadd.f32 %v838_v1, %v646_v13  ;;  %v498_v44 = vsel %vm484_vm0, 1, %v841_v20 }
 0x131   :  { %v335_v51 = vmax.f32 %v304_v46, 0.0  ;;  %v650_v21 = vmax.f32 %v647_v15, 0.0 }
 0x133   :  { %v651_v23 = vpack.c.bf16 %v650_v21, %v649_v14 }
 0x134   :  { %535 = vperm.xlu2 %834, %v498_v44  }
 0x135   :  { %814 = vmatmul.msk.bf16.vlgmr.msrb.gmra.mxu0 %vm267_vm2, %v651_v23 }
 0x136   :  { %v305_v47 = vpop.f32.mrf.mxu2 }
 0x137   :  { %v306_v49 = vadd.f32 %v1047_v34, %v305_v47 }
 0x139   :  { %v336_v52 = vmax.f32 %v306_v49, 0.0 }
 0x13b   :  { %v348_v53 = vpack.c.bf16 %v336_v52, %v335_v51 }
 0x13d   :  { %778 = vmatmul.msk.bf16.gmra.mxu3 %vm267_vm2, %v348_v53 }
 0x13e   :  { %v308_v54 = vpop.f32.mrf.mxu2 }
 0x13f   :  { %v309_v55 = vadd.f32 %v1047_v34, %v308_v54 }
 0x141   :  { %v337_v58 = vmax.f32 %v309_v55, 0.0 }
 0x146   :  { %v310_v56 = vpop.f32.mrf.mxu2 }
 0x147   :  { %v311_v57 = vadd.f32 %v1047_v34, %v310_v56 }
 0x149   :  { %v338_v59 = vmax.f32 %v311_v57, 0.0 }
 0x14b   :  { %v349_v60 = vpack.c.bf16 %v338_v59, %v337_v58  ;;  %v1136_v58 = vld [vmem:[%s1173_s9] ss:$0 sm:$0xff] }
 0x14d   :  { %779 = vmatmul.msk.bf16.gmra.mxu3 %vm267_vm2, %v349_v60 }
 0x14e   :  { %v313_v61 = vpop.f32.mrf.mxu2 }
 0x14f   :  { %v314_v2 = vadd.f32 %v1047_v34, %v313_v61 }
 0x151   :  { %v339_v11 = vmax.f32 %v314_v2, 0.0 }
 0x156   :  { %v315_v3 = vpop.f32.mrf.mxu2 }
 0x157   :  { %v316_v7 = vadd.f32 %v1047_v34, %v315_v3 }
 0x159   :  { %v340_v12 = vmax.f32 %v316_v7, 0.0 }
 0x15b   :  { %v350_v17 = vpack.c.bf16 %v340_v12, %v339_v11 }
 0x15d   :  { %780 = vmatmul.msk.bf16.gmra.mxu3 %vm267_vm2, %v350_v17 }
 0x15e   :  { %v318_v22 = vpop.f32.mrf.mxu2 }
 0x15f   :  { %v319_v30 = vadd.f32 %v1047_v34, %v318_v22  ;;  %v515_v22 = vpop.permute.xlu2 %514 }
 0x160   :  { %v509_v61 = vpop.permute.xlu1 %508  ;;  %vm547_vm5 = vcmp.eq.s32.totalorder %v515_v22, 1 }
 0x161   :  { %v341_v36 = vmax.f32 %v319_v30, 0.0  ;;  %vm545_vm3 = vcmp.eq.s32.totalorder %v509_v61, 1 }
 0x163   :  { %v503_v60 = vpop.permute.xlu0 %502 }
 0x164   :  { %vm543_vm1 = vcmp.eq.s32.totalorder %v503_v60, 1 }
 0x166   :  { %v320_v31 = vpop.f32.mrf.mxu2 }
 0x167   :  { %v321_v19 = vadd.f32 %v1047_v34, %v320_v31  ;;  %v518_v26 = vpop.permute.xlu2 %517 }
 0x168   :  { %v512_v6 = vpop.permute.xlu1 %511  ;;  %vm548_vm8 = vcmp.eq.s32.totalorder %v518_v26, 1 }
 0x169   :  { %v342_v37 = vmax.f32 %v321_v19, 0.0  ;;  %vm546_vm4 = vcmp.eq.s32.totalorder %v512_v6, 1 }
 0x16b   :  { %v351_v38 = vpack.c.bf16 %v342_v37, %v341_v36  ;;  %v506_v5 = vpop.permute.xlu0 %505 }
 0x16d   :  { %781 = vmatmul.msk.bf16.gmra.mxu3 %vm267_vm2, %v351_v38 }
 0x16e   :  { %v323_v40 = vpop.f32.mrf.mxu2 }
 0x16f   :  { %v324_v43 = vadd.f32 %v1047_v34, %v323_v40 }
 0x170   :  { %v524_v29 = vpop.permute.xlu1 %523 }
 0x171   :  { %v343_v47 = vmax.f32 %v324_v43, 0.0  ;;  %vm550_vm10 = vcmp.eq.s32.totalorder %v524_v29, 1 }
 0x173   :  { %v521_v24 = vpop.permute.xlu0 %520 }
 0x174   :  { %vm549_vm6 = vcmp.eq.s32.totalorder %v521_v24, 1 }
 0x176   :  { %v325_v45 = vpop.f32.mrf.mxu2 }
 0x177   :  { %v326_v46 = vadd.f32 %v1047_v34, %v325_v45 }
 0x178   :  { %v533_v45 = vpop.permute.xlu1 %532 }
 0x179   :  { %v344_v48 = vmax.f32 %v326_v46, 0.0  ;;  %vm553_vm9 = vcmp.eq.s32.totalorder %v533_v45, 1 }
 0x17b   :  { %v352_v49 = vpack.c.bf16 %v344_v48, %v343_v47  ;;  %v530_v16 = vpop.permute.xlu0 %529 }
 0x17c   :  { %vm552_vm11 = vcmp.eq.s32.totalorder %v530_v16, 1 }
 0x17d   :  { %782 = vmatmul.msk.bf16.gmra.mxu3 %vm267_vm2, %v352_v49  ;;  %v840_v49 = vld [vmem:[%s1176_s15] ss:$0 sm:$0xff] }
 0x17e   :  { %v328_v50 = vpop.f32.mrf.mxu2 }
 0x17f   :  { %v329_v51 = vadd.f32 %v1047_v34, %v328_v50 }
 0x181   :  { %v345_v54 = vmax.f32 %v329_v51, 0.0 }
 0x186   :  { %v330_v52 = vpop.f32.mrf.mxu2  ;;  %v527_v33 = vpop.permute.xlu2 %526 }
 0x187   :  { %v331_v53 = vadd.f32 %v1047_v34, %v330_v52  ;;  %vm551_vm7 = vcmp.eq.s32.totalorder %v527_v33, 1 }
 0x189   :  { %v346_v55 = vmax.f32 %v331_v53, 0.0 }
 0x18b   :  { %v353_v56 = vpack.c.bf16 %v346_v55, %v345_v54 }
 0x18d   :  { %783 = vmatmul.msk.bf16.gmra.mxu3 %vm267_vm2, %v353_v56  ;;  %vm544_vm2 = vcmp.eq.s32.totalorder %v506_v5, 1 }
 0x194   :  { %v539_v52 = vpop.permute.xlu0 %538 }
 0x195   :  { %vm555_vm12 = vcmp.eq.s32.totalorder %v539_v52, 1 }
 0x1b0   :  { %v404_v20 = vpop.f32.mrf.mxu3 }
 0x1b1   :  { %v405_v59 = vadd.f32 %v1136_v58, %v404_v20 }
 0x1b2   :  { %v684_v47 = vpop.f32.mrf.mxu0 }
 0x1b3   :  { %v439_v63 = vmax.f32 %v405_v59, 0.0  ;;  %v685_v60 = vadd.f32 %v840_v49, %v684_v47 }
 0x1b5   :  { %v557_v1 = vsel %vm543_vm1, %v439_v63, -1e+09  ;;  %v536_v63 = vpop.permute.xlu2 %535  ;;  %v689_v5 = vmax.f32 %v685_v60, 0.0 }
 0x1b6   :  { %vm554_vm13 = vcmp.eq.s32.totalorder %v536_v63, 1 }
 0x1b8   :  { %v406_v57 = vpop.f32.mrf.mxu3 }
 0x1b9   :  { %v407_v2 = vadd.f32 %v1136_v58, %v406_v57 }
 0x1bb   :  { %v440_v8 = vmax.f32 %v407_v2, 0.0 }
 0x1bd   :  { %v558_v11 = vsel %vm544_vm2, %v440_v8, -1e+09  ;;  %v686_v8 = vpop.f32.mrf.mxu0 }
 0x1c0   :  { %v409_v62 = vpop.f32.mrf.mxu3 }
 0x1c1   :  { %v410_v34 = vadd.f32 %v1136_v58, %v409_v62 }
 0x1c3   :  { %v441_v0 = vmax.f32 %v410_v34, 0.0 }
 0x1c5   :  { %v559_v3 = vsel %vm545_vm3, %v441_v0, -1e+09 }
 0x1c6   :  { %v571_v4 = vmax.f32 %v557_v1, %v559_v3 }
 0x1c8   :  { %v411_v7 = vpop.f32.mrf.mxu3 }
 0x1c9   :  { %v412_v9 = vadd.f32 %v1136_v58, %v411_v7  ;;  %v542_v7 = vpop.permute.xlu1 %541 }
 0x1ca   :  { %vm556_vm0 = vcmp.eq.s32.totalorder %v542_v7, 1 }
 0x1cb   :  { %v442_v10 = vmax.f32 %v412_v9, 0.0 }
 0x1cd   :  { %v560_v12 = vsel %vm546_vm4, %v442_v10, -1e+09 }
 0x1ce   :  { %v572_v13 = vmax.f32 %v558_v11, %v560_v12 }
 0x1d0   :  { %v414_v14 = vpop.f32.mrf.mxu3 }
 0x1d1   :  { %v415_v27 = vadd.f32 %v1136_v58, %v414_v14 }
 0x1d3   :  { %v443_v30 = vmax.f32 %v415_v27, 0.0 }
 0x1d5   :  { %v561_v36 = vsel %vm547_vm5, %v443_v30, -1e+09 }
 0x1d6   :  { %v573_v42 = vmax.f32 %v571_v4, %v561_v36 }
 0x1d8   :  { %v416_v15 = vpop.f32.mrf.mxu3 }
 0x1d9   :  { %v417_v37 = vadd.f32 %v1136_v58, %v416_v15 }
 0x1db   :  { %v444_v43 = vmax.f32 %v417_v37, 0.0 }
 0x1dd   :  { %v562_v20 = vsel %vm548_vm8, %v444_v43, -1e+09 }
 0x1de   :  { %v574_v1 = vmax.f32 %v572_v13, %v562_v20 }
 0x1e0   :  { %v419_v17 = vpop.f32.mrf.mxu3 }
 0x1e1   :  { %v420_v28 = vadd.f32 %v1136_v58, %v419_v17  ;;  %v687_v17 = vadd.f32 %v840_v49, %v686_v8 }
 0x1e3   :  { %v445_v19 = vmax.f32 %v420_v28, 0.0 }
 0x1e5   :  { %v563_v39 = vsel %vm549_vm6, %v445_v19, -1e+09 }
 0x1e6   :  { %v575_v48 = vmax.f32 %v573_v42, %v563_v39 }
 0x1e8   :  { %v421_v18 = vpop.f32.mrf.mxu3 }
 0x1e9   :  { %v422_v40 = vadd.f32 %v1136_v58, %v421_v18 }
 0x1eb   :  { %v446_v51 = vmax.f32 %v422_v40, 0.0 }
 0x1ed   :  { %v564_v62 = vsel %vm550_vm10, %v446_v51, -1e+09 }
 0x1ee   :  { %v576_v4 = vmax.f32 %v574_v1, %v564_v62 }
 0x1f0   :  { %v424_v21 = vpop.f32.mrf.mxu3 }
 0x1f1   :  { %v425_v31 = vadd.f32 %v1136_v58, %v424_v21 }
 0x1f3   :  { %v447_v38 = vmax.f32 %v425_v31, 0.0 }
 0x1f5   :  { %v565_v44 = vsel %vm551_vm7, %v447_v38, -1e+09 }
 0x1f6   :  { %v577_v56 = vmax.f32 %v575_v48, %v565_v44 }
 0x1f8   :  { %v426_v23 = vpop.f32.mrf.mxu3 }
 0x1f9   :  { %v427_v46 = vadd.f32 %v1136_v58, %v426_v23  ;;  %v690_v23 = vmax.f32 %v687_v17, 0.0 }
 0x1fb   :  { %v448_v57 = vmax.f32 %v427_v46, 0.0 }
 0x1fd   :  { %v566_v3 = vsel %vm552_vm11, %v448_v57, -1e+09 }
 0x1fe   :  { %v578_v12 = vmax.f32 %v576_v4, %v566_v3 }
 0x200   :  { %v429_v25 = vpop.f32.mrf.mxu3 }
 0x201   :  { %v430_v35 = vadd.f32 %v1136_v58, %v429_v25 }
 0x203   :  { %v449_v41 = vmax.f32 %v430_v35, 0.0 }
 0x205   :  { %v567_v53 = vsel %vm553_vm9, %v449_v41, -1e+09 }
 0x206   :  { %v579_v61 = vmax.f32 %v577_v56, %v567_v53 }
 0x208   :  { %v431_v32 = vpop.f32.mrf.mxu3 }
 0x209   :  { %v432_v54 = vadd.f32 %v1136_v58, %v431_v32 }
 0x20b   :  { %v450_v34 = vmax.f32 %v432_v54, 0.0 }
 0x20d   :  { %v568_v9 = vsel %vm554_vm13, %v450_v34, -1e+09 }
 0x20e   :  { %v580_v13 = vmax.f32 %v578_v12, %v568_v9 }
 0x210   :  { %v434_v50 = vpop.f32.mrf.mxu3 }
 0x211   :  { %v435_v55 = vadd.f32 %v1136_v58, %v434_v50 }
 0x213   :  { %v451_v59 = vmax.f32 %v435_v55, 0.0 }
 0x215   :  { %v569_v0 = vsel %vm555_vm12, %v451_v59, -1e+09 }
 0x216   :  { %v581_v2 = vmax.f32 %v579_v61, %v569_v0 }
 0x218   :  { %vm583_vm14 = vcmp.le.f32.partialorder %v581_v2, -5e+08  ;;  %v436_v6 = vpop.f32.mrf.mxu3 }
 0x219   :  { %v585_v10 = vsel %vm583_vm14, 0.0, %v581_v2  ;;  %v437_v11 = vadd.f32 %v1136_v58, %v436_v6 }
 0x21a   :  { %v691_v14 = vadd.f32 %v689_v5, %v585_v10 }
 0x21b   :  { %v452_v15 = vmax.f32 %v437_v11, 0.0 }
 0x21c   :  { %v693_v18 = vpack.c.bf16 %v691_v14, %v691_v14 }
 0x21d   :  { %v570_v21 = vsel %vm556_vm0, %v452_v15, -1e+09 }
 0x21e   :  { %696 = vst.msk [vmem:[%s1177_s16] sm:$0xf] %vm695_vm15, %v693_v18  ;;  %v582_v22 = vmax.f32 %v580_v13, %v570_v21 }
 0x220   :  { %vm584_vm1 = vcmp.le.f32.partialorder %v582_v22, -5e+08 }
 0x221   :  { %v586_v24 = vsel %vm584_vm1, 0.0, %v582_v22 }
 0x222   :  { %v692_v25 = vadd.f32 %v690_v23, %v586_v24 }
 0x224   :  { %v694_v26 = vpack.c.bf16 %v692_v25, %v692_v25 }
 0x226   :  { %697 = vst.msk [vmem:[%s1177_s16 + $0x4] sm:$0xf] %vm695_vm15, %v694_v26 }

// kernel: dgcnn_forward.9
= control target key start
LH: loop header
LB: loop body
LE: loop exit
PB: predicated region body
PF: predicated region fallthrough
CT: control target
= control target key end

     0   :  { %vm21_vm0 = vcmask 130048   ;;  %v92_v3 = vmov 0.0   ;;  %s121_s0 = inlined_call_operand.vmem [shape: f32[2,16], index: 0, kind: input, shape index: {}]   ;;  %s122_s1 = inlined_call_operand.vmem [shape: f32[16,128], index: 1, kind: input, shape index: {}]   ;;  %s123_s2 = inlined_call_operand.hbm [shape: f32[2,128], index: 2, kind: output, shape index: {}]  }
   0x1   :  { %v20_v0 = vld [vmem:[%s122_s1 + $0x8] sm:$0xff]  ;;  %v19_v1 = vld [vmem:[%s122_s1] sm:$0xff]  ;;  %16 = vst [vmem:[#allocation2] sm:$0x3] %v92_v3 }
   0x2   :  { %v18_v2 = vld [vmem:[%s121_s0] sm:$0x3]  ;;  %39 = vmatpush.msra.mxu0 %v20_v0 }
   0x3   :  { %7 = vsyncpa [#allocation3], 0  ;;  %s93_s15 = smov [#allocation2]   ;;  %s54_s19 = sshll.u32 %s123_s2, 4  ;;  %s55_s19 = int_to_ptr.hbm [resolvable:$true] %s54_s19 }
   0x4   :  { %40 = vmatpush.msra.mxu0 %v19_v1  ;;  %s52_s16 = sshll.u32 %s93_s15, 4  ;;  %s53_s16 = int_to_ptr.vmem [resolvable:$true] %s52_s16 }
   0x5   :  { %63 = vmatmul.msk.f32.vlgmr.msra.gmra.mxu0 %vm21_vm0, %v18_v2 }
   0x8   :  { %v17_v4 = vld [vmem:[#allocation2] sm:$0x3] }
  0x82   :  { %v42_v5 = vpop.f32.mrf.mxu0 }
  0x83   :  { %v45_v6 = vadd.f32 %v42_v5, %v17_v4 }
  0x85   :  { %46 = vst [vmem:[#allocation2] sm:$0x3] %v45_v6 }
  0x86   :  { %57 = dma.vmem_to_hbm [thread:$0]  %s53_s16, 32, %s55_s19, [#allocation3]  }
  0x87   :  { %90 = dma.done.wait [#allocation3], 32  }
  0x88   :  { %91 = vsyncadd [#allocation3], 4294967264 }
  0x89   :  { %62 = vsyncpa [#allocation3], 1 }

// kernel: dgcnn_forward.8
= control target key start
LH: loop header
LB: loop body
LE: loop exit
PB: predicated region body
PF: predicated region fallthrough
CT: control target
= control target key end

     0   :  { %vm77_vm0 = vcmask 261120   ;;  %vm306_vm1 = vcmask 523264   ;;  %s1387_s3 = inlined_call_operand.vmem [shape: bf16[32,64], index: 3, kind: input, shape index: {}]   ;;  %s1388_s4 = inlined_call_operand.vmem [shape: bf16[32,64], index: 4, kind: input, shape index: {}]   ;;  %s1389_s0 = inlined_call_operand.vmem [shape: bf16[16,32], index: 0, kind: input, shape index: {}]   ;;  %s1390_s1 = inlined_call_operand.vmem [shape: bf16[7,16,32], index: 1, kind: input, shape index: {}]   ;;  %s1391_s5 = inlined_call_operand.vmem [shape: f32[1,64], index: 5, kind: input, shape index: {}]   ;;  %s1392_s6 = inlined_call_operand.vmem [shape: bf16[64,64], index: 6, kind: input, shape index: {}]   ;;  %s1393_s7 = inlined_call_operand.vmem [shape: f32[1,64], index: 7, kind: input, shape index: {}]   ;;  %s1394_s8 = inlined_call_operand.vmem [shape: bf16[64,128], index: 8, kind: input, shape index: {}]   ;;  %s1395_s10 = inlined_call_operand.vmem [shape: bf16[32,64], index: 10, kind: input, shape index: {}]   ;;  %s1396_s9 = inlined_call_operand.vmem [shape: f32[1,128], index: 9, kind: input, shape index: {}]   ;;  %s1397_s2 = inlined_call_operand.vmem [shape: f32[7,16,1], index: 2, kind: input, shape index: {}]   ;;  %s1398_s11 = inlined_call_operand.vmem [shape: f32[1,64], index: 11, kind: input, shape index: {}]   ;;  %s1399_s12 = inlined_call_operand.vmem [shape: bf16[64,64], index: 12, kind: input, shape index: {}]   ;;  %s1400_s13 = inlined_call_operand.vmem [shape: f32[1,64], index: 13, kind: input, shape index: {}]   ;;  %s1401_s15 = inlined_call_operand.vmem [shape: f32[1,128], index: 15, kind: input, shape index: {}]   ;;  %s1402_s14 = inlined_call_operand.vmem [shape: bf16[64,128], index: 14, kind: input, shape index: {}]   ;;  %s1403_s16 = inlined_call_operand.vmem [shape: f32[16,128], index: 16, kind: output, shape index: {}]  }
   0x1   :  { %1405 = sst [smem:[#allocation2_spill]] %s1387_s3  ;;  %v978_v1 = vld [vmem:[%s1388_s4 + $0x8] sm:$0xff]  ;;  %v977_v3 = vld [vmem:[%s1388_s4] sm:$0xff]  ;;  %v972_v7 = vld [vmem:[%s1390_s1 + $0x10] sm:$0xff] }
   0x2   :  { %s1406_s23 = sld [smem:[#allocation2_spill]]  ;;  %193 = vmatpush.bf16.msra.mxu1 %v978_v1  ;;  %v1116_v4 = vld [vmem:[%s1389_s0] sm:$0xff]  ;;  %v971_v6 = vld [vmem:[%s1390_s1 + $0x8] sm:$0xff]  ;;  %v973_v8 = vld [vmem:[%s1390_s1 + $0x18] sm:$0xff] }
   0x3   :  { %v970_v5 = vld [vmem:[%s1390_s1] sm:$0xff]  ;;  %v975_v10 = vld [vmem:[%s1390_s1 + $0x28] sm:$0xff]  ;;  %v976_v11 = vld [vmem:[%s1390_s1 + $0x30] sm:$0xff] }
   0x4   :  { %v974_v9 = vld [vmem:[%s1390_s1 + $0x20] sm:$0xff]  ;;  %v982_v12 = vld [vmem:[%s1392_s6 + $0x18] sm:$0xff]  ;;  %v981_v13 = vld [vmem:[%s1392_s6 + $0x10] sm:$0xff] }
   0x5   :  { %997 = vmatpush.bf16.msra.mxu2 %v982_v12  ;;  %v980_v14 = vld [vmem:[%s1392_s6 + $0x8] sm:$0xff]  ;;  %v979_v15 = vld [vmem:[%s1392_s6] sm:$0xff]  ;;  %v986_v1 = vld [vmem:[%s1394_s8 + $0x18] sm:$0xff] }
   0x6   :  { %194 = vmatpush.bf16.msra.mxu1 %v977_v3  ;;  %v1166_v19 = vld [vmem:[%s1391_s5] ss:$0 sm:$0xff]  ;;  %1001 = vmatpush.bf16.msra.mxu3 %v986_v1 }
   0x8   :  { %v969_v0 = vld [vmem:[%s1406_s23 + $0x8] sm:$0xff]  ;;  %v968_v2 = vld [vmem:[%s1406_s23] sm:$0xff] }
   0x9   :  { %87 = vmatpush.bf16.msra.mxu0 %v969_v0  ;;  %859 = vmatmul.msk.bf16.vlgmr.msra.gmra.mxu1 %vm77_vm0, %v970_v5 }
   0xa   :  { %998 = vmatpush.bf16.msra.mxu2 %v981_v13 }
   0xd   :  { %88 = vmatpush.bf16.msra.mxu0 %v968_v2 }
   0xe   :  { %999 = vmatpush.bf16.msra.mxu2 %v980_v14 }
  0x10   :  { %810 = vmatmul.msk.bf16.vlgmr.msra.gmra.mxu0 %vm77_vm0, %v1116_v4 }
  0x11   :  { %332 = vmatpush.bf16.msrb.mxu0 %v982_v12 }
  0x12   :  { %1000 = vmatpush.bf16.msra.mxu2 %v979_v15 }
  0x15   :  { %333 = vmatpush.bf16.msrb.mxu0 %v981_v13 }
  0x19   :  { %860 = vmatmul.msk.bf16.gmra.mxu1 %vm77_vm0, %v971_v6  ;;  %334 = vmatpush.bf16.msrb.mxu0 %v980_v14 }
  0x1d   :  { %335 = vmatpush.bf16.msrb.mxu0 %v979_v15 }
  0x21   :  { %454 = vmatpush.bf16.msra.mxu0 %v986_v1 }
  0x29   :  { %861 = vmatmul.msk.bf16.gmra.mxu1 %vm77_vm0, %v972_v7 }
  0x39   :  { %862 = vmatmul.msk.bf16.gmra.mxu1 %vm77_vm0, %v973_v8 }
  0x49   :  { %863 = vmatmul.msk.bf16.gmra.mxu1 %vm77_vm0, %v974_v9 }
  0x59   :  { %864 = vmatmul.msk.bf16.gmra.mxu1 %vm77_vm0, %v975_v10 }
  0x69   :  { %865 = vmatmul.msk.bf16.gmra.mxu1 %vm77_vm0, %v976_v11 }
  0x86   :  { %v196_v17 = vpop.f32.mrf.mxu1 }
  0x8d   :  { %v1160_v16 = vpop.f32.mrf.mxu0 }
  0x8e   :  { %v197_v18 = vadd.f32 %v196_v17, %v1160_v16  ;;  %v198_v21 = vpop.f32.mrf.mxu1 }
  0x90   :  { %v235_v22 = vadd.f32 %v1166_v19, %v197_v18 }
  0x92   :  { %v249_v25 = vmax.f32 %v235_v22, 0.0 }
  0x95   :  { %v1168_v20 = vpop.f32.mrf.mxu0 }
  0x96   :  { %v199_v23 = vadd.f32 %v198_v21, %v1168_v20  ;;  %v201_v28 = vpop.f32.mrf.mxu1 }
  0x97   :  { %v202_v29 = vadd.f32 %v201_v28, %v1160_v16 }
  0x98   :  { %v236_v24 = vadd.f32 %v1166_v19, %v199_v23  ;;  %v985_v23 = vld [vmem:[%s1394_s8 + $0x10] sm:$0xff] }
  0x99   :  { %v237_v31 = vadd.f32 %v1166_v19, %v202_v29  ;;  %455 = vmatpush.bf16.msra.mxu0 %v985_v23  ;;  %1002 = vmatpush.bf16.msra.mxu3 %v985_v23  ;;  %v509_v29 = vld [vmem:[%s1397_s2 + $0x8] sm:$0xff] }
  0x9a   :  { %v250_v26 = vmax.f32 %v236_v24, 0.0  ;;  %v987_v24 = vld [vmem:[%s1395_s10] sm:$0xff]  ;;  %vm529_vm3 = vcmp.gt.f32.partialorder %v509_v29, 0.5 }
  0x9b   :  { %v251_v34 = vmax.f32 %v237_v31, 0.0 }
  0x9c   :  { %v263_v27 = vpack.c.bf16 %v250_v26, %v249_v25  ;;  %v508_v25 = vld [vmem:[%s1397_s2] sm:$0xff]  ;;  %v1015_v26 = vmov 0  }
  0x9d   :  { %1006 = vset.pattern.permute.xlu0 %v1015_v26  ;;  %vm528_vm2 = vcmp.gt.f32.partialorder %v508_v25, 0.5  ;;  %1007 = vset.pattern.permute.xlu1 %v1015_v26  ;;  %v543_v31 = vsel %vm529_vm3, 1, %v1015_v26 }
  0x9e   :  { %882 = vmatmul.msk.bf16.vlgmr.msrb.gmra.mxu0 %vm306_vm1, %v263_v27  ;;  %v203_v30 = vpop.f32.mrf.mxu1  ;;  %v542_v27 = vsel %vm528_vm2, 1, %v1015_v26  ;;  %1008 = vset.pattern.permute.xlu2 %v1015_v26 }
  0x9f   :  { %v204_v32 = vadd.f32 %v203_v30, %v1168_v20  ;;  %557 = vperm.xlu0 %1006, %v542_v27   ;;  %v1235_v30 = vld [vmem:[%s1393_s7] ss:$0 sm:$0xff] }
  0xa1   :  { %v238_v33 = vadd.f32 %v1166_v19, %v204_v32 }
  0xa3   :  { %v252_v35 = vmax.f32 %v238_v33, 0.0 }
  0xa5   :  { %v264_v36 = vpack.c.bf16 %v252_v35, %v251_v34 }
  0xa6   :  { %v206_v37 = vpop.f32.mrf.mxu1 }
  0xa7   :  { %883 = vmatmul.msk.bf16.vlgmr.msra.gmra.mxu2 %vm306_vm1, %v264_v36  ;;  %v207_v38 = vadd.f32 %v206_v37, %v1160_v16  ;;  %560 = vperm.xlu0 %1006, %v543_v31  }
  0xa9   :  { %v239_v40 = vadd.f32 %v1166_v19, %v207_v38 }
  0xab   :  { %v253_v43 = vmax.f32 %v239_v40, 0.0 }
  0xae   :  { %v208_v39 = vpop.f32.mrf.mxu1 }
  0xaf   :  { %v209_v41 = vadd.f32 %v208_v39, %v1168_v20  ;;  %v912_v39 = vld [vmem:[%s1397_s2 + $0x10] sm:$0xff] }
  0xb0   :  { %vm530_vm4 = vcmp.gt.f32.partialorder %v912_v39, 0.5 }
  0xb1   :  { %v240_v42 = vadd.f32 %v1166_v19, %v209_v41  ;;  %v544_v40 = vsel %vm530_vm4, 1, %v1015_v26 }
  0xb2   :  { %563 = vperm.xlu1 %1007, %v544_v40   ;;  %v921_v40 = vld [vmem:[%s1397_s2 + $0x58] sm:$0xff] }
  0xb3   :  { %v254_v44 = vmax.f32 %v240_v42, 0.0  ;;  %vm539_vm15 = vcmp.gt.f32.partialorder %v921_v40, 0.5 }
  0xb5   :  { %v265_v45 = vpack.c.bf16 %v254_v44, %v253_v43  ;;  %v913_v43 = vld [vmem:[%s1397_s2 + $0x18] sm:$0xff] }
  0xb6   :  { %v211_v46 = vpop.f32.mrf.mxu1  ;;  %vm531_vm5 = vcmp.gt.f32.partialorder %v913_v43, 0.5  ;;  %v990_v43 = vld [vmem:[%s1399_s12 + $0x8] sm:$0xff] }
  0xb7   :  { %884 = vmatmul.msk.bf16.gmra.mxu2 %vm306_vm1, %v265_v45  ;;  %v212_v47 = vadd.f32 %v211_v46, %v1160_v16  ;;  %v545_v45 = vsel %vm531_vm5, 1, %v1015_v26 }
  0xb9   :  { %v241_v49 = vadd.f32 %v1166_v19, %v212_v47 }
  0xba   :  { %566 = vperm.xlu1 %1007, %v545_v45  }
  0xbb   :  { %v255_v52 = vmax.f32 %v241_v49, 0.0 }
  0xbe   :  { %v213_v48 = vpop.f32.mrf.mxu1 }
  0xbf   :  { %v214_v50 = vadd.f32 %v213_v48, %v1168_v20 }
  0xc1   :  { %v242_v51 = vadd.f32 %v1166_v19, %v214_v50 }
  0xc3   :  { %v256_v53 = vmax.f32 %v242_v51, 0.0 }
  0xc5   :  { %v266_v54 = vpack.c.bf16 %v256_v53, %v255_v52 }
  0xc6   :  { %v216_v55 = vpop.f32.mrf.mxu1 }
  0xc7   :  { %885 = vmatmul.msk.bf16.gmra.mxu2 %vm306_vm1, %v266_v54  ;;  %v217_v56 = vadd.f32 %v216_v55, %v1160_v16 }
  0xc9   :  { %v243_v58 = vadd.f32 %v1166_v19, %v217_v56  ;;  %v916_v56 = vld [vmem:[%s1397_s2 + $0x30] sm:$0xff] }
  0xca   :  { %vm534_vm6 = vcmp.gt.f32.partialorder %v916_v56, 0.5 }
  0xcb   :  { %v257_v61 = vmax.f32 %v243_v58, 0.0 }
  0xce   :  { %v218_v57 = vpop.f32.mrf.mxu1 }
  0xcf   :  { %v219_v59 = vadd.f32 %v218_v57, %v1168_v20  ;;  %v548_v57 = vsel %vm534_vm6, 1, %v1015_v26 }
  0xd0   :  { %575 = vperm.xlu0 %1006, %v548_v57  }
  0xd1   :  { %v244_v60 = vadd.f32 %v1166_v19, %v219_v59 }
  0xd3   :  { %v258_v62 = vmax.f32 %v244_v60, 0.0  ;;  %v914_v60 = vld [vmem:[%s1397_s2 + $0x20] sm:$0xff] }
  0xd4   :  { %vm532_vm7 = vcmp.gt.f32.partialorder %v914_v60, 0.5 }
  0xd5   :  { %v267_v63 = vpack.c.bf16 %v258_v62, %v257_v61  ;;  %v917_v61 = vld [vmem:[%s1397_s2 + $0x38] sm:$0xff] }
  0xd6   :  { %v221_v0 = vpop.f32.mrf.mxu1  ;;  %vm535_vm8 = vcmp.gt.f32.partialorder %v917_v61, 0.5 }
  0xd7   :  { %886 = vmatmul.msk.bf16.gmra.mxu2 %vm306_vm1, %v267_v63  ;;  %v222_v2 = vadd.f32 %v221_v0, %v1160_v16  ;;  %v546_v63 = vsel %vm532_vm7, 1, %v1015_v26  ;;  %v549_v0 = vsel %vm535_vm8, 1, %v1015_v26 }
  0xd8   :  { %569 = vperm.xlu2 %1008, %v546_v63   ;;  %578 = vperm.xlu1 %1007, %v549_v0  }
  0xd9   :  { %v245_v5 = vadd.f32 %v1166_v19, %v222_v2 }
  0xdb   :  { %v259_v8 = vmax.f32 %v245_v5, 0.0 }
  0xde   :  { %v223_v3 = vpop.f32.mrf.mxu1 }
  0xdf   :  { %v224_v6 = vadd.f32 %v223_v3, %v1168_v20 }
  0xe1   :  { %v246_v7 = vadd.f32 %v1166_v19, %v224_v6  ;;  %v915_v6 = vld [vmem:[%s1397_s2 + $0x28] sm:$0xff] }
  0xe2   :  { %vm533_vm9 = vcmp.gt.f32.partialorder %v915_v6, 0.5 }
  0xe3   :  { %v260_v9 = vmax.f32 %v246_v7, 0.0  ;;  %v547_v7 = vsel %vm533_vm9, 1, %v1015_v26 }
  0xe4   :  { %572 = vperm.xlu2 %1008, %v547_v7  }
  0xe5   :  { %v268_v10 = vpack.c.bf16 %v260_v9, %v259_v8 }
  0xe6   :  { %v226_v11 = vpop.f32.mrf.mxu1 }
  0xe7   :  { %887 = vmatmul.msk.bf16.gmra.mxu2 %vm306_vm1, %v268_v10  ;;  %v227_v12 = vadd.f32 %v226_v11, %v1160_v16  ;;  %v984_v16 = vld [vmem:[%s1394_s8 + $0x8] sm:$0xff] }
  0xe8   :  { %456 = vmatpush.bf16.msra.mxu0 %v984_v16  ;;  %1003 = vmatpush.bf16.msra.mxu3 %v984_v16  ;;  %v919_v10 = vld [vmem:[%s1397_s2 + $0x48] sm:$0xff] }
  0xe9   :  { %v247_v14 = vadd.f32 %v1166_v19, %v227_v12  ;;  %vm537_vm10 = vcmp.gt.f32.partialorder %v919_v10, 0.5 }
  0xea   :  { %v551_v12 = vsel %vm537_vm10, 1, %v1015_v26 }
  0xeb   :  { %v261_v18 = vmax.f32 %v247_v14, 0.0  ;;  %584 = vperm.xlu0 %1006, %v551_v12   ;;  %v995_v12 = vld [vmem:[%s1402_s14 + $0x10] sm:$0xff] }
  0xee   :  { %v228_v13 = vpop.f32.mrf.mxu1 }
  0xef   :  { %v229_v15 = vadd.f32 %v228_v13, %v1168_v20  ;;  %v988_v20 = vld [vmem:[%s1395_s10 + $0x8] sm:$0xff] }
  0xf1   :  { %v248_v17 = vadd.f32 %v1166_v19, %v229_v15  ;;  %v983_v19 = vld [vmem:[%s1394_s8] sm:$0xff] }
  0xf2   :  { %457 = vmatpush.bf16.msra.mxu0 %v983_v19  ;;  %1004 = vmatpush.bf16.msra.mxu3 %v983_v19 }
  0xf3   :  { %v262_v21 = vmax.f32 %v248_v17, 0.0  ;;  %v920_v17 = vld [vmem:[%s1397_s2 + $0x50] sm:$0xff] }
  0xf4   :  { %vm538_vm11 = vcmp.gt.f32.partialorder %v920_v17, 0.5  ;;  %v1013_v17 = vld [vmem:[%s1400_s13] ss:$0 sm:$0xff] }
  0xf5   :  { %v269_v22 = vpack.c.bf16 %v262_v21, %v261_v18  ;;  %v918_v18 = vld [vmem:[%s1397_s2 + $0x40] sm:$0xff]  ;;  %v552_v23 = vsel %vm538_vm11, 1, %v1015_v26 }
  0xf6   :  { %668 = vmatpush.bf16.msrb.mxu0 %v988_v20  ;;  %v922_v21 = vld [vmem:[%s1397_s2 + $0x60] sm:$0xff]  ;;  %vm536_vm12 = vcmp.gt.f32.partialorder %v918_v18, 0.5  ;;  %587 = vperm.xlu1 %1007, %v552_v23  }
  0xf7   :  { %888 = vmatmul.msk.bf16.gmra.mxu2 %vm306_vm1, %v269_v22  ;;  %vm540_vm13 = vcmp.gt.f32.partialorder %v922_v21, 0.5  ;;  %v550_v16 = vsel %vm536_vm12, 1, %v1015_v26 }
  0xf8   :  { %v554_v19 = vsel %vm540_vm13, 1, %v1015_v26  ;;  %581 = vperm.xlu2 %1008, %v550_v16  }
  0xf9   :  { %593 = vperm.xlu0 %1006, %v554_v19  }
  0xfa   :  { %669 = vmatpush.bf16.msrb.mxu0 %v987_v24 }
 0x11b   :  { %v337_v28 = vpop.f32.mrf.mxu0 }
 0x11c   :  { %v338_v32 = vadd.f32 %v1235_v30, %v337_v28 }
 0x11e   :  { %v372_v35 = vmax.f32 %v338_v32, 0.0 }
 0x123   :  { %v339_v33 = vpop.f32.mrf.mxu0 }
 0x124   :  { %v340_v34 = vadd.f32 %v1235_v30, %v339_v33 }
 0x126   :  { %v373_v36 = vmax.f32 %v340_v34, 0.0  ;;  %v923_v34 = vld [vmem:[%s1397_s2 + $0x68] sm:$0xff] }
 0x127   :  { %vm541_vm14 = vcmp.gt.f32.partialorder %v923_v34, 0.5 }
 0x128   :  { %v386_v37 = vpack.c.bf16 %v373_v36, %v372_v35  ;;  %v555_v36 = vsel %vm541_vm14, 1, %v1015_v26 }
 0x129   :  { %596 = vperm.xlu1 %1007, %v555_v36  }
 0x12a   :  { %905 = vmatmul.msk.bf16.vlgmr.msra.gmra.mxu0 %vm306_vm1, %v386_v37  ;;  %v342_v38 = vpop.f32.mrf.mxu2 }
 0x12b   :  { %v343_v41 = vadd.f32 %v1235_v30, %v342_v38 }
 0x12d   :  { %v374_v46 = vmax.f32 %v343_v41, 0.0  ;;  %v553_v41 = vsel %vm539_vm15, 1, %v1015_v26  ;;  %v989_v26 = vld [vmem:[%s1399_s12] sm:$0xff] }
 0x12e   :  { %590 = vperm.xlu2 %1008, %v553_v41  }
 0x132   :  { %v344_v42 = vpop.f32.mrf.mxu2 }
 0x133   :  { %v345_v44 = vadd.f32 %v1235_v30, %v344_v42  ;;  %v991_v42 = vld [vmem:[%s1399_s12 + $0x10] sm:$0xff] }
 0x135   :  { %v375_v47 = vmax.f32 %v345_v44, 0.0 }
 0x137   :  { %v387_v48 = vpack.c.bf16 %v375_v47, %v374_v46  ;;  %v1012_v47 = vld [vmem:[%s1398_s11] ss:$0 sm:$0xff] }
 0x139   :  { %906 = vmatmul.msk.bf16.vlgmr.msra.gmra.mxu3 %vm306_vm1, %v387_v48  ;;  %v1327_v48 = vld [vmem:[%s1396_s9] ss:$0 sm:$0xff] }
 0x13a   :  { %932 = vmatmul.msk.bf16.vlgmr.msrb.gmra.mxu0 %vm77_vm0, %v1116_v4  ;;  %v347_v49 = vpop.f32.mrf.mxu2 }
 0x13b   :  { %v348_v50 = vadd.f32 %v1235_v30, %v347_v49 }
 0x13d   :  { %v376_v53 = vmax.f32 %v348_v50, 0.0 }
 0x142   :  { %v349_v51 = vpop.f32.mrf.mxu2 }
 0x143   :  { %v350_v52 = vadd.f32 %v1235_v30, %v349_v51 }
 0x145   :  { %v377_v54 = vmax.f32 %v350_v52, 0.0  ;;  %v558_v52 = vpop.permute.xlu0 %557 }
 0x146   :  { %vm598_vm0 = vcmp.eq.s32.totalorder %v558_v52, 1 }
 0x147   :  { %v388_v55 = vpack.c.bf16 %v377_v54, %v376_v53  ;;  %v564_v54 = vpop.permute.xlu1 %563 }
 0x148   :  { %vm600_vm2 = vcmp.eq.s32.totalorder %v564_v54, 1 }
 0x149   :  { %907 = vmatmul.msk.bf16.gmra.mxu3 %vm306_vm1, %v388_v55 }
 0x14a   :  { %v352_v4 = vpop.f32.mrf.mxu2 }
 0x14b   :  { %v353_v58 = vadd.f32 %v1235_v30, %v352_v4 }
 0x14d   :  { %v378_v1 = vmax.f32 %v353_v58, 0.0 }
 0x152   :  { %v354_v59 = vpop.f32.mrf.mxu2 }
 0x153   :  { %v355_v62 = vadd.f32 %v1235_v30, %v354_v59 }
 0x155   :  { %v379_v2 = vmax.f32 %v355_v62, 0.0 }
 0x157   :  { %v389_v3 = vpack.c.bf16 %v379_v2, %v378_v1  ;;  %v561_v1 = vpop.permute.xlu0 %560  ;;  %v567_v2 = vpop.permute.xlu1 %566 }
 0x158   :  { %vm599_vm3 = vcmp.eq.s32.totalorder %v561_v1, 1  ;;  %vm601_vm4 = vcmp.eq.s32.totalorder %v567_v2, 1 }
 0x159   :  { %908 = vmatmul.msk.bf16.gmra.mxu3 %vm306_vm1, %v389_v3 }
 0x15a   :  { %v357_v5 = vpop.f32.mrf.mxu2 }
 0x15b   :  { %v358_v8 = vadd.f32 %v1235_v30, %v357_v5 }
 0x15d   :  { %v380_v13 = vmax.f32 %v358_v8, 0.0 }
 0x15f   :  { %v576_v34 = vpop.permute.xlu0 %575 }
 0x160   :  { %vm604_vm5 = vcmp.eq.s32.totalorder %v576_v34, 1 }
 0x162   :  { %v359_v9 = vpop.f32.mrf.mxu2 }
 0x163   :  { %v360_v11 = vadd.f32 %v1235_v30, %v359_v9 }
 0x165   :  { %v381_v14 = vmax.f32 %v360_v11, 0.0  ;;  %v996_v11 = vld [vmem:[%s1402_s14 + $0x18] sm:$0xff] }
 0x167   :  { %v390_v15 = vpack.c.bf16 %v381_v14, %v380_v13  ;;  %v994_v13 = vld [vmem:[%s1402_s14 + $0x8] sm:$0xff]  ;;  %v993_v14 = vld [vmem:[%s1402_s14] sm:$0xff] }
 0x169   :  { %909 = vmatmul.msk.bf16.gmra.mxu3 %vm306_vm1, %v390_v15 }
 0x16a   :  { %v362_v22 = vpop.f32.mrf.mxu2 }
 0x16b   :  { %v363_v20 = vadd.f32 %v1235_v30, %v362_v22 }
 0x16d   :  { %v382_v27 = vmax.f32 %v363_v20, 0.0 }
 0x172   :  { %v364_v24 = vpop.f32.mrf.mxu2 }
 0x173   :  { %v365_v25 = vadd.f32 %v1235_v30, %v364_v24 }
 0x175   :  { %v383_v28 = vmax.f32 %v365_v25, 0.0 }
 0x177   :  { %v391_v29 = vpack.c.bf16 %v383_v28, %v382_v27 }
 0x179   :  { %910 = vmatmul.msk.bf16.gmra.mxu3 %vm306_vm1, %v391_v29 }
 0x17a   :  { %v367_v31 = vpop.f32.mrf.mxu2 }
 0x17b   :  { %v368_v32 = vadd.f32 %v1235_v30, %v367_v31 }
 0x17d   :  { %v384_v37 = vmax.f32 %v368_v32, 0.0  ;;  %v570_v32 = vpop.permute.xlu2 %569 }
 0x182   :  { %v369_v33 = vpop.f32.mrf.mxu2 }
 0x183   :  { %v370_v35 = vadd.f32 %v1235_v30, %v369_v33  ;;  %v992_v30 = vld [vmem:[%s1399_s12 + $0x18] sm:$0xff] }
 0x184   :  { %722 = vmatpush.bf16.msra.mxu0 %v992_v30 }
 0x185   :  { %v385_v38 = vmax.f32 %v370_v35, 0.0  ;;  %v573_v35 = vpop.permute.xlu2 %572 }
 0x186   :  { %vm603_vm8 = vcmp.eq.s32.totalorder %v573_v35, 1 }
 0x187   :  { %v392_v39 = vpack.c.bf16 %v385_v38, %v384_v37  ;;  %v579_v37 = vpop.permute.xlu1 %578 }
 0x188   :  { %723 = vmatpush.bf16.msra.mxu0 %v991_v42  ;;  %vm605_vm10 = vcmp.eq.s32.totalorder %v579_v37, 1 }
 0x189   :  { %911 = vmatmul.msk.bf16.gmra.mxu3 %vm306_vm1, %v392_v39  ;;  %v585_v39 = vpop.permute.xlu0 %584 }
 0x18a   :  { %vm607_vm11 = vcmp.eq.s32.totalorder %v585_v39, 1 }
 0x18c   :  { %724 = vmatpush.bf16.msra.mxu0 %v990_v43 }
 0x18d   :  { %v582_v43 = vpop.permute.xlu2 %581 }
 0x18e   :  { %vm606_vm6 = vcmp.eq.s32.totalorder %v582_v43, 1 }
 0x190   :  { %725 = vmatpush.bf16.msra.mxu0 %v989_v26 }
 0x194   :  { %778 = vmatpush.bf16.msrb.mxu0 %v996_v11 }
 0x198   :  { %779 = vmatpush.bf16.msrb.mxu0 %v995_v12 }
 0x19c   :  { %780 = vmatpush.bf16.msrb.mxu0 %v994_v13 }
 0x1a0   :  { %781 = vmatpush.bf16.msrb.mxu0 %v993_v14 }
 0x1a7   :  { %v459_v44 = vpop.f32.mrf.mxu0 }
 0x1a8   :  { %v460_v51 = vadd.f32 %v1327_v48, %v459_v44 }
 0x1aa   :  { %v494_v57 = vmax.f32 %v460_v51, 0.0 }
 0x1ac   :  { %v1332_v61 = vsel %vm598_vm0, %v494_v57, -1e+09 }
 0x1af   :  { %v461_v45 = vpop.f32.mrf.mxu0 }
 0x1b0   :  { %v462_v62 = vadd.f32 %v1327_v48, %v461_v45 }
 0x1b2   :  { %v495_v5 = vmax.f32 %v462_v62, 0.0 }
 0x1b4   :  { %v1340_v8 = vsel %vm599_vm3, %v495_v5, -1e+09 }
 0x1b7   :  { %v671_v46 = vpop.f32.mrf.mxu0 }
 0x1b8   :  { %v672_v49 = vadd.f32 %v1012_v47, %v671_v46 }
 0x1ba   :  { %v676_v55 = vmax.f32 %v672_v49, 0.0 }
 0x1bc   :  { %v464_v56 = vpop.f32.mrf.mxu3 }
 0x1bd   :  { %v465_v59 = vadd.f32 %v1327_v48, %v464_v56 }
 0x1bf   :  { %v673_v50 = vpop.f32.mrf.mxu0  ;;  %v496_v60 = vmax.f32 %v465_v59, 0.0 }
 0x1c0   :  { %v674_v53 = vadd.f32 %v1012_v47, %v673_v50  ;;  %v588_v47 = vpop.permute.xlu1 %587 }
 0x1c1   :  { %v1335_v63 = vsel %vm600_vm2, %v496_v60, -1e+09  ;;  %vm608_vm7 = vcmp.eq.s32.totalorder %v588_v47, 1 }
 0x1c2   :  { %v677_v4 = vmax.f32 %v674_v53, 0.0  ;;  %v626_v0 = vmax.f32 %v1332_v61, %v1335_v63  ;;  %v594_v53 = vpop.permute.xlu0 %593  ;;  %v591_v61 = vpop.permute.xlu2 %590 }
 0x1c3   :  { %vm610_vm9 = vcmp.eq.s32.totalorder %v594_v53, 1  ;;  %vm609_vm12 = vcmp.eq.s32.totalorder %v591_v61, 1 }
 0x1c4   :  { %v678_v58 = vpack.c.bf16 %v677_v4, %v676_v55  ;;  %v466_v3 = vpop.f32.mrf.mxu3 }
 0x1c5   :  { %v467_v6 = vadd.f32 %v1327_v48, %v466_v3 }
 0x1c6   :  { %949 = vmatmul.msk.bf16.vlgmr.msra.gmra.mxu0 %vm306_vm1, %v678_v58 }
 0x1c7   :  { %v497_v7 = vmax.f32 %v467_v6, 0.0 }
 0x1c8   :  { %v597_v12 = vpop.permute.xlu1 %596 }
 0x1c9   :  { %v1342_v9 = vsel %vm601_vm4, %v497_v7, -1e+09  ;;  %vm611_vm13 = vcmp.eq.s32.totalorder %v597_v12, 1 }
 0x1ca   :  { %v627_v10 = vmax.f32 %v1340_v8, %v1342_v9 }
 0x1cc   :  { %v469_v20 = vpop.f32.mrf.mxu3 }
 0x1cd   :  { %v470_v36 = vadd.f32 %v1327_v48, %v469_v20 }
 0x1cf   :  { %v498_v41 = vmax.f32 %v470_v36, 0.0 }
 0x1d4   :  { %v471_v24 = vpop.f32.mrf.mxu3 }
 0x1d5   :  { %v472_v45 = vadd.f32 %v1327_v48, %v471_v24 }
 0x1d7   :  { %v499_v55 = vmax.f32 %v472_v45, 0.0 }
 0x1d9   :  { %v617_v3 = vsel %vm603_vm8, %v499_v55, -1e+09 }
 0x1da   :  { %v629_v13 = vmax.f32 %v627_v10, %v617_v3 }
 0x1dc   :  { %v474_v25 = vpop.f32.mrf.mxu3 }
 0x1dd   :  { %v475_v38 = vadd.f32 %v1327_v48, %v474_v25 }
 0x1df   :  { %v500_v42 = vmax.f32 %v475_v38, 0.0 }
 0x1e1   :  { %v618_v50 = vsel %vm604_vm5, %v500_v42, -1e+09 }
 0x1e4   :  { %v476_v27 = vpop.f32.mrf.mxu3 }
 0x1e5   :  { %v477_v51 = vadd.f32 %v1327_v48, %v476_v27 }
 0x1e7   :  { %v501_v60 = vmax.f32 %v477_v51, 0.0 }
 0x1e9   :  { %v619_v7 = vsel %vm605_vm10, %v501_v60, -1e+09 }
 0x1ec   :  { %v479_v28 = vpop.f32.mrf.mxu3 }
 0x1ed   :  { %v480_v30 = vadd.f32 %v1327_v48, %v479_v28 }
 0x1ef   :  { %v502_v46 = vmax.f32 %v480_v30, 0.0 }
 0x1f1   :  { %v620_v4 = vsel %vm606_vm6, %v502_v46, -1e+09 }
 0x1f4   :  { %v481_v29 = vpop.f32.mrf.mxu3 }
 0x1f5   :  { %v482_v56 = vadd.f32 %v1327_v48, %v481_v29 }
 0x1f7   :  { %v503_v5 = vmax.f32 %v482_v56, 0.0 }
 0x1fc   :  { %v484_v31 = vpop.f32.mrf.mxu3 }
 0x1fd   :  { %v485_v26 = vadd.f32 %v1327_v48, %v484_v31 }
 0x1ff   :  { %v504_v52 = vmax.f32 %v485_v26, 0.0 }
 0x201   :  { %v622_v62 = vsel %vm608_vm7, %v504_v52, -1e+09 }
 0x204   :  { %v486_v33 = vpop.f32.mrf.mxu3 }
 0x205   :  { %v487_v1 = vadd.f32 %v1327_v48, %v486_v33 }
 0x207   :  { %v505_v11 = vmax.f32 %v487_v1, 0.0 }
 0x20c   :  { %v489_v40 = vpop.f32.mrf.mxu3 }
 0x20d   :  { %v490_v49 = vadd.f32 %v1327_v48, %v489_v40 }
 0x20f   :  { %v506_v57 = vmax.f32 %v490_v49, 0.0 }
 0x211   :  { %v624_v63 = vsel %vm610_vm9, %v506_v57, -1e+09 }
 0x214   :  { %v491_v59 = vpop.f32.mrf.mxu3 }
 0x243   :  { %v727_v15 = vpop.f32.mrf.mxu0 }
 0x244   :  { %v728_v18 = vadd.f32 %v1013_v17, %v727_v15  ;;  %v1014_v15 = vld [vmem:[%s1401_s15] ss:$0 sm:$0xff] }
 0x246   :  { %v732_v23 = vmax.f32 %v728_v18, 0.0 }
 0x24b   :  { %v729_v21 = vpop.f32.mrf.mxu0 }
 0x24c   :  { %v730_v22 = vadd.f32 %v1013_v17, %v729_v21  ;;  %v621_v17 = vsel %vm607_vm11, %v503_v5, -1e+09  ;;  %v631_v21 = vmax.f32 %v629_v13, %v619_v7 }
 0x24e   :  { %v733_v16 = vmax.f32 %v730_v22, 0.0 }
 0x250   :  { %v734_v19 = vpack.c.bf16 %v733_v16, %v732_v23  ;;  %v633_v23 = vmax.f32 %v631_v21, %v621_v17 }
 0x252   :  { %966 = vmatmul.msk.bf16.vlgmr.msrb.gmra.mxu0 %vm306_vm1, %v734_v19  ;;  %vm602_vm1 = vcmp.eq.s32.totalorder %v570_v32, 1 }
 0x253   :  { %v616_v44 = vsel %vm602_vm1, %v498_v41, -1e+09 }
 0x254   :  { %v628_v54 = vmax.f32 %v626_v0, %v616_v44  ;;  %v492_v0 = vadd.f32 %v1327_v48, %v491_v59  ;;  %v623_v48 = vsel %vm609_vm12, %v505_v11, -1e+09 }
 0x255   :  { %v635_v20 = vmax.f32 %v633_v23, %v623_v48 }
 0x256   :  { %v630_v58 = vmax.f32 %v628_v54, %v618_v50  ;;  %v507_v18 = vmax.f32 %v492_v0, 0.0 }
 0x258   :  { %v632_v2 = vmax.f32 %v630_v58, %v620_v4  ;;  %v625_v19 = vsel %vm611_vm13, %v507_v18, -1e+09 }
 0x259   :  { %v637_v9 = vmax.f32 %v635_v20, %v625_v19 }
 0x25a   :  { %v634_v6 = vmax.f32 %v632_v2, %v622_v62 }
 0x25b   :  { %vm639_vm15 = vcmp.le.f32.partialorder %v637_v9, -5e+08 }
 0x25c   :  { %v636_v14 = vmax.f32 %v634_v6, %v624_v63  ;;  %v641_v29 = vsel %vm639_vm15, 0.0, %v637_v9 }
 0x25e   :  { %vm638_vm14 = vcmp.le.f32.partialorder %v636_v14, -5e+08 }
 0x25f   :  { %v640_v8 = vsel %vm638_vm14, 0.0, %v636_v14 }
 0x2cf   :  { %v783_v22 = vpop.f32.mrf.mxu0 }
 0x2d0   :  { %v784_v16 = vadd.f32 %v1014_v15, %v783_v22 }
 0x2d2   :  { %v788_v24 = vmax.f32 %v784_v16, 0.0 }
 0x2d4   :  { %v790_v10 = vadd.f32 %v788_v24, %v640_v8 }
 0x2d6   :  { %792 = vst [vmem:[%s1403_s16] sm:$0xff] %v790_v10 }
 0x2d7   :  { %v785_v25 = vpop.f32.mrf.mxu0 }
 0x2d8   :  { %v786_v27 = vadd.f32 %v1014_v15, %v785_v25 }
 0x2da   :  { %v789_v28 = vmax.f32 %v786_v27, 0.0 }
 0x2dc   :  { %v791_v31 = vadd.f32 %v789_v28, %v641_v29 }
 0x2de   :  { %793 = vst [vmem:[%s1403_s16 + $0x8] sm:$0xff] %v791_v31 }

</bundles_post_ra>
